<compile_context>
chip_gen: v7x
topology: tpu7x:2x2x1
jax: 0.10.0
libtpu: 0.0.40
codegen_flags: <defaults>
</compile_context>

<pallas_src>
import functools

import numpy as np

import jax
import jax.numpy as jnp
from jax.experimental import pallas as pl
from jax.experimental.pallas import tpu as pltpu


# ----------------------------------------------------------------------------
# In-kernel helpers
# ----------------------------------------------------------------------------
def _pool2x2(a, *, w, c):
    """2x2 / stride-2 max pool on a 2-D activation slab.

    `a` has shape (2*Ho, w*c) where the lane index is width_pos * c + channel
    (flattened (W, C) of an NHWC slab).  Returns (Ho, (w//2)*c) in the same
    flattened-(W, C) lane layout.  Uses only static unit-stride slices,
    elementwise max and concatenation (safe Mosaic ops).
    """
    rows = a.shape[0] // 2
    rmax = jnp.concatenate(
        [jnp.maximum(a[2 * i:2 * i + 1, :], a[2 * i + 1:2 * i + 2, :])
         for i in range(rows)],
        axis=0)
    return jnp.concatenate(
        [jnp.maximum(rmax[:, (2 * j) * c:(2 * j + 1) * c],
                     rmax[:, (2 * j + 1) * c:(2 * j + 2) * c])
         for j in range(w // 2)],
        axis=1)


def _convnet_kernel(x_ref, t1_ref, b1_ref, t2_ref, b2_ref,
                    wf1_ref, bf1_ref, wf2_ref, bf2_ref, wf3_ref, bf3_ref,
                    logits_ref, penult_ref):
    f32 = jnp.float32
    xb = x_ref[0]                                            # (28, 28)

    # conv1 5x5, 1->16: sum over the 5 kernel rows of a Toeplitz matmul.
    # Result lanes = w*16 + c  (flattened (W=24, C=16) -> 384 lanes).
    acc1 = jnp.dot(xb[0:24, :], t1_ref[0], preferred_element_type=f32)
    for dh in range(1, 5):
        acc1 = acc1 + jnp.dot(xb[dh:dh + 24, :], t1_ref[dh],
                              preferred_element_type=f32)
    c1 = jnp.maximum(acc1 + b1_ref[...], 0.0)                # (24, 384)
    p1 = _pool2x2(c1, w=24, c=16)                            # (12, 192)

    # conv2 3x3, 16->32: same trick.  Result lanes = w*32 + c (320 lanes).
    acc2 = jnp.dot(p1[0:10, :], t2_ref[0], preferred_element_type=f32)
    for dh in range(1, 3):
        acc2 = acc2 + jnp.dot(p1[dh:dh + 10, :], t2_ref[dh],
                              preferred_element_type=f32)
    c2 = jnp.maximum(acc2 + b2_ref[...], 0.0)                # (10, 320)
    p2 = _pool2x2(c2, w=10, c=32)                            # (5, 160)

    # fc1: weight was pre-permuted to (H=5, W*C=160, 120) so we contract the
    # pooled map row-by-row (no flatten/transpose needed in-kernel).
    accf = jnp.dot(p2[0:1, :], wf1_ref[0], preferred_element_type=f32)
    for h in range(1, 5):
        accf = accf + jnp.dot(p2[h:h + 1, :], wf1_ref[h],
                              preferred_element_type=f32)
    h1 = jnp.maximum(accf + bf1_ref[...], 0.0)               # (1, 120)

    # fc2 + ReLU (penultimate), fc3 (logits)
    h2 = jnp.maximum(jnp.dot(h1, wf2_ref[...], preferred_element_type=f32)
                     + bf2_ref[...], 0.0)                    # (1, 84)
    logits = (jnp.dot(h2, wf3_ref[...], preferred_element_type=f32)
              + bf3_ref[...])                                # (1, 10)

    penult_ref[0] = h2.astype(penult_ref.dtype)
    logits_ref[0] = logits.astype(logits_ref.dtype)


# ----------------------------------------------------------------------------
# One-time weight preprocessing (host-side, outside the hot path)
# ----------------------------------------------------------------------------
def prepare_params(params):
    """Convert torch-layout parameters into kernel-ready operands."""
    w1 = np.asarray(params["conv1_w"], np.float32)           # (16, 1, 5, 5)
    b1 = np.asarray(params["conv1_b"], np.float32)
    w2 = np.asarray(params["conv2_w"], np.float32)           # (32, 16, 3, 3)
    b2 = np.asarray(params["conv2_b"], np.float32)

    # conv1 Toeplitz slabs: t1[dh, x+dw, x*16 + o] = w1[o, 0, dh, dw]
    t1 = np.zeros((5, 28, 24 * 16), np.float32)
    for dh in range(5):
        for x in range(24):
            for dw in range(5):
                t1[dh, x + dw, x * 16:(x + 1) * 16] = w1[:, 0, dh, dw]

    # conv2 Toeplitz slabs: t2[dh, (xo+dw)*16 + c, xo*32 + o] = w2[o, c, dh, dw]
    t2 = np.zeros((3, 12 * 16, 10 * 32), np.float32)
    for dh in range(3):
        for xo in range(10):
            for dw in range(3):
                xi = xo + dw
                t2[dh, xi * 16:(xi + 1) * 16,
                   xo * 32:(xo + 1) * 32] = w2[:, :, dh, dw].T

    # fc1 weight permuted from torch's (C, H, W) flatten order to our
    # (H, W, C) in-kernel order: wf1[h, w*32 + o, n] = fc1_w[o*25 + h*5 + w, n]
    wf1 = (np.asarray(params["fc1_w"], np.float32)
           .reshape(32, 5, 5, 120).transpose(1, 2, 0, 3).reshape(5, 160, 120))

    return {
        "t1": jnp.asarray(t1),
        "b1": jnp.asarray(np.tile(b1, 24).reshape(1, 24 * 16)),
        "t2": jnp.asarray(t2),
        "b2": jnp.asarray(np.tile(b2, 10).reshape(1, 10 * 32)),
        "wf1": jnp.asarray(wf1),
        "bf1": jnp.asarray(params["fc1_b"]).reshape(1, 120),
        "wf2": jnp.asarray(params["fc2_w"]),
        "bf2": jnp.asarray(params["fc2_b"]).reshape(1, 84),
        "wf3": jnp.asarray(params["fc3_w"]),
        "bf3": jnp.asarray(params["fc3_b"]).reshape(1, 10),
    }


# ----------------------------------------------------------------------------
# Forward pass: one pallas_call for the whole network
# ----------------------------------------------------------------------------
@jax.jit
def convnet_forward(prep, x_nchw):
    B = x_nchw.shape[0]
    x = x_nchw.reshape(B, 28, 28).astype(jnp.float32)   # C=1 -> free reshape

    flops = B * 2 * (5 * 24 * 28 * 384 + 3 * 10 * 192 * 320
                     + 5 * 160 * 120 + 120 * 84 + 84 * 10)
    bytes_accessed = 4 * (int(x.size)
                          + sum(int(v.size) for v in prep.values())
                          + B * (10 + 84))

    const2 = lambda b: (0, 0)
    const3 = lambda b: (0, 0, 0)

    in_specs = [
        pl.BlockSpec((1, 28, 28), lambda b: (b, 0, 0)),      # x (per image)
        pl.BlockSpec((5, 28, 384), const3),                  # t1
        pl.BlockSpec((1, 384), const2),                      # b1 (tiled)
        pl.BlockSpec((3, 192, 320), const3),                 # t2
        pl.BlockSpec((1, 320), const2),                      # b2 (tiled)
        pl.BlockSpec((5, 160, 120), const3),                 # fc1 (permuted)
        pl.BlockSpec((1, 120), const2),                      # fc1 bias
        pl.BlockSpec((120, 84), const2),                     # fc2
        pl.BlockSpec((1, 84), const2),                       # fc2 bias
        pl.BlockSpec((84, 10), const2),                      # fc3
        pl.BlockSpec((1, 10), const2),                       # fc3 bias
    ]
    out_specs = (
        pl.BlockSpec((1, 1, 10), lambda b: (b, 0, 0)),       # logits
        pl.BlockSpec((1, 1, 84), lambda b: (b, 0, 0)),       # penultimate
    )
    out_shape = (
        jax.ShapeDtypeStruct((B, 1, 10), jnp.float32),
        jax.ShapeDtypeStruct((B, 1, 84), jnp.float32),
    )

    logits, penult = pl.pallas_call(
        _convnet_kernel,
        out_shape=out_shape,
        grid=(B,),
        in_specs=in_specs,
        out_specs=out_specs,
        compiler_params=pltpu.CompilerParams(
            dimension_semantics=("parallel",),
            vmem_limit_bytes=32 * 1024 * 1024),
        cost_estimate=pl.CostEstimate(flops=flops, transcendentals=0,
                                      bytes_accessed=bytes_accessed),
    )(x, prep["t1"], prep["b1"], prep["t2"], prep["b2"],
      prep["wf1"], prep["bf1"], prep["wf2"], prep["bf2"],
      prep["wf3"], prep["bf3"])

    return logits.reshape(B, 10), penult.reshape(B, 84)


# ----------------------------------------------------------------------------
# Parameter init (torch-equivalent layouts) and pure-JAX reference
# ----------------------------------------------------------------------------
def init_params(key):
    ks = jax.random.split(key, 10)

    def u(k, shape, fan_in):
        bound = 1.0 / jnp.sqrt(fan_in)
        return jax.random.uniform(k, shape, jnp.float32, -bound, bound)

    return {
        "conv1_w": u(ks[0], (16, 1, 5, 5), 1 * 5 * 5),
        "conv1_b": u(ks[1], (16,), 1 * 5 * 5),
        "conv2_w": u(ks[2], (32, 16, 3, 3), 16 * 3 * 3),
        "conv2_b": u(ks[3], (32,), 16 * 3 * 3),
        "fc1_w": u(ks[4], (800, 120), 800),
        "fc1_b": u(ks[5], (120,), 800),
        "fc2_w": u(ks[6], (120, 84), 120),
        "fc2_b": u(ks[7], (84,), 120),
        "fc3_w": u(ks[8], (84, 10), 84),
        "fc3_b": u(ks[9], (10,), 84),
    }


def _reference_forward(params, x_nchw):
    dn = ("NCHW", "OIHW", "NCHW")
    h = jax.lax.conv_general_dilated(x_nchw, params["conv1_w"], (1, 1), "VALID",
                                     dimension_numbers=dn)
    h = jax.nn.relu(h + params["conv1_b"][None, :, None, None])
    h = jax.lax.reduce_window(h, -jnp.inf, jax.lax.max,
                              (1, 1, 2, 2), (1, 1, 2, 2), "VALID")
    h = jax.lax.conv_general_dilated(h, params["conv2_w"], (1, 1), "VALID",
                                     dimension_numbers=dn)
    h = jax.nn.relu(h + params["conv2_b"][None, :, None, None])
    h = jax.lax.reduce_window(h, -jnp.inf, jax.lax.max,
                              (1, 1, 2, 2), (1, 1, 2, 2), "VALID")
    flat = h.reshape(h.shape[0], 32 * 5 * 5)
    h = jax.nn.relu(flat @ params["fc1_w"] + params["fc1_b"])
    penult = jax.nn.relu(h @ params["fc2_w"] + params["fc2_b"])
    return penult @ params["fc3_w"] + params["fc3_b"], penult


if __name__ == "__main__":
    key = jax.random.PRNGKey(0)
    k_x, k_p = jax.random.split(key)

    # Input implied by the module: (B, 1, 28, 28) NCHW (28x28 -> 5x5 after the
    # two conv+pool stages, matching fc1's 32*5*5 input).
    x = jax.random.normal(k_x, (2, 1, 28, 28), dtype=jnp.float32)
    params = init_params(k_p)
    prep = prepare_params(params)          # one-time weight preprocessing

    logits, penult = jax.block_until_ready(convnet_forward(prep, x))
    assert logits.shape == (2, 10) and penult.shape == (2, 84)

    ref_logits, ref_penult = _reference_forward(params, x)
    assert jnp.allclose(logits, ref_logits, atol=2e-3, rtol=2e-3), (
        f"logits max abs err {jnp.max(jnp.abs(logits - ref_logits))}")
    assert jnp.allclose(penult, ref_penult, atol=2e-3, rtol=2e-3), (
        f"penult max abs err {jnp.max(jnp.abs(penult - ref_penult))}")

    print("KERNEL_OK")
</pallas_src>

<mosaic_0001>
module attributes {stable_mosaic.version = 11 : i64} {
  func.func @_convnet_kernel(%arg0: i32, %arg1: memref<1x28x28xf32, #tpu.memory_space<vmem>>, %arg2: memref<5x28x384xf32, #tpu.memory_space<vmem>>, %arg3: memref<1x384xf32, #tpu.memory_space<vmem>>, %arg4: memref<3x192x320xf32, #tpu.memory_space<vmem>>, %arg5: memref<1x320xf32, #tpu.memory_space<vmem>>, %arg6: memref<5x160x120xf32, #tpu.memory_space<vmem>>, %arg7: memref<1x120xf32, #tpu.memory_space<vmem>>, %arg8: memref<120x84xf32, #tpu.memory_space<vmem>>, %arg9: memref<1x84xf32, #tpu.memory_space<vmem>>, %arg10: memref<84x10xf32, #tpu.memory_space<vmem>>, %arg11: memref<1x10xf32, #tpu.memory_space<vmem>>, %arg12: memref<1x1x10xf32, #tpu.memory_space<vmem>>, %arg13: memref<1x1x84xf32, #tpu.memory_space<vmem>>) attributes {dimension_semantics = [#tpu.dimension_semantics<parallel>], iteration_bounds = array<i64: 2>, scalar_prefetch = 0 : i64, scratch_operands = 0 : i64, tpu.core_type = #tpu.core_type<tc>, window_params = [{transform_indices = @transform_0, window_bounds = array<i64: 1, 28, 28>}, {pipeline_mode = #tpu.pipeline_mode<synchronous>, transform_indices = @transform_1, window_bounds = array<i64: 5, 28, 384>}, {pipeline_mode = #tpu.pipeline_mode<synchronous>, transform_indices = @transform_2, window_bounds = array<i64: 1, 384>}, {pipeline_mode = #tpu.pipeline_mode<synchronous>, transform_indices = @transform_3, window_bounds = array<i64: 3, 192, 320>}, {pipeline_mode = #tpu.pipeline_mode<synchronous>, transform_indices = @transform_4, window_bounds = array<i64: 1, 320>}, {pipeline_mode = #tpu.pipeline_mode<synchronous>, transform_indices = @transform_5, window_bounds = array<i64: 5, 160, 120>}, {pipeline_mode = #tpu.pipeline_mode<synchronous>, transform_indices = @transform_6, window_bounds = array<i64: 1, 120>}, {pipeline_mode = #tpu.pipeline_mode<synchronous>, transform_indices = @transform_7, window_bounds = array<i64: 120, 84>}, {pipeline_mode = #tpu.pipeline_mode<synchronous>, transform_indices = @transform_8, window_bounds = array<i64: 1, 84>}, {pipeline_mode = #tpu.pipeline_mode<synchronous>, transform_indices = @transform_9, window_bounds = array<i64: 84, 10>}, {pipeline_mode = #tpu.pipeline_mode<synchronous>, transform_indices = @transform_10, window_bounds = array<i64: 1, 10>}, {transform_indices = @transform_11, window_bounds = array<i64: 1, 1, 10>}, {transform_indices = @transform_12, window_bounds = array<i64: 1, 1, 84>}]} {
    %c0 = arith.constant 0 : index
    %c0_0 = arith.constant 0 : index
    %c0_1 = arith.constant 0 : index
    %0 = vector.load %arg1[%c0, %c0_0, %c0_1] : memref<1x28x28xf32, #tpu.memory_space<vmem>>, vector<1x28x28xf32>
    %1 = vector.shape_cast %0 : vector<1x28x28xf32> to vector<28x28xf32>
    %2 = vector.extract_strided_slice %1 {offsets = [0, 0], sizes = [24, 28], strides = [1, 1]} : vector<28x28xf32> to vector<24x28xf32>
    %c0_2 = arith.constant 0 : index
    %c0_3 = arith.constant 0 : index
    %c0_4 = arith.constant 0 : index
    %3 = vector.load %arg2[%c0_2, %c0_3, %c0_4] : memref<5x28x384xf32, #tpu.memory_space<vmem>>, vector<1x28x384xf32>
    %4 = vector.shape_cast %3 : vector<1x28x384xf32> to vector<28x384xf32>
    %cst = arith.constant dense<0.000000e+00> : vector<24x384xf32>
    %5 = tpu.matmul %2, %4, %cst {dimension_numbers = #tpu.dot_dimension_numbers<[1], [0], [0], [1], [0, 0, 1, 1], [], []>} : vector<24x28xf32>, vector<28x384xf32>, vector<24x384xf32> -> vector<24x384xf32>
    %6 = vector.extract_strided_slice %1 {offsets = [1, 0], sizes = [24, 28], strides = [1, 1]} : vector<28x28xf32> to vector<24x28xf32>
    %c1 = arith.constant 1 : index
    %c0_5 = arith.constant 0 : index
    %c0_6 = arith.constant 0 : index
    %7 = vector.load %arg2[%c1, %c0_5, %c0_6] : memref<5x28x384xf32, #tpu.memory_space<vmem>>, vector<1x28x384xf32>
    %8 = vector.shape_cast %7 : vector<1x28x384xf32> to vector<28x384xf32>
    %cst_7 = arith.constant dense<0.000000e+00> : vector<24x384xf32>
    %9 = tpu.matmul %6, %8, %cst_7 {dimension_numbers = #tpu.dot_dimension_numbers<[1], [0], [0], [1], [0, 0, 1, 1], [], []>} : vector<24x28xf32>, vector<28x384xf32>, vector<24x384xf32> -> vector<24x384xf32>
    %10 = arith.addf %5, %9 : vector<24x384xf32>
    %11 = vector.extract_strided_slice %1 {offsets = [2, 0], sizes = [24, 28], strides = [1, 1]} : vector<28x28xf32> to vector<24x28xf32>
    %c2 = arith.constant 2 : index
    %c0_8 = arith.constant 0 : index
    %c0_9 = arith.constant 0 : index
    %12 = vector.load %arg2[%c2, %c0_8, %c0_9] : memref<5x28x384xf32, #tpu.memory_space<vmem>>, vector<1x28x384xf32>
    %13 = vector.shape_cast %12 : vector<1x28x384xf32> to vector<28x384xf32>
    %cst_10 = arith.constant dense<0.000000e+00> : vector<24x384xf32>
    %14 = tpu.matmul %11, %13, %cst_10 {dimension_numbers = #tpu.dot_dimension_numbers<[1], [0], [0], [1], [0, 0, 1, 1], [], []>} : vector<24x28xf32>, vector<28x384xf32>, vector<24x384xf32> -> vector<24x384xf32>
    %15 = arith.addf %10, %14 : vector<24x384xf32>
    %16 = vector.extract_strided_slice %1 {offsets = [3, 0], sizes = [24, 28], strides = [1, 1]} : vector<28x28xf32> to vector<24x28xf32>
    %c3 = arith.constant 3 : index
    %c0_11 = arith.constant 0 : index
    %c0_12 = arith.constant 0 : index
    %17 = vector.load %arg2[%c3, %c0_11, %c0_12] : memref<5x28x384xf32, #tpu.memory_space<vmem>>, vector<1x28x384xf32>
    %18 = vector.shape_cast %17 : vector<1x28x384xf32> to vector<28x384xf32>
    %cst_13 = arith.constant dense<0.000000e+00> : vector<24x384xf32>
    %19 = tpu.matmul %16, %18, %cst_13 {dimension_numbers = #tpu.dot_dimension_numbers<[1], [0], [0], [1], [0, 0, 1, 1], [], []>} : vector<24x28xf32>, vector<28x384xf32>, vector<24x384xf32> -> vector<24x384xf32>
    %20 = arith.addf %15, %19 : vector<24x384xf32>
    %21 = vector.extract_strided_slice %1 {offsets = [4, 0], sizes = [24, 28], strides = [1, 1]} : vector<28x28xf32> to vector<24x28xf32>
    %c4 = arith.constant 4 : index
    %c0_14 = arith.constant 0 : index
    %c0_15 = arith.constant 0 : index
    %22 = vector.load %arg2[%c4, %c0_14, %c0_15] : memref<5x28x384xf32, #tpu.memory_space<vmem>>, vector<1x28x384xf32>
    %23 = vector.shape_cast %22 : vector<1x28x384xf32> to vector<28x384xf32>
    %cst_16 = arith.constant dense<0.000000e+00> : vector<24x384xf32>
    %24 = tpu.matmul %21, %23, %cst_16 {dimension_numbers = #tpu.dot_dimension_numbers<[1], [0], [0], [1], [0, 0, 1, 1], [], []>} : vector<24x28xf32>, vector<28x384xf32>, vector<24x384xf32> -> vector<24x384xf32>
    %25 = arith.addf %20, %24 : vector<24x384xf32>
    %c0_17 = arith.constant 0 : index
    %c0_18 = arith.constant 0 : index
    %26 = vector.load %arg3[%c0_17, %c0_18] : memref<1x384xf32, #tpu.memory_space<vmem>>, vector<1x384xf32>
    %27 = vector.broadcast %26 : vector<1x384xf32> to vector<24x384xf32>
    %28 = arith.addf %25, %27 : vector<24x384xf32>
    %cst_19 = arith.constant 0.000000e+00 : f32
    %29 = vector.broadcast %cst_19 : f32 to vector<24x384xf32>
    %30 = arith.maximumf %28, %29 : vector<24x384xf32>
    %31 = vector.extract_strided_slice %30 {offsets = [0, 0], sizes = [1, 384], strides = [1, 1]} : vector<24x384xf32> to vector<1x384xf32>
    %32 = vector.extract_strided_slice %30 {offsets = [1, 0], sizes = [1, 384], strides = [1, 1]} : vector<24x384xf32> to vector<1x384xf32>
    %33 = arith.maximumf %31, %32 : vector<1x384xf32>
    %34 = vector.extract_strided_slice %30 {offsets = [2, 0], sizes = [1, 384], strides = [1, 1]} : vector<24x384xf32> to vector<1x384xf32>
    %35 = vector.extract_strided_slice %30 {offsets = [3, 0], sizes = [1, 384], strides = [1, 1]} : vector<24x384xf32> to vector<1x384xf32>
    %36 = arith.maximumf %34, %35 : vector<1x384xf32>
    %37 = vector.extract_strided_slice %30 {offsets = [4, 0], sizes = [1, 384], strides = [1, 1]} : vector<24x384xf32> to vector<1x384xf32>
    %38 = vector.extract_strided_slice %30 {offsets = [5, 0], sizes = [1, 384], strides = [1, 1]} : vector<24x384xf32> to vector<1x384xf32>
    %39 = arith.maximumf %37, %38 : vector<1x384xf32>
    %40 = vector.extract_strided_slice %30 {offsets = [6, 0], sizes = [1, 384], strides = [1, 1]} : vector<24x384xf32> to vector<1x384xf32>
    %41 = vector.extract_strided_slice %30 {offsets = [7, 0], sizes = [1, 384], strides = [1, 1]} : vector<24x384xf32> to vector<1x384xf32>
    %42 = arith.maximumf %40, %41 : vector<1x384xf32>
    %43 = vector.extract_strided_slice %30 {offsets = [8, 0], sizes = [1, 384], strides = [1, 1]} : vector<24x384xf32> to vector<1x384xf32>
    %44 = vector.extract_strided_slice %30 {offsets = [9, 0], sizes = [1, 384], strides = [1, 1]} : vector<24x384xf32> to vector<1x384xf32>
    %45 = arith.maximumf %43, %44 : vector<1x384xf32>
    %46 = vector.extract_strided_slice %30 {offsets = [10, 0], sizes = [1, 384], strides = [1, 1]} : vector<24x384xf32> to vector<1x384xf32>
    %47 = vector.extract_strided_slice %30 {offsets = [11, 0], sizes = [1, 384], strides = [1, 1]} : vector<24x384xf32> to vector<1x384xf32>
    %48 = arith.maximumf %46, %47 : vector<1x384xf32>
    %49 = vector.extract_strided_slice %30 {offsets = [12, 0], sizes = [1, 384], strides = [1, 1]} : vector<24x384xf32> to vector<1x384xf32>
    %50 = vector.extract_strided_slice %30 {offsets = [13, 0], sizes = [1, 384], strides = [1, 1]} : vector<24x384xf32> to vector<1x384xf32>
    %51 = arith.maximumf %49, %50 : vector<1x384xf32>
    %52 = vector.extract_strided_slice %30 {offsets = [14, 0], sizes = [1, 384], strides = [1, 1]} : vector<24x384xf32> to vector<1x384xf32>
    %53 = vector.extract_strided_slice %30 {offsets = [15, 0], sizes = [1, 384], strides = [1, 1]} : vector<24x384xf32> to vector<1x384xf32>
    %54 = arith.maximumf %52, %53 : vector<1x384xf32>
    %55 = vector.extract_strided_slice %30 {offsets = [16, 0], sizes = [1, 384], strides = [1, 1]} : vector<24x384xf32> to vector<1x384xf32>
    %56 = vector.extract_strided_slice %30 {offsets = [17, 0], sizes = [1, 384], strides = [1, 1]} : vector<24x384xf32> to vector<1x384xf32>
    %57 = arith.maximumf %55, %56 : vector<1x384xf32>
    %58 = vector.extract_strided_slice %30 {offsets = [18, 0], sizes = [1, 384], strides = [1, 1]} : vector<24x384xf32> to vector<1x384xf32>
    %59 = vector.extract_strided_slice %30 {offsets = [19, 0], sizes = [1, 384], strides = [1, 1]} : vector<24x384xf32> to vector<1x384xf32>
    %60 = arith.maximumf %58, %59 : vector<1x384xf32>
    %61 = vector.extract_strided_slice %30 {offsets = [20, 0], sizes = [1, 384], strides = [1, 1]} : vector<24x384xf32> to vector<1x384xf32>
    %62 = vector.extract_strided_slice %30 {offsets = [21, 0], sizes = [1, 384], strides = [1, 1]} : vector<24x384xf32> to vector<1x384xf32>
    %63 = arith.maximumf %61, %62 : vector<1x384xf32>
    %64 = vector.extract_strided_slice %30 {offsets = [22, 0], sizes = [1, 384], strides = [1, 1]} : vector<24x384xf32> to vector<1x384xf32>
    %65 = vector.extract_strided_slice %30 {offsets = [23, 0], sizes = [1, 384], strides = [1, 1]} : vector<24x384xf32> to vector<1x384xf32>
    %66 = arith.maximumf %64, %65 : vector<1x384xf32>
    %67 = tpu.concatenate %33, %36, %39, %42, %45, %48, %51, %54, %57, %60, %63, %66 in 0 : vector<1x384xf32>, vector<1x384xf32>, vector<1x384xf32>, vector<1x384xf32>, vector<1x384xf32>, vector<1x384xf32>, vector<1x384xf32>, vector<1x384xf32>, vector<1x384xf32>, vector<1x384xf32>, vector<1x384xf32>, vector<1x384xf32> -> vector<12x384xf32>
    %68 = vector.extract_strided_slice %67 {offsets = [0, 0], sizes = [12, 16], strides = [1, 1]} : vector<12x384xf32> to vector<12x16xf32>
    %69 = vector.extract_strided_slice %67 {offsets = [0, 16], sizes = [12, 16], strides = [1, 1]} : vector<12x384xf32> to vector<12x16xf32>
    %70 = arith.maximumf %68, %69 : vector<12x16xf32>
    %71 = vector.extract_strided_slice %67 {offsets = [0, 32], sizes = [12, 16], strides = [1, 1]} : vector<12x384xf32> to vector<12x16xf32>
    %72 = vector.extract_strided_slice %67 {offsets = [0, 48], sizes = [12, 16], strides = [1, 1]} : vector<12x384xf32> to vector<12x16xf32>
    %73 = arith.maximumf %71, %72 : vector<12x16xf32>
    %74 = vector.extract_strided_slice %67 {offsets = [0, 64], sizes = [12, 16], strides = [1, 1]} : vector<12x384xf32> to vector<12x16xf32>
    %75 = vector.extract_strided_slice %67 {offsets = [0, 80], sizes = [12, 16], strides = [1, 1]} : vector<12x384xf32> to vector<12x16xf32>
    %76 = arith.maximumf %74, %75 : vector<12x16xf32>
    %77 = vector.extract_strided_slice %67 {offsets = [0, 96], sizes = [12, 16], strides = [1, 1]} : vector<12x384xf32> to vector<12x16xf32>
    %78 = vector.extract_strided_slice %67 {offsets = [0, 112], sizes = [12, 16], strides = [1, 1]} : vector<12x384xf32> to vector<12x16xf32>
    %79 = arith.maximumf %77, %78 : vector<12x16xf32>
    %80 = vector.extract_strided_slice %67 {offsets = [0, 128], sizes = [12, 16], strides = [1, 1]} : vector<12x384xf32> to vector<12x16xf32>
    %81 = vector.extract_strided_slice %67 {offsets = [0, 144], sizes = [12, 16], strides = [1, 1]} : vector<12x384xf32> to vector<12x16xf32>
    %82 = arith.maximumf %80, %81 : vector<12x16xf32>
    %83 = vector.extract_strided_slice %67 {offsets = [0, 160], sizes = [12, 16], strides = [1, 1]} : vector<12x384xf32> to vector<12x16xf32>
    %84 = vector.extract_strided_slice %67 {offsets = [0, 176], sizes = [12, 16], strides = [1, 1]} : vector<12x384xf32> to vector<12x16xf32>
    %85 = arith.maximumf %83, %84 : vector<12x16xf32>
    %86 = vector.extract_strided_slice %67 {offsets = [0, 192], sizes = [12, 16], strides = [1, 1]} : vector<12x384xf32> to vector<12x16xf32>
    %87 = vector.extract_strided_slice %67 {offsets = [0, 208], sizes = [12, 16], strides = [1, 1]} : vector<12x384xf32> to vector<12x16xf32>
    %88 = arith.maximumf %86, %87 : vector<12x16xf32>
    %89 = vector.extract_strided_slice %67 {offsets = [0, 224], sizes = [12, 16], strides = [1, 1]} : vector<12x384xf32> to vector<12x16xf32>
    %90 = vector.extract_strided_slice %67 {offsets = [0, 240], sizes = [12, 16], strides = [1, 1]} : vector<12x384xf32> to vector<12x16xf32>
    %91 = arith.maximumf %89, %90 : vector<12x16xf32>
    %92 = vector.extract_strided_slice %67 {offsets = [0, 256], sizes = [12, 16], strides = [1, 1]} : vector<12x384xf32> to vector<12x16xf32>
    %93 = vector.extract_strided_slice %67 {offsets = [0, 272], sizes = [12, 16], strides = [1, 1]} : vector<12x384xf32> to vector<12x16xf32>
    %94 = arith.maximumf %92, %93 : vector<12x16xf32>
    %95 = vector.extract_strided_slice %67 {offsets = [0, 288], sizes = [12, 16], strides = [1, 1]} : vector<12x384xf32> to vector<12x16xf32>
    %96 = vector.extract_strided_slice %67 {offsets = [0, 304], sizes = [12, 16], strides = [1, 1]} : vector<12x384xf32> to vector<12x16xf32>
    %97 = arith.maximumf %95, %96 : vector<12x16xf32>
    %98 = vector.extract_strided_slice %67 {offsets = [0, 320], sizes = [12, 16], strides = [1, 1]} : vector<12x384xf32> to vector<12x16xf32>
    %99 = vector.extract_strided_slice %67 {offsets = [0, 336], sizes = [12, 16], strides = [1, 1]} : vector<12x384xf32> to vector<12x16xf32>
    %100 = arith.maximumf %98, %99 : vector<12x16xf32>
    %101 = vector.extract_strided_slice %67 {offsets = [0, 352], sizes = [12, 16], strides = [1, 1]} : vector<12x384xf32> to vector<12x16xf32>
    %102 = vector.extract_strided_slice %67 {offsets = [0, 368], sizes = [12, 16], strides = [1, 1]} : vector<12x384xf32> to vector<12x16xf32>
    %103 = arith.maximumf %101, %102 : vector<12x16xf32>
    %104 = tpu.concatenate %70, %73, %76, %79, %82, %85, %88, %91, %94, %97, %100, %103 in 1 : vector<12x16xf32>, vector<12x16xf32>, vector<12x16xf32>, vector<12x16xf32>, vector<12x16xf32>, vector<12x16xf32>, vector<12x16xf32>, vector<12x16xf32>, vector<12x16xf32>, vector<12x16xf32>, vector<12x16xf32>, vector<12x16xf32> -> vector<12x192xf32>
    %105 = vector.extract_strided_slice %104 {offsets = [0, 0], sizes = [10, 192], strides = [1, 1]} : vector<12x192xf32> to vector<10x192xf32>
    %c0_20 = arith.constant 0 : index
    %c0_21 = arith.constant 0 : index
    %c0_22 = arith.constant 0 : index
    %106 = vector.load %arg4[%c0_20, %c0_21, %c0_22] : memref<3x192x320xf32, #tpu.memory_space<vmem>>, vector<1x192x320xf32>
    %107 = vector.shape_cast %106 : vector<1x192x320xf32> to vector<192x320xf32>
    %cst_23 = arith.constant dense<0.000000e+00> : vector<10x320xf32>
    %108 = tpu.matmul %105, %107, %cst_23 {dimension_numbers = #tpu.dot_dimension_numbers<[1], [0], [0], [1], [0, 0, 1, 1], [], []>} : vector<10x192xf32>, vector<192x320xf32>, vector<10x320xf32> -> vector<10x320xf32>
    %109 = vector.extract_strided_slice %104 {offsets = [1, 0], sizes = [10, 192], strides = [1, 1]} : vector<12x192xf32> to vector<10x192xf32>
    %c1_24 = arith.constant 1 : index
    %c0_25 = arith.constant 0 : index
    %c0_26 = arith.constant 0 : index
    %110 = vector.load %arg4[%c1_24, %c0_25, %c0_26] : memref<3x192x320xf32, #tpu.memory_space<vmem>>, vector<1x192x320xf32>
    %111 = vector.shape_cast %110 : vector<1x192x320xf32> to vector<192x320xf32>
    %cst_27 = arith.constant dense<0.000000e+00> : vector<10x320xf32>
    %112 = tpu.matmul %109, %111, %cst_27 {dimension_numbers = #tpu.dot_dimension_numbers<[1], [0], [0], [1], [0, 0, 1, 1], [], []>} : vector<10x192xf32>, vector<192x320xf32>, vector<10x320xf32> -> vector<10x320xf32>
    %113 = arith.addf %108, %112 : vector<10x320xf32>
    %114 = vector.extract_strided_slice %104 {offsets = [2, 0], sizes = [10, 192], strides = [1, 1]} : vector<12x192xf32> to vector<10x192xf32>
    %c2_28 = arith.constant 2 : index
    %c0_29 = arith.constant 0 : index
    %c0_30 = arith.constant 0 : index
    %115 = vector.load %arg4[%c2_28, %c0_29, %c0_30] : memref<3x192x320xf32, #tpu.memory_space<vmem>>, vector<1x192x320xf32>
    %116 = vector.shape_cast %115 : vector<1x192x320xf32> to vector<192x320xf32>
    %cst_31 = arith.constant dense<0.000000e+00> : vector<10x320xf32>
    %117 = tpu.matmul %114, %116, %cst_31 {dimension_numbers = #tpu.dot_dimension_numbers<[1], [0], [0], [1], [0, 0, 1, 1], [], []>} : vector<10x192xf32>, vector<192x320xf32>, vector<10x320xf32> -> vector<10x320xf32>
    %118 = arith.addf %113, %117 : vector<10x320xf32>
    %c0_32 = arith.constant 0 : index
    %c0_33 = arith.constant 0 : index
    %119 = vector.load %arg5[%c0_32, %c0_33] : memref<1x320xf32, #tpu.memory_space<vmem>>, vector<1x320xf32>
    %120 = vector.broadcast %119 : vector<1x320xf32> to vector<10x320xf32>
    %121 = arith.addf %118, %120 : vector<10x320xf32>
    %cst_34 = arith.constant 0.000000e+00 : f32
    %122 = vector.broadcast %cst_34 : f32 to vector<10x320xf32>
    %123 = arith.maximumf %121, %122 : vector<10x320xf32>
    %124 = vector.extract_strided_slice %123 {offsets = [0, 0], sizes = [1, 320], strides = [1, 1]} : vector<10x320xf32> to vector<1x320xf32>
    %125 = vector.extract_strided_slice %123 {offsets = [1, 0], sizes = [1, 320], strides = [1, 1]} : vector<10x320xf32> to vector<1x320xf32>
    %126 = arith.maximumf %124, %125 : vector<1x320xf32>
    %127 = vector.extract_strided_slice %123 {offsets = [2, 0], sizes = [1, 320], strides = [1, 1]} : vector<10x320xf32> to vector<1x320xf32>
    %128 = vector.extract_strided_slice %123 {offsets = [3, 0], sizes = [1, 320], strides = [1, 1]} : vector<10x320xf32> to vector<1x320xf32>
    %129 = arith.maximumf %127, %128 : vector<1x320xf32>
    %130 = vector.extract_strided_slice %123 {offsets = [4, 0], sizes = [1, 320], strides = [1, 1]} : vector<10x320xf32> to vector<1x320xf32>
    %131 = vector.extract_strided_slice %123 {offsets = [5, 0], sizes = [1, 320], strides = [1, 1]} : vector<10x320xf32> to vector<1x320xf32>
    %132 = arith.maximumf %130, %131 : vector<1x320xf32>
    %133 = vector.extract_strided_slice %123 {offsets = [6, 0], sizes = [1, 320], strides = [1, 1]} : vector<10x320xf32> to vector<1x320xf32>
    %134 = vector.extract_strided_slice %123 {offsets = [7, 0], sizes = [1, 320], strides = [1, 1]} : vector<10x320xf32> to vector<1x320xf32>
    %135 = arith.maximumf %133, %134 : vector<1x320xf32>
    %136 = vector.extract_strided_slice %123 {offsets = [8, 0], sizes = [1, 320], strides = [1, 1]} : vector<10x320xf32> to vector<1x320xf32>
    %137 = vector.extract_strided_slice %123 {offsets = [9, 0], sizes = [1, 320], strides = [1, 1]} : vector<10x320xf32> to vector<1x320xf32>
    %138 = arith.maximumf %136, %137 : vector<1x320xf32>
    %139 = tpu.concatenate %126, %129, %132, %135, %138 in 0 : vector<1x320xf32>, vector<1x320xf32>, vector<1x320xf32>, vector<1x320xf32>, vector<1x320xf32> -> vector<5x320xf32>
    %140 = vector.extract_strided_slice %139 {offsets = [0, 0], sizes = [5, 32], strides = [1, 1]} : vector<5x320xf32> to vector<5x32xf32>
    %141 = vector.extract_strided_slice %139 {offsets = [0, 32], sizes = [5, 32], strides = [1, 1]} : vector<5x320xf32> to vector<5x32xf32>
    %142 = arith.maximumf %140, %141 : vector<5x32xf32>
    %143 = vector.extract_strided_slice %139 {offsets = [0, 64], sizes = [5, 32], strides = [1, 1]} : vector<5x320xf32> to vector<5x32xf32>
    %144 = vector.extract_strided_slice %139 {offsets = [0, 96], sizes = [5, 32], strides = [1, 1]} : vector<5x320xf32> to vector<5x32xf32>
    %145 = arith.maximumf %143, %144 : vector<5x32xf32>
    %146 = vector.extract_strided_slice %139 {offsets = [0, 128], sizes = [5, 32], strides = [1, 1]} : vector<5x320xf32> to vector<5x32xf32>
    %147 = vector.extract_strided_slice %139 {offsets = [0, 160], sizes = [5, 32], strides = [1, 1]} : vector<5x320xf32> to vector<5x32xf32>
    %148 = arith.maximumf %146, %147 : vector<5x32xf32>
    %149 = vector.extract_strided_slice %139 {offsets = [0, 192], sizes = [5, 32], strides = [1, 1]} : vector<5x320xf32> to vector<5x32xf32>
    %150 = vector.extract_strided_slice %139 {offsets = [0, 224], sizes = [5, 32], strides = [1, 1]} : vector<5x320xf32> to vector<5x32xf32>
    %151 = arith.maximumf %149, %150 : vector<5x32xf32>
    %152 = vector.extract_strided_slice %139 {offsets = [0, 256], sizes = [5, 32], strides = [1, 1]} : vector<5x320xf32> to vector<5x32xf32>
    %153 = vector.extract_strided_slice %139 {offsets = [0, 288], sizes = [5, 32], strides = [1, 1]} : vector<5x320xf32> to vector<5x32xf32>
    %154 = arith.maximumf %152, %153 : vector<5x32xf32>
    %155 = tpu.concatenate %142, %145, %148, %151, %154 in 1 : vector<5x32xf32>, vector<5x32xf32>, vector<5x32xf32>, vector<5x32xf32>, vector<5x32xf32> -> vector<5x160xf32>
    %156 = vector.extract_strided_slice %155 {offsets = [0, 0], sizes = [1, 160], strides = [1, 1]} : vector<5x160xf32> to vector<1x160xf32>
    %c0_35 = arith.constant 0 : index
    %c0_36 = arith.constant 0 : index
    %c0_37 = arith.constant 0 : index
    %157 = vector.load %arg6[%c0_35, %c0_36, %c0_37] : memref<5x160x120xf32, #tpu.memory_space<vmem>>, vector<1x160x120xf32>
    %158 = vector.shape_cast %157 : vector<1x160x120xf32> to vector<160x120xf32>
    %cst_38 = arith.constant dense<0.000000e+00> : vector<1x120xf32>
    %159 = tpu.matmul %156, %158, %cst_38 {dimension_numbers = #tpu.dot_dimension_numbers<[1], [0], [0], [1], [0, 0, 1, 1], [], []>} : vector<1x160xf32>, vector<160x120xf32>, vector<1x120xf32> -> vector<1x120xf32>
    %160 = vector.extract_strided_slice %155 {offsets = [1, 0], sizes = [1, 160], strides = [1, 1]} : vector<5x160xf32> to vector<1x160xf32>
    %c1_39 = arith.constant 1 : index
    %c0_40 = arith.constant 0 : index
    %c0_41 = arith.constant 0 : index
    %161 = vector.load %arg6[%c1_39, %c0_40, %c0_41] : memref<5x160x120xf32, #tpu.memory_space<vmem>>, vector<1x160x120xf32>
    %162 = vector.shape_cast %161 : vector<1x160x120xf32> to vector<160x120xf32>
    %cst_42 = arith.constant dense<0.000000e+00> : vector<1x120xf32>
    %163 = tpu.matmul %160, %162, %cst_42 {dimension_numbers = #tpu.dot_dimension_numbers<[1], [0], [0], [1], [0, 0, 1, 1], [], []>} : vector<1x160xf32>, vector<160x120xf32>, vector<1x120xf32> -> vector<1x120xf32>
    %164 = arith.addf %159, %163 : vector<1x120xf32>
    %165 = vector.extract_strided_slice %155 {offsets = [2, 0], sizes = [1, 160], strides = [1, 1]} : vector<5x160xf32> to vector<1x160xf32>
    %c2_43 = arith.constant 2 : index
    %c0_44 = arith.constant 0 : index
    %c0_45 = arith.constant 0 : index
    %166 = vector.load %arg6[%c2_43, %c0_44, %c0_45] : memref<5x160x120xf32, #tpu.memory_space<vmem>>, vector<1x160x120xf32>
    %167 = vector.shape_cast %166 : vector<1x160x120xf32> to vector<160x120xf32>
    %cst_46 = arith.constant dense<0.000000e+00> : vector<1x120xf32>
    %168 = tpu.matmul %165, %167, %cst_46 {dimension_numbers = #tpu.dot_dimension_numbers<[1], [0], [0], [1], [0, 0, 1, 1], [], []>} : vector<1x160xf32>, vector<160x120xf32>, vector<1x120xf32> -> vector<1x120xf32>
    %169 = arith.addf %164, %168 : vector<1x120xf32>
    %170 = vector.extract_strided_slice %155 {offsets = [3, 0], sizes = [1, 160], strides = [1, 1]} : vector<5x160xf32> to vector<1x160xf32>
    %c3_47 = arith.constant 3 : index
    %c0_48 = arith.constant 0 : index
    %c0_49 = arith.constant 0 : index
    %171 = vector.load %arg6[%c3_47, %c0_48, %c0_49] : memref<5x160x120xf32, #tpu.memory_space<vmem>>, vector<1x160x120xf32>
    %172 = vector.shape_cast %171 : vector<1x160x120xf32> to vector<160x120xf32>
    %cst_50 = arith.constant dense<0.000000e+00> : vector<1x120xf32>
    %173 = tpu.matmul %170, %172, %cst_50 {dimension_numbers = #tpu.dot_dimension_numbers<[1], [0], [0], [1], [0, 0, 1, 1], [], []>} : vector<1x160xf32>, vector<160x120xf32>, vector<1x120xf32> -> vector<1x120xf32>
    %174 = arith.addf %169, %173 : vector<1x120xf32>
    %175 = vector.extract_strided_slice %155 {offsets = [4, 0], sizes = [1, 160], strides = [1, 1]} : vector<5x160xf32> to vector<1x160xf32>
    %c4_51 = arith.constant 4 : index
    %c0_52 = arith.constant 0 : index
    %c0_53 = arith.constant 0 : index
    %176 = vector.load %arg6[%c4_51, %c0_52, %c0_53] : memref<5x160x120xf32, #tpu.memory_space<vmem>>, vector<1x160x120xf32>
    %177 = vector.shape_cast %176 : vector<1x160x120xf32> to vector<160x120xf32>
    %cst_54 = arith.constant dense<0.000000e+00> : vector<1x120xf32>
    %178 = tpu.matmul %175, %177, %cst_54 {dimension_numbers = #tpu.dot_dimension_numbers<[1], [0], [0], [1], [0, 0, 1, 1], [], []>} : vector<1x160xf32>, vector<160x120xf32>, vector<1x120xf32> -> vector<1x120xf32>
    %179 = arith.addf %174, %178 : vector<1x120xf32>
    %c0_55 = arith.constant 0 : index
    %c0_56 = arith.constant 0 : index
    %180 = vector.load %arg7[%c0_55, %c0_56] : memref<1x120xf32, #tpu.memory_space<vmem>>, vector<1x120xf32>
    %181 = arith.addf %179, %180 : vector<1x120xf32>
    %cst_57 = arith.constant 0.000000e+00 : f32
    %182 = vector.broadcast %cst_57 : f32 to vector<1x120xf32>
    %183 = arith.maximumf %181, %182 : vector<1x120xf32>
    %c0_58 = arith.constant 0 : index
    %c0_59 = arith.constant 0 : index
    %184 = vector.load %arg8[%c0_58, %c0_59] : memref<120x84xf32, #tpu.memory_space<vmem>>, vector<120x84xf32>
    %cst_60 = arith.constant dense<0.000000e+00> : vector<1x84xf32>
    %185 = tpu.matmul %183, %184, %cst_60 {dimension_numbers = #tpu.dot_dimension_numbers<[1], [0], [0], [1], [0, 0, 1, 1], [], []>} : vector<1x120xf32>, vector<120x84xf32>, vector<1x84xf32> -> vector<1x84xf32>
    %c0_61 = arith.constant 0 : index
    %c0_62 = arith.constant 0 : index
    %186 = vector.load %arg9[%c0_61, %c0_62] : memref<1x84xf32, #tpu.memory_space<vmem>>, vector<1x84xf32>
    %187 = arith.addf %185, %186 : vector<1x84xf32>
    %cst_63 = arith.constant 0.000000e+00 : f32
    %188 = vector.broadcast %cst_63 : f32 to vector<1x84xf32>
    %189 = arith.maximumf %187, %188 : vector<1x84xf32>
    %c0_64 = arith.constant 0 : index
    %c0_65 = arith.constant 0 : index
    %190 = vector.load %arg10[%c0_64, %c0_65] : memref<84x10xf32, #tpu.memory_space<vmem>>, vector<84x10xf32>
    %cst_66 = arith.constant dense<0.000000e+00> : vector<1x10xf32>
    %191 = tpu.matmul %189, %190, %cst_66 {dimension_numbers = #tpu.dot_dimension_numbers<[1], [0], [0], [1], [0, 0, 1, 1], [], []>} : vector<1x84xf32>, vector<84x10xf32>, vector<1x10xf32> -> vector<1x10xf32>
    %c0_67 = arith.constant 0 : index
    %c0_68 = arith.constant 0 : index
    %192 = vector.load %arg11[%c0_67, %c0_68] : memref<1x10xf32, #tpu.memory_space<vmem>>, vector<1x10xf32>
    %193 = arith.addf %191, %192 : vector<1x10xf32>
    %c0_69 = arith.constant 0 : index
    %c0_70 = arith.constant 0 : index
    %c0_71 = arith.constant 0 : index
    %194 = vector.load %arg13[%c0_69, %c0_70, %c0_71] : memref<1x1x84xf32, #tpu.memory_space<vmem>>, vector<1x1x84xf32>
    %195 = vector.shape_cast %194 : vector<1x1x84xf32> to vector<1x84xf32>
    %196 = vector.shape_cast %189 : vector<1x84xf32> to vector<1x1x84xf32>
    tpu.vector_store %arg13[%c0_69, %c0_70, %c0_71], %196 {strides = array<i32>} : memref<1x1x84xf32, #tpu.memory_space<vmem>>, vector<1x1x84xf32>,
    %c0_72 = arith.constant 0 : index
    %c0_73 = arith.constant 0 : index
    %c0_74 = arith.constant 0 : index
    %197 = vector.load %arg12[%c0_72, %c0_73, %c0_74] : memref<1x1x10xf32, #tpu.memory_space<vmem>>, vector<1x1x10xf32>
    %198 = vector.shape_cast %197 : vector<1x1x10xf32> to vector<1x10xf32>
    %199 = vector.shape_cast %193 : vector<1x10xf32> to vector<1x1x10xf32>
    tpu.vector_store %arg12[%c0_72, %c0_73, %c0_74], %199 {strides = array<i32>} : memref<1x1x10xf32, #tpu.memory_space<vmem>>, vector<1x1x10xf32>,
    return
  }
  func.func @transform_0(%arg0: i32) -> (i32, i32, i32) {
    %c0_i32 = arith.constant 0 : i32
    %c0_i32_0 = arith.constant 0 : i32
    %c0_i32_1 = arith.constant 0 : i32
    return %arg0, %c0_i32, %c0_i32_0 : i32, i32, i32
  }
  func.func @transform_1(%arg0: i32) -> (i32, i32, i32) {
    %c0_i32 = arith.constant 0 : i32
    %c0_i32_0 = arith.constant 0 : i32
    %c0_i32_1 = arith.constant 0 : i32
    %c0_i32_2 = arith.constant 0 : i32
    return %c0_i32, %c0_i32_0, %c0_i32_1 : i32, i32, i32
  }
  func.func @transform_2(%arg0: i32) -> (i32, i32) {
    %c0_i32 = arith.constant 0 : i32
    %c0_i32_0 = arith.constant 0 : i32
    %c0_i32_1 = arith.constant 0 : i32
    return %c0_i32, %c0_i32_0 : i32, i32
  }
  func.func @transform_3(%arg0: i32) -> (i32, i32, i32) {
    %c0_i32 = arith.constant 0 : i32
    %c0_i32_0 = arith.constant 0 : i32
    %c0_i32_1 = arith.constant 0 : i32
    %c0_i32_2 = arith.constant 0 : i32
    return %c0_i32, %c0_i32_0, %c0_i32_1 : i32, i32, i32
  }
  func.func @transform_4(%arg0: i32) -> (i32, i32) {
    %c0_i32 = arith.constant 0 : i32
    %c0_i32_0 = arith.constant 0 : i32
    %c0_i32_1 = arith.constant 0 : i32
    return %c0_i32, %c0_i32_0 : i32, i32
  }
  func.func @transform_5(%arg0: i32) -> (i32, i32, i32) {
    %c0_i32 = arith.constant 0 : i32
    %c0_i32_0 = arith.constant 0 : i32
    %c0_i32_1 = arith.constant 0 : i32
    %c0_i32_2 = arith.constant 0 : i32
    return %c0_i32, %c0_i32_0, %c0_i32_1 : i32, i32, i32
  }
  func.func @transform_6(%arg0: i32) -> (i32, i32) {
    %c0_i32 = arith.constant 0 : i32
    %c0_i32_0 = arith.constant 0 : i32
    %c0_i32_1 = arith.constant 0 : i32
    return %c0_i32, %c0_i32_0 : i32, i32
  }
  func.func @transform_7(%arg0: i32) -> (i32, i32) {
    %c0_i32 = arith.constant 0 : i32
    %c0_i32_0 = arith.constant 0 : i32
    %c0_i32_1 = arith.constant 0 : i32
    return %c0_i32, %c0_i32_0 : i32, i32
  }
  func.func @transform_8(%arg0: i32) -> (i32, i32) {
    %c0_i32 = arith.constant 0 : i32
    %c0_i32_0 = arith.constant 0 : i32
    %c0_i32_1 = arith.constant 0 : i32
    return %c0_i32, %c0_i32_0 : i32, i32
  }
  func.func @transform_9(%arg0: i32) -> (i32, i32) {
    %c0_i32 = arith.constant 0 : i32
    %c0_i32_0 = arith.constant 0 : i32
    %c0_i32_1 = arith.constant 0 : i32
    return %c0_i32, %c0_i32_0 : i32, i32
  }
  func.func @transform_10(%arg0: i32) -> (i32, i32) {
    %c0_i32 = arith.constant 0 : i32
    %c0_i32_0 = arith.constant 0 : i32
    %c0_i32_1 = arith.constant 0 : i32
    return %c0_i32, %c0_i32_0 : i32, i32
  }
  func.func @transform_11(%arg0: i32) -> (i32, i32, i32) {
    %c0_i32 = arith.constant 0 : i32
    %c0_i32_0 = arith.constant 0 : i32
    %c0_i32_1 = arith.constant 0 : i32
    return %arg0, %c0_i32, %c0_i32_0 : i32, i32, i32
  }
  func.func @transform_12(%arg0: i32) -> (i32, i32, i32) {
    %c0_i32 = arith.constant 0 : i32
    %c0_i32_0 = arith.constant 0 : i32
    %c0_i32_1 = arith.constant 0 : i32
    return %arg0, %c0_i32, %c0_i32_0 : i32, i32, i32
  }
}

</mosaic_0001>

<bundles_post_ra>
// kernel: convnet_forward.1
= control target key start
LH: loop header
LB: loop body
LE: loop exit
PB: predicated region body
PF: predicated region fallthrough
CT: control target
= control target key end

     0   :  { %s5899_s0 = inlined_call_operand.vmem [shape: f32[2,28,28], index: 0, kind: input, shape index: {}]   ;;  %s5900_s1 = inlined_call_operand.vmem [shape: f32[5,28,384], index: 1, kind: input, shape index: {}]   ;;  %s5901_s2 = inlined_call_operand.hbm [shape: f32[1,384], index: 2, kind: input, shape index: {}]   ;;  %s5902_s3 = inlined_call_operand.hbm [shape: f32[3,192,320], index: 3, kind: input, shape index: {}]   ;;  %s5903_s4 = inlined_call_operand.hbm [shape: f32[1,320], index: 4, kind: input, shape index: {}]   ;;  %s5904_s5 = inlined_call_operand.hbm [shape: f32[5,160,120], index: 5, kind: input, shape index: {}]   ;;  %s5905_s6 = inlined_call_operand.vmem [shape: f32[1,120], index: 6, kind: input, shape index: {}]   ;;  %s5906_s7 = inlined_call_operand.vmem [shape: f32[120,84], index: 7, kind: input, shape index: {}]   ;;  %s5907_s8 = inlined_call_operand.vmem [shape: f32[1,84], index: 8, kind: input, shape index: {}]   ;;  %s5908_s9 = inlined_call_operand.vmem [shape: f32[84,10], index: 9, kind: input, shape index: {}]   ;;  %s5909_s10 = inlined_call_operand.hbm [shape: f32[1,10], index: 10, kind: input, shape index: {}]   ;;  %s5910_s11 = inlined_call_operand.hbm [shape: f32[2,1,10], index: 11, kind: output, shape index: {0}]   ;;  %s5911_s12 = inlined_call_operand.hbm [shape: f32[2,1,84], index: 12, kind: output, shape index: {1}]  }
   0x1   :  { %5922 = sst [smem:[#allocation25_spill]] %s5902_s3 }
   0x2   :  { %5923 = sst [smem:[#allocation26_spill]] %s5910_s11 }
   0x3   :  { %18 = vsyncpa [#allocation3], 0 }
   0x4   :  { %19 = vsyncpa [#allocation6], 0 }
   0x5   :  { %20 = vsyncpa [#allocation9], 0 }
   0x6   :  { %21 = vsyncpa [#allocation4], 0 }
   0x7   :  { %23 = vsyncpa [#allocation4 + $0x1], 0 }
   0x8   :  { %24 = vsyncpa [#allocation13], 0 }
   0x9   :  { %26 = vsyncpa [#allocation13 + $0x1], 0  ;;  %s4867_s21 = smov 0   ;;  %s4869_s22 = smov 0  }
   0xa   :  { %s4871_s23 = smov 0   ;;  %s4873_s24 = smov 0  }
   0xb LB: > { %5924 = sst [smem:[#allocation19_spill]] %s4766_s21  ;;  %s4888_s25 = sadd.s32 4294967295, %s4778_s24   ;;  %s4778_s24 = sphi %s4873_s24, %s5951_s24   ;;  %s4774_s23 = sphi %s4871_s23, %s5953_s23   ;;  %s4770_s22 = sphi %s4869_s22, %s5955_s22   ;;  %s4766_s21 = sphi %s4867_s21, %s5954_s21  }
   0xc   : > { %5925 = sst [smem:[#allocation20_spill]] %s4774_s23  ;;  %s3473_s26 = sadd.s32 4294967294, %s4778_s24  }
   0xd   : > { %5926 = sst [smem:[#allocation21_spill]] %s4778_s24  ;;  %s4892_s27 = sadd.s32 1, %s4778_s24  }
   0xe   : > { %5927 = sst [smem:[#allocation22_spill]] %s4892_s27  ;;  %s275_s28 = sadd.s32 1, %s4774_s23 }
   0xf   : > { %s272_s29 = ssub.s32 %s4778_s24, %s4892_s27  ;;  %p285_p0 = scmp.ne.s32.totalorder %s4774_s23, %s4770_s22 }
  0x10   : > { %p273_p1 = scmp.eq.s32.totalorder %s272_s29, 0  ;;  %p286_p2 = scmp.eq.s32.totalorder %s4888_s25, 1 }
  0x11   : > { %p291_p3 = scmp.ne.s32.totalorder %s4770_s22, %s4766_s21  ;;  %p292_p4 = scmp.eq.s32.totalorder %s3473_s26, 1 }
  0x12   : > { %s4903_s30 = scalar_select %p273_p1, %s4774_s23, %s275_s28  }
  0x13   : > { %p4905_p5 = por %p286_p2, %p285_p0  ;;  %p4909_p6 = por %p292_p4, %p291_p3 }
  0x14   : > { %5928 = sst [smem:[#allocation23_spill]] %s4903_s30  ;;  %p3474_p7 = scmp.ge.s32.totalorder %s4778_s24, 1 }
  0x15   : > { %s5929_s13 = scalar_select %p4905_p5, 1, 0 }
  0x16   : > { %s5930_s14 = scalar_select %p4909_p6, 1, 0 }
  0x17   : > { %p325_p8 = scmp.lt.s32.totalorder %s4778_s24, 3  ;;  %p5915_p9 = scmp.eq.s32.totalorder %s4888_s25, 0 }
  0x18   : > { %5931 = sst [smem:[#allocation24_spill]] %s5930_s14  ;;  %s4780_s16 = smov [#allocation5]  }
  0x19   : > { %p4916_p10 = pnand %p3474_p7, %p325_p8  ;;  %s351_s17 = sshll.u32 %s4780_s16, 4  ;;  %s352_s17 = int_to_ptr.vmem [resolvable:$true] %s351_s17 }
  0x1a   : > { %s4781_s19 = smov [#allocation8]   ;;  %s5934_s3 = sld [smem:[#allocation25_spill]] }
  0x1b   : > { %s5932_s15 = scalar_select %p4916_p10, 1, 0 }
  0x1c   : > { %p4396_p11 = pneg %p4916_p10  ;;  %s375_s20 = sshll.u32 %s4781_s19, 4  ;;  %s4928_s20 = int_to_ptr.vmem [resolvable:$true] %s375_s20 }
  0x1e   : > { %p4924_p12 = pnand %p5915_p9, %p4396_p11 }
  0x20   : > { %s4532_s29 = scalar_lea.hbm %s5934_s3, 27648  ;;  %p4938_p0 = pneg %p4924_p12 }
  0x21   : > { %p4533_p13 = scmp.ne.s32.totalorder %s5934_s3, %s4532_s29  ;;  %p4539_p3 = scmp.lt.u32.totalorder %s4532_s29, %s5934_s3 }
  0x23   : > { %p4535_p1 = pnand %p4938_p0, %p4533_p13 }
  0x25   : > { %p4536_p2 = pneg %p4535_p1 }
  0x27   : > { %p4541_p4 = pnand %p4539_p3, %p4536_p2 }
  0x29   : > { %4544 = shalt.err (!%p4541_p4)
}
  0x2a   : > { %s4545_s26 = scalar_lea.vmem %s352_s17, 27648  ;;  %p4553_p9 = scmp.lt.s32.totalorder %s352_s17, %s352_s17 }
  0x2b   : > { %p4546_p7 = scmp.ne.s32.totalorder %s352_s17, %s4545_s26  ;;  %p4554_p6 = scmp.lt.s32.totalorder %s4545_s26, %s4545_s26 }
  0x2d   : > { %p4548_p8 = pnand %p4546_p7, %p4938_p0  ;;  %p4555_p5 = por %p4554_p6, %p4553_p9 }
  0x2f   : > { %p4549_p11 = pneg %p4548_p8 }
  0x31   : > { %p4556_p10 = pnand %p4555_p5, %p4549_p11 }
  0x33   : > { %4559 = shalt.err (!%p4556_p10)
}
  0x34   : > { %s4782_s23 = smov 384   ;;  %s4783_s30 = smov 24  }
  0x35   : > { %4402 = dma.hbm_to_vmem [thread:$0]  (!%p4924_p12), %s5934_s3, 27648, %s352_s17, [#allocation6], %s4782_s23, %s4782_s23, %s4783_s30  }
  0x36   : > { %s4560_s14 = scalar_lea.hbm %s5904_s5, 12800 }
  0x37   : > { %p4561_p13 = scmp.ne.s32.totalorder %s5904_s5, %s4560_s14  ;;  %p4567_p9 = scmp.lt.u32.totalorder %s4560_s14, %s5904_s5 }
  0x39   : > { %p4563_p5 = pnand %p4561_p13, %p4938_p0 }
  0x3b   : > { %p4564_p6 = pneg %p4563_p5 }
  0x3d   : > { %p4569_p10 = pnand %p4567_p9, %p4564_p6 }
  0x3f   : > { %4572 = shalt.err (!%p4569_p10)
}
  0x40   : > { %s4573_s17 = scalar_lea.vmem %s4928_s20, 12800  ;;  %p4581_p4 = scmp.lt.s32.totalorder %s4928_s20, %s4928_s20 }
  0x41   : > { %p4574_p1 = scmp.ne.s32.totalorder %s4928_s20, %s4573_s17  ;;  %p4582_p7 = scmp.lt.s32.totalorder %s4573_s17, %s4573_s17 }
  0x43   : > { %p4576_p2 = pnand %p4574_p1, %p4938_p0  ;;  %p4583_p8 = por %p4582_p7, %p4581_p4 }
  0x45   : > { %p4577_p3 = pneg %p4576_p2 }
  0x47   : > { %p4584_p11 = pnand %p4583_p8, %p4577_p3 }
  0x49   : > { %4587 = shalt.err (!%p4584_p11)
}
  0x4a   : > { %s4784_s21 = smov 128   ;;  %s4785_s11 = smov 8  }
  0x4b   : > { %4408 = dma.hbm_to_vmem [thread:$0]  (!%p4924_p12), %s5904_s5, 12800, %s4928_s20, [#allocation9], %s4784_s21, %s4784_s21, %s4785_s11  }
  0x4c   : > { %s4786_s23 = smov [#allocation2]   ;;  %s4787_s27 = smov [#allocation7]  }
  0x4d   : > { %s341_s30 = sshll.u32 %s4786_s23, 4  ;;  %s365_s28 = sshll.u32 %s4787_s27, 4  ;;  %s342_s30 = int_to_ptr.vmem [resolvable:$true] %s341_s30  ;;  %s4977_s28 = int_to_ptr.vmem [resolvable:$true] %s365_s28 }
  0x4e   : > { %s4588_s26 = scalar_lea.hbm %s5901_s2, 48 }
  0x4f   : > { %p4589_p13 = scmp.ne.s32.totalorder %s5901_s2, %s4588_s26  ;;  %p4595_p9 = scmp.lt.u32.totalorder %s4588_s26, %s5901_s2 }
  0x51   : > { %p4591_p5 = pnand %p4589_p13, %p4938_p0 }
  0x53   : > { %p4592_p6 = pneg %p4591_p5 }
  0x55   : > { %p4597_p10 = pnand %p4595_p9, %p4592_p6 }
  0x57   : > { %4600 = shalt.err (!%p4597_p10)
}
  0x58   : > { %s4601_s21 = scalar_lea.vmem %s342_s30, 48  ;;  %s4608_s11 = scalar_lea.vmem %s342_s30, 64 }
  0x59   : > { %p4602_p1 = scmp.ne.s32.totalorder %s342_s30, %s4601_s21  ;;  %p4609_p4 = scmp.lt.s32.totalorder %s342_s30, %s342_s30 }
  0x5a   : > { %p4610_p7 = scmp.lt.s32.totalorder %s4608_s11, %s4601_s21 }
  0x5b   : > { %p4604_p2 = pnand %p4602_p1, %p4938_p0 }
  0x5c   : > { %p4611_p8 = por %p4610_p7, %p4609_p4 }
  0x5d   : > { %p4605_p3 = pneg %p4604_p2 }
  0x5f   : > { %p4612_p11 = pnand %p4611_p8, %p4605_p3 }
  0x61   : > { %4615 = shalt.err (!%p4612_p11)
}
  0x62   : > { %4399 = dma.hbm_to_vmem [thread:$0]  (!%p4924_p12), %s5901_s2, 48, %s342_s30, [#allocation3]  }
  0x63   : > { %s4616_s29 = scalar_lea.hbm %s5903_s4, 48 }
  0x64   : > { %p4617_p13 = scmp.ne.s32.totalorder %s5903_s4, %s4616_s29  ;;  %p4623_p9 = scmp.lt.u32.totalorder %s4616_s29, %s5903_s4 }
  0x66   : > { %p4619_p5 = pnand %p4617_p13, %p4938_p0 }
  0x68   : > { %p4620_p6 = pneg %p4619_p5 }
  0x6a   : > { %p4625_p10 = pnand %p4623_p9, %p4620_p6 }
  0x6c   : > { %4628 = shalt.err (!%p4625_p10)
}
  0x6d   : > { %s4629_s30 = scalar_lea.vmem %s4977_s28, 48  ;;  %s4636_s20 = scalar_lea.vmem %s4977_s28, 64 }
  0x6e   : > { %p4630_p1 = scmp.ne.s32.totalorder %s4977_s28, %s4629_s30  ;;  %p4637_p4 = scmp.lt.s32.totalorder %s4977_s28, %s4977_s28 }
  0x6f   : > { %p4638_p7 = scmp.lt.s32.totalorder %s4636_s20, %s4629_s30 }
  0x70   : > { %p4632_p2 = pnand %p4630_p1, %p4938_p0 }
  0x71   : > { %p4639_p8 = por %p4638_p7, %p4637_p4 }
  0x72   : > { %p4633_p3 = pneg %p4632_p2 }
  0x74   : > { %p4640_p11 = pnand %p4639_p8, %p4633_p3 }
  0x76   : > { %4643 = shalt.err (!%p4640_p11)
}
  0x77   : > { %4405 = dma.hbm_to_vmem [thread:$0]  (!%p4924_p12), %s5903_s4, 48, %s4977_s28, [#allocation6]  }
  0x78   : > { %s4788_s3 = smov [#allocation10]   ;;  %s4644_s29 = scalar_lea.hbm %s5909_s10, 16 }
  0x79   : > { %s401_s14 = sshll.u32 %s4788_s3, 4  ;;  %p4645_p13 = scmp.ne.s32.totalorder %s5909_s10, %s4644_s29  ;;  %s402_s14 = int_to_ptr.vmem [resolvable:$true] %s401_s14 }
  0x7a   : > { %p4651_p9 = scmp.lt.u32.totalorder %s4644_s29, %s5909_s10 }
  0x7b   : > { %p4647_p5 = pnand %p4645_p13, %p4938_p0 }
  0x7d   : > { %p4648_p6 = pneg %p4647_p5 }
  0x7f   : > { %p4653_p10 = pnand %p4651_p9, %p4648_p6 }
  0x81   : > { %4656 = shalt.err (!%p4653_p10)
}
  0x82   : > { %s4657_s28 = scalar_lea.vmem %s402_s14, 16  ;;  %s4664_s30 = scalar_lea.vmem %s402_s14, 32 }
  0x83   : > { %p4658_p1 = scmp.ne.s32.totalorder %s402_s14, %s4657_s28  ;;  %p4665_p4 = scmp.lt.s32.totalorder %s402_s14, %s402_s14 }
  0x84   : > { %p4666_p7 = scmp.lt.s32.totalorder %s4664_s30, %s4657_s28 }
  0x85   : > { %p4660_p2 = pnand %p4658_p1, %p4938_p0 }
  0x86   : > { %p4667_p8 = por %p4666_p7, %p4665_p4 }
  0x87   : > { %p4661_p3 = pneg %p4660_p2 }
  0x89   : > { %p4668_p11 = pnand %p4667_p8, %p4661_p3 }
  0x8b   : > { %4671 = shalt.err (!%p4668_p11)
}
  0x8c   : > { %4411 = dma.hbm_to_vmem [thread:$0]  (!%p4924_p12), %s5909_s10, 16, %s402_s14, [#allocation9]  }
  0x8d   : > { %p5936_p13 = scmp.ne.s32.totalorder %s5932_s15, 0 }
  0x8e   : > { %p5937_p5 = scmp.eq.s32.totalorder (!%p5936_p13), %s4888_s25, 0 }
  0x8f   : > { %422 = sbr.rel (%p5936_p13) target bundleno = 2029 (0x7ed), region = 64 }
  0x96   : > { %4745 = dma.done.wait (%p5937_p5), [#allocation3], 48   ;;  %p5938_p0 = pmov %p5937_p5 }
  0x98   : > { %4747 = vsyncadd (%p5938_p0), [#allocation3], 4294967248  ;;  %p5939_p6 = pmov %p5938_p0 }
  0x99   : > { %p5940_p9 = pmov %p5938_p0 }
  0x9a   : > { %4749 = dma.done.wait (%p5939_p6), [#allocation6], 27696  }
  0x9b   : > { %4751 = vsyncadd (%p5940_p9), [#allocation6], 4294939600  ;;  %p5941_p10 = pmov %p5938_p0 }
  0x9c   : > { %p5942_p12 = pmov %p5938_p0 }
  0x9d   : > { %4753 = dma.done.wait (%p5941_p10), [#allocation9], 12816  }
  0x9e   : > { %4755 = vsyncadd (%p5942_p12), [#allocation9], 4294954480  ;;  %v4789_v0 = vmov 0.0|0.0   ;;  %v4790_v1 = vmov 0.0   ;;  %p483_p1 = scmp.lt.s32.totalorder %s4888_s25, 1  ;;  %vm4791_vm0 = vmmov 0  }
  0x9f   : > { %4336 = vmatprep.subr.bf16.mxu1 %v4789_v0  ;;  %610 = vmatprep.mubr.f32.mxu0 %v4790_v1  ;;  %vm536_vm1 = vcmask 1043456   ;;  %vm4792_vm2 = vmmov 1   ;;  %v3490_v3 = vld [vmem:[%s5900_s1 + $0x68] sm:$0xff]  ;;  %v3493_v4 = vld [vmem:[%s5900_s1 + $0x80] sm:$0xff]  ;;  %v3491_v5 = vld [vmem:[%s5900_s1 + $0x70] sm:$0xff]  ;;  %vm521_vm4 = vcmask 1046528  }
  0xa0   : > { %3681 = vmatprep.mubr.msk.f32.mxu1 %vm4791_vm0, %v4790_v1  ;;  %s484_s15 = scalar_select %p483_p1, %s4888_s25, 1  ;;  %vm5060_vm3 = vmpackc.low %vm536_vm1, %vm4792_vm2  ;;  %v3813_v6 = vpack.c.bf16 %v3493_v4, %v3490_v3  ;;  %v3494_v7 = vld [vmem:[%s5900_s1 + $0x88] sm:$0xff]  ;;  %v3489_v8 = vld [vmem:[%s5900_s1 + $0x60] sm:$0xff]  ;;  %vm529_vm5 = vcmask 228352   ;;  %vm900_vm6 = vcmask 1045504   ;;  %vm1108_vm7 = vcmask 1044480  }
  0xa1   : > { %v3492_v9 = vld [vmem:[%s5900_s1 + $0x78] sm:$0xff]  ;;  %v3824_v10 = vpack.c.bf16 %v3494_v7, %v3491_v5  ;;  %v3499_v13 = vld [vmem:[%s5900_s1 + $0xb0] sm:$0xf]  ;;  %v3497_v14 = vld [vmem:[%s5900_s1 + $0xa0] sm:$0xff]  ;;  %vm1650_vm8 = vcmask 1040384   ;;  %vm1654_vm9 = vcmask 1041408  }
  0xa2   : > { %s3606_s18 = sshll.u32 %s484_s15, 5  ;;  %v3815_v11 = vpack.c.bf16 %v3492_v9, %v3489_v8  ;;  %v3496_v12 = vld [vmem:[%s5900_s1 + $0x98] sm:$0xff]  ;;  %3814 = vmatprep.subr.bf16.mxu0 %v3813_v6  ;;  %v3495_v17 = vld [vmem:[%s5900_s1 + $0x90] sm:$0xff]  ;;  %v3498_v18 = vld [vmem:[%s5900_s1 + $0xa8] sm:$0xf]  ;;  %vm1658_vm10 = vcmask 1042432  }
  0xa3   : > { %s487_s21 = scalar_lea.vmem %s5899_s0, %s3606_s18  ;;  %v3817_v15 = vpack.c.bf16 %v3499_v13, %v3496_v12  ;;  %v3500_v16 = vld [vmem:[%s5900_s1 + $0xb8] sm:$0xf]  ;;  %4338 = vmatpush3.bf16.msra.mxu1 %v3824_v10  ;;  %v3820_v20 = vpack.c.bf16 %v3498_v18, %v3495_v17  ;;  %v494_v27 = vld [vmem:[%s5900_s1 + $0x10] sm:$0xff]  ;;  %v497_v28 = vld [vmem:[%s5900_s1 + $0x28] sm:$0xff]  ;;  %s4793_s27 = smov 112   ;;  %vm1779_vm11 = vcmask 130048  }
  0xa4   : > { %3816 = vmatpush1.bf16.msra.mxu0 %v3815_v11  ;;  %v3827_v19 = vpack.c.bf16 %v3500_v16, %v3497_v14  ;;  %v5103_v21 = vld [vmem:[%s487_s21 + $0x8] sm:$0xff]  ;;  %v5105_v22 = vld [vmem:[%s487_s21 + $0x10] sm:$0xff]  ;;  %v5107_v23 = vld [vmem:[%s487_s21] sm:$0xff]  ;;  %4337 = vmatprep.subr.bf16.mxu1 %v4789_v0  ;;  %v3841_v32 = vpack.c.bf16 %v497_v28, %v494_v27  ;;  %s4794_s29 = smov 96   ;;  %s4795_s18 = smov 80   ;;  %vm1782_vm12 = vcmask 261120  }
  0xa5   : > { %3819 = vmatprep.subr.msk.bf16.mxu0 %vm5060_vm3, %v3817_v15  ;;  %v523_v24 = vrot.slane %v5103_v21, 1  ;;  %v525_v25 = vrot.slane %v5105_v22, 1  ;;  %v522_v26 = vrot.slane %v5107_v23, 1  ;;  %v5121_v29 = vld [vmem:[%s487_s21 + $0x18] sm:$0xf]  ;;  %v500_v34 = vld [vmem:[%s5900_s1 + $0x40] sm:$0xff] }
  0xa6   : > { %v527_v33 = vrot.slane %v5121_v29, 1  ;;  %v503_v35 = vld [vmem:[%s5900_s1 + $0x58] sm:$0xf]  ;;  %v493_v36 = vld [vmem:[%s5900_s1 + $0x8] sm:$0xff]  ;;  %v496_v37 = vld [vmem:[%s5900_s1 + $0x20] sm:$0xff]  ;;  %v901_v58 = vrot.slane %v5107_v23, 2 }
  0xa7   : > { %4339 = vmatpush3.bf16.msk.msra.mxu1 %vm5060_vm3, %v3827_v19  ;;  %v526_v30 = vsel %vm521_vm4, %v523_v24, %v525_v25  ;;  %v524_v31 = vsel %vm521_vm4, %v522_v26, %v523_v24  ;;  %v3844_v39 = vpack.c.bf16 %v503_v35, %v500_v34  ;;  %v3830_v40 = vpack.c.bf16 %v496_v37, %v493_v36  ;;  %v3521_v41 = vld [vmem:[%s5900_s1 + $0xd0] sm:$0xff]  ;;  %v3524_v42 = vld [vmem:[%s5900_s1 + $0xe8] sm:$0xff]  ;;  %v492_v43 = vld [vmem:[%s5900_s1] sm:$0xff]  ;;  %s4796_s19 = smov 64   ;;  %s4797_s26 = smov 48  }
  0xa8   : > { %3822 = vmatpush1.bf16.msk.msra.mxu0 %vm5060_vm3, %v3820_v20  ;;  %3840 = vmatprep.subr.bf16.mxu1 %v4789_v0  ;;  %v528_v38 = vsel %vm521_vm4, %v525_v25, %v527_v33  ;;  %v495_v44 = vld [vmem:[%s5900_s1 + $0x18] sm:$0xff]  ;;  %v3858_v45 = vpack.c.bf16 %v3524_v42, %v3521_v41  ;;  %v502_v47 = vld [vmem:[%s5900_s1 + $0x50] sm:$0xf]  ;;  %v3527_v48 = vld [vmem:[%s5900_s1 + $0x100] sm:$0xff]  ;;  %v902_v59 = vrot.slane %v5103_v21, 2  ;;  %v904_v8 = vrot.slane %v5105_v22, 2 }
  0xa9   : > { %3823 = vmatprep.subr.bf16.mxu0 %v4789_v0  ;;  %v499_v46 = vld [vmem:[%s5900_s1 + $0x38] sm:$0xff]  ;;  %v3832_v50 = vpack.c.bf16 %v495_v44, %v492_v43  ;;  %v498_v52 = vld [vmem:[%s5900_s1 + $0x30] sm:$0xff]  ;;  %v501_v53 = vld [vmem:[%s5900_s1 + $0x48] sm:$0xf]  ;;  %v1109_v26 = vrot.slane %v5107_v23, 3  ;;  %v1110_v27 = vrot.slane %v5103_v21, 3 }
  0xaa   : > { %3682 = vmatmul.mubr.msk.f32.vlgmr.msra.gmra.mrb[0].mxu1 %vm529_vm5, %v526_v30  ;;  %v3530_v49 = vld [vmem:[%s5900_s1 + $0x118] sm:$0xf]  ;;  %v3834_v51 = vpack.c.bf16 %v502_v47, %v499_v46  ;;  %v3520_v55 = vld [vmem:[%s5900_s1 + $0xc8] sm:$0xff]  ;;  %v3523_v56 = vld [vmem:[%s5900_s1 + $0xe0] sm:$0xff]  ;;  %v3837_v57 = vpack.c.bf16 %v501_v53, %v498_v52  ;;  %v903_v6 = vsel %vm900_vm6, %v901_v58, %v902_v59  ;;  %v905_v17 = vsel %vm900_vm6, %v902_v59, %v904_v8  ;;  %s4798_s17 = smov 32   ;;  %s4799_s24 = smov 16  }
  0xab   : > { %3503 = vmatmul.mubr.msk.f32.vlgmr.msra.gmra.mrb[0].mxu0 %vm529_vm5, %v524_v31  ;;  %3842 = vmatpush3.bf16.msra.mxu1 %v3841_v32  ;;  %v3861_v54 = vpack.c.bf16 %v3530_v49, %v3527_v48  ;;  %v3847_v60 = vpack.c.bf16 %v3523_v56, %v3520_v55  ;;  %v3519_v61 = vld [vmem:[%s5900_s1 + $0xc0] sm:$0xff]  ;;  %v3522_v62 = vld [vmem:[%s5900_s1 + $0xd8] sm:$0xff]  ;;  %v3542_v63 = vld [vmem:[%s5900_s1 + $0x130] sm:$0xff]  ;;  %v1111_v35 = vsel %vm1108_vm7, %v1109_v26, %v1110_v27  ;;  %v1112_v37 = vrot.slane %v5105_v22, 3  ;;  %s5821_s16 = sand.u32 1, %s4770_s22   ;;  %s3602_s3 = sshll.u32 %s4888_s25, 4 }
  0xac   : > { %3825 = vmatpush3.bf16.msra.mxu0 %v3824_v10  ;;  %3684 = vmatprep.mubr.msk.f32.mxu1 %vm4791_vm0, %v4790_v1  ;;  %v3545_v3 = vld [vmem:[%s5900_s1 + $0x148] sm:$0xff]  ;;  %v3526_v4 = vld [vmem:[%s5900_s1 + $0xf8] sm:$0xff]  ;;  %v3529_v5 = vld [vmem:[%s5900_s1 + $0x110] sm:$0xf]  ;;  %v3849_v7 = vpack.c.bf16 %v3522_v62, %v3519_v61  ;;  %v1114_v48 = vrot.slane %v5121_v29, 3  ;;  %v1316_v52 = vrot.slane %v5107_v23, 4 }
  0xad   : > { %616 = vmatprep.mubr.f32.mxu0 %v4790_v1  ;;  %3843 = vmatprep.subr.bf16.mxu1 %v4789_v0  ;;  %v3875_v9 = vpack.c.bf16 %v3545_v3, %v3542_v63  ;;  %v3525_v10 = vld [vmem:[%s5900_s1 + $0xf0] sm:$0xff]  ;;  %v3528_v11 = vld [vmem:[%s5900_s1 + $0x108] sm:$0xf]  ;;  %v3851_v12 = vpack.c.bf16 %v3529_v5, %v3526_v4  ;;  %v3548_v13 = vld [vmem:[%s5900_s1 + $0x160] sm:$0xff]  ;;  %v1113_v46 = vsel %vm1108_vm7, %v1110_v27, %v1112_v37  ;;  %v1317_v53 = vrot.slane %v5103_v21, 4  ;;  %s482_s11 = scalar_lea.vmem [#allocation12], %s5821_s16 }
  0xae   : > { %3826 = vmatprep.subr.bf16.mxu0 %v4789_v0  ;;  %3685 = vmatmul.mubr.msk.f32.gmra.mrb[2].mxu1 %vm529_vm5, %v528_v38  ;;  %v3551_v14 = vld [vmem:[%s5900_s1 + $0x178] sm:$0xf]  ;;  %v3541_v15 = vld [vmem:[%s5900_s1 + $0x128] sm:$0xff]  ;;  %v3544_v16 = vld [vmem:[%s5900_s1 + $0x140] sm:$0xff]  ;;  %v3854_v18 = vpack.c.bf16 %v3528_v11, %v3525_v10  ;;  %v1319_v58 = vrot.slane %v5105_v22, 4  ;;  %vm1785_vm13 = vcmask 392192  }
  0xaf   : > { %3504 = vmatmul.mubr.msk.f32.gmra.mrb[2].mxu0 %vm529_vm5, %v526_v30  ;;  %3846 = vmatpush3.bf16.msk.msra.mxu1 %vm5060_vm3, %v3844_v39  ;;  %v3878_v20 = vpack.c.bf16 %v3551_v14, %v3548_v13  ;;  %v3864_v24 = vpack.c.bf16 %v3544_v16, %v3541_v15  ;;  %v3540_v28 = vld [vmem:[%s5900_s1 + $0x120] sm:$0xff]  ;;  %v3543_v30 = vld [vmem:[%s5900_s1 + $0x138] sm:$0xff]  ;;  %v3566_v32 = vld [vmem:[%s5900_s1 + $0x1a8] sm:$0xff]  ;;  %v1318_v56 = vsel %vm536_vm1, %v1316_v52, %v1317_v53  ;;  %vm1788_vm14 = vcmask 523264   ;;  %p5945_p3 = scmp.ne.s32.totalorder %s5929_s13, 0 }
  0xb0   : > { %3695 = vmatprep.mubr.msk.f32.mxu1 %vm4791_vm0, %v4790_v1  ;;  %622 = vmatprep.mubr.f32.mxu0 %v4790_v1  ;;  %v3547_v33 = vld [vmem:[%s5900_s1 + $0x158] sm:$0xff]  ;;  %v3550_v34 = vld [vmem:[%s5900_s1 + $0x170] sm:$0xf]  ;;  %v3866_v36 = vpack.c.bf16 %v3543_v30, %v3540_v28  ;;  %v3569_v42 = vld [vmem:[%s5900_s1 + $0x1c0] sm:$0xff]  ;;  %v1320_v62 = vsel %vm536_vm1, %v1317_v53, %v1319_v58  ;;  %v1512_v30 = vlaneseq  ;;  %vm1791_vm15 = vcmask 654336  }
  0xb1   : > { %3829 = vmatpush3.bf16.msk.msra.mxu0 %vm5060_vm3, %v3827_v19  ;;  %3857 = vmatprep.subr.bf16.mxu1 %v4789_v0  ;;  %v906_v19 = vrot.slane %v5121_v29, 2  ;;  %v3546_v39 = vld [vmem:[%s5900_s1 + $0x150] sm:$0xff]  ;;  %v3868_v41 = vpack.c.bf16 %v3550_v34, %v3547_v33  ;;  %v3572_v43 = vld [vmem:[%s5900_s1 + $0x1d8] sm:$0xf]  ;;  %v3562_v44 = vld [vmem:[%s5900_s1 + $0x188] sm:$0xff]  ;;  %vm1794_vm2 = vcmask 785408  }
  0xb2   : > { %3831 = vmatprep.subr.bf16.mxu0 %v3830_v40  ;;  %3696 = vmatmul.mubr.msk.f32.vlgmr.msra.gmra.mrb[4].mxu1 %vm529_vm5, %v5107_v23  ;;  %v3549_v40 = vld [vmem:[%s5900_s1 + $0x168] sm:$0xf]  ;;  %v3895_v49 = vpack.c.bf16 %v3572_v43, %v3569_v42  ;;  %v3564_v55 = vld [vmem:[%s5900_s1 + $0x198] sm:$0xff]  ;;  %v5405_v34 = vshrl.u32 %v1512_v30, 7 }
  0xb3   : > { %3505 = vmatmul.mubr.msk.f32.gmra.mrb[4].mxu0 %vm529_vm5, %v528_v38  ;;  %3698 = vmatprep.mubr.msk.f32.mxu1 %vm4791_vm0, %v4790_v1  ;;  %v907_v25 = vsel %vm900_vm6, %v904_v8, %v906_v19  ;;  %v3871_v47 = vpack.c.bf16 %v3549_v40, %v3546_v39  ;;  %v3570_v61 = vld [vmem:[%s5900_s1 + $0x1c8] sm:$0xf]  ;;  %v1510_v40 = vld [vmem:[#allocation2] sm:$0x7] }
  0xb4   : > { %3678 = vmatprep.mubr.msk.f32.mxu0 %vm4791_vm0, %v4790_v1  ;;  %3859 = vmatpush3.bf16.msra.mxu1 %v3858_v45  ;;  %v3565_v45 = vld [vmem:[%s5900_s1 + $0x1a0] sm:$0xff]  ;;  %v1514_v52 = vsub.s32 0, %v5405_v34  ;;  %v1518_v53 = vsub.s32 1, %v5405_v34 }
  0xb5   : > { %3860 = vmatprep.subr.bf16.mxu1 %v4789_v0 }
  0xb6   : > { %3699 = vmatmul.mubr.msk.f32.gmra.mrb[6].mxu1 %vm529_vm5, %v5103_v21 }
  0xb7   : > { %3679 = vmatmul.mubr.msk.f32.vlgmr.msra.gmra.mrb[6].mxu0 %vm529_vm5, %v524_v31  ;;  %3701 = vmatprep.mubr.msk.f32.mxu1 %vm4791_vm0, %v4790_v1  ;;  %v3563_v31 = vld [vmem:[%s5900_s1 + $0x190] sm:$0xff] }
  0xb8   : > { %3833 = vmatpush1.bf16.msra.mxu0 %v3832_v50  ;;  %3863 = vmatpush3.bf16.msk.msra.mxu1 %vm5060_vm3, %v3861_v54  ;;  %v3892_v38 = vpack.c.bf16 %v3566_v32, %v3563_v31  ;;  %v3881_v50 = vpack.c.bf16 %v3565_v45, %v3562_v44  ;;  %v3561_v54 = vld [vmem:[%s5900_s1 + $0x180] sm:$0xff] }
  0xb9   : > { %3836 = vmatprep.subr.msk.bf16.mxu0 %vm5060_vm3, %v3834_v51  ;;  %788 = vmatprep.mubr.f32.mxu0 %v4790_v1  ;;  %v1115_v51 = vsel %vm1108_vm7, %v1112_v37, %v1114_v48 }
  0xba   : > { %3874 = vmatprep.subr.bf16.mxu1 %v4789_v0  ;;  %3702 = vmatmul.mubr.msk.f32.gmra.mrb[8].mxu1 %vm529_vm5, %v5105_v22 }
  0xbb   : > { %3712 = vmatprep.mubr.msk.f32.mxu1 %vm4791_vm0, %v4790_v1 }
  0xbc   : > { %3839 = vmatpush1.bf16.msk.msra.mxu0 %vm5060_vm3, %v3837_v57  ;;  %v3883_v57 = vpack.c.bf16 %v3564_v55, %v3561_v54 }
  0xbd   : > { %3848 = vmatprep.subr.bf16.mxu0 %v3847_v60  ;;  %v3567_v60 = vld [vmem:[%s5900_s1 + $0x1b0] sm:$0xff] }
  0xbe   : > { %3713 = vmatmul.mubr.msk.f32.vlgmr.msra.gmra.mrb[10].mxu1 %vm529_vm5, %v903_v6  ;;  %v3888_v63 = vpack.c.bf16 %v3570_v61, %v3567_v60  ;;  %v1519_v60 = vrot.slane %v1510_v40, %v1518_v53 }
  0xbf   : > { %3512 = vmatmul.mubr.msk.f32.vlgmr.msra.gmra.mrb[0].mxu0 %vm529_vm5, %v5107_v23  ;;  %3715 = vmatprep.mubr.msk.f32.mxu1 %vm4791_vm0, %v4790_v1  ;;  %v3568_v23 = vld [vmem:[%s5900_s1 + $0x1b8] sm:$0xff] }
  0xc0   : > { %3850 = vmatpush1.bf16.msra.mxu0 %v3849_v7  ;;  %794 = vmatprep.mubr.f32.mxu0 %v4790_v1 }
  0xc1   : > { %3876 = vmatpush3.bf16.msra.mxu1 %v3875_v9  ;;  %3853 = vmatprep.subr.msk.bf16.mxu0 %vm5060_vm3, %v3851_v12 }
  0xc2   : > { %3877 = vmatprep.subr.bf16.mxu1 %v4789_v0  ;;  %3716 = vmatmul.mubr.msk.f32.gmra.mrb[12].mxu1 %vm529_vm5, %v905_v17 }
  0xc3   : > { %3513 = vmatmul.mubr.msk.f32.gmra.mrb[2].mxu0 %vm529_vm5, %v5103_v21  ;;  %3718 = vmatprep.mubr.msk.f32.mxu1 %vm4791_vm0, %v4790_v1  ;;  %v3571_v21 = vld [vmem:[%s5900_s1 + $0x1d0] sm:$0xf] }
  0xc4   : > { %800 = vmatprep.mubr.f32.mxu0 %v4790_v1  ;;  %3856 = vmatpush1.bf16.msk.msra.mxu0 %vm5060_vm3, %v3854_v18  ;;  %v3885_v59 = vpack.c.bf16 %v3571_v21, %v3568_v23 }
  0xc5   : > { %3880 = vmatpush3.bf16.msk.msra.mxu1 %vm5060_vm3, %v3878_v20  ;;  %3865 = vmatprep.subr.bf16.mxu0 %v3864_v24 }
  0xc6   : > { %3891 = vmatprep.subr.bf16.mxu1 %v4789_v0  ;;  %3719 = vmatmul.mubr.msk.f32.gmra.mrb[14].mxu1 %vm529_vm5, %v907_v25 }
  0xc7   : > { %3514 = vmatmul.mubr.msk.f32.gmra.mrb[4].mxu0 %vm529_vm5, %v5105_v22  ;;  %3729 = vmatprep.mubr.msk.f32.mxu1 %vm4791_vm0, %v4790_v1  ;;  %v1321_v22 = vrot.slane %v5121_v29, 4 }
  0xc8   : > { %987 = vmatprep.mubr.f32.mxu0 %v4790_v1 }
  0xc9   : > { %v1322_v3 = vsel %vm536_vm1, %v1319_v58, %v1321_v22  ;;  %v1515_v58 = vrot.slane %v1510_v40, %v1514_v52 }
  0xca   : > { %3730 = vmatmul.mubr.msk.f32.vlgmr.msra.gmra.mrb[16].mxu1 %vm529_vm5, %v1111_v35 }
  0xcb   : > { %3533 = vmatmul.mubr.msk.f32.vlgmr.msra.gmra.mrb[0].mxu0 %vm529_vm5, %v903_v6  ;;  %3732 = vmatprep.mubr.msk.f32.mxu1 %vm4791_vm0, %v4790_v1 }
  0xcc   : > { %3867 = vmatpush1.bf16.msra.mxu0 %v3866_v36  ;;  %993 = vmatprep.mubr.f32.mxu0 %v4790_v1 }
  0xcd   : > { %3893 = vmatpush3.bf16.msra.mxu1 %v3892_v38  ;;  %3870 = vmatprep.subr.msk.bf16.mxu0 %vm5060_vm3, %v3868_v41  ;;  %v1522_v38 = vsub.s32 2, %v5405_v34 }
  0xce   : > { %3894 = vmatprep.subr.bf16.mxu1 %v4789_v0  ;;  %3733 = vmatmul.mubr.msk.f32.gmra.mrb[18].mxu1 %vm529_vm5, %v1113_v46 }
  0xcf   : > { %3534 = vmatmul.mubr.msk.f32.gmra.mrb[2].mxu0 %vm529_vm5, %v905_v17  ;;  %3735 = vmatprep.mubr.msk.f32.mxu1 %vm4791_vm0, %v4790_v1  ;;  %v1523_v43 = vrot.slane %v1510_v40, %v1522_v38 }
  0xd0   : > { %999 = vmatprep.mubr.f32.mxu0 %v4790_v1  ;;  %3873 = vmatpush1.bf16.msk.msra.mxu0 %vm5060_vm3, %v3871_v47 }
  0xd1   : > { %3897 = vmatpush3.bf16.msk.msra.mxu1 %vm5060_vm3, %v3895_v49  ;;  %3882 = vmatprep.subr.bf16.mxu0 %v3881_v50 }
  0xd2   : > { %3946 = vmatprep.subr.bf16.mxu1 %v4789_v0  ;;  %3736 = vmatmul.mubr.msk.f32.gmra.mrb[20].mxu1 %vm529_vm5, %v1115_v51 }
  0xd3   : > { %3535 = vmatmul.mubr.msk.f32.gmra.mrb[4].mxu0 %vm529_vm5, %v907_v25  ;;  %3746 = vmatprep.mubr.msk.f32.mxu1 %vm4791_vm0, %v4790_v1 }
  0xd4   : > { %1195 = vmatprep.mubr.f32.mxu0 %v4790_v1 }
  0xd6   : > { %3747 = vmatmul.mubr.msk.f32.vlgmr.msra.gmra.mrb[22].mxu1 %vm529_vm5, %v1318_v56 }
  0xd7   : > { %3554 = vmatmul.mubr.msk.f32.vlgmr.msra.gmra.mrb[0].mxu0 %vm529_vm5, %v1111_v35  ;;  %3749 = vmatprep.mubr.msk.f32.mxu1 %vm4791_vm0, %v4790_v1 }
  0xd8   : > { %3884 = vmatpush1.bf16.msra.mxu0 %v3883_v57  ;;  %1201 = vmatprep.mubr.f32.mxu0 %v4790_v1 }
  0xd9   : > { %3887 = vmatprep.subr.msk.bf16.mxu0 %vm5060_vm3, %v3885_v59 }
  0xda   : > { %3750 = vmatmul.mubr.msk.f32.gmra.mrb[24].mxu1 %vm529_vm5, %v1320_v62 }
  0xdb   : > { %3555 = vmatmul.mubr.msk.f32.gmra.mrb[2].mxu0 %vm529_vm5, %v1113_v46  ;;  %3752 = vmatprep.mubr.msk.f32.mxu1 %vm4791_vm0, %v4790_v1 }
  0xdc   : > { %1207 = vmatprep.mubr.f32.mxu0 %v4790_v1  ;;  %3890 = vmatpush1.bf16.msk.msra.mxu0 %vm5060_vm3, %v3888_v63  ;;  %vm1797_vm3 = vcmask 916480  }
  0xde   : > { %3753 = vmatmul.mubr.msk.f32.gmra.mrb[26].mxu1 %vm529_vm5, %v1322_v3 }
  0xdf   : > { %3556 = vmatmul.mubr.msk.f32.gmra.mrb[4].mxu0 %vm529_vm5, %v1115_v51 }
  0xe0   : > { %1402 = vmatprep.mubr.f32.mxu0 %v4790_v1 }
  0xe3   : > { %3575 = vmatmul.mubr.msk.f32.vlgmr.msra.gmra.mrb[0].mxu0 %vm529_vm5, %v1318_v56 }
  0xe4   : > { %1408 = vmatprep.mubr.f32.mxu0 %v4790_v1 }
  0xe7   : > { %3576 = vmatmul.mubr.msk.f32.gmra.mrb[2].mxu0 %vm529_vm5, %v1320_v62 }
  0xe8   : > { %1414 = vmatprep.mubr.f32.mxu0 %v4790_v1 }
  0xeb   : > { %3577 = vmatmul.mubr.msk.f32.gmra.mrb[4].mxu0 %vm529_vm5, %v1322_v3  ;;  %vm3306_vm5 = vcmask 679936  }
 0x17d   : > { %v700_v2 = vpop.f32.mrb[0].mxu1 }
 0x17e   : > { %v3683_v29 = vpop.f32.mrb[1].mxu1 }
 0x181   : > { %v705_v4 = vpop.f32.mrb[2].mxu1 }
 0x182   : > { %v3686_v5 = vpop.f32.mrb[3].mxu1 }
 0x185   : > { %v873_v6 = vpop.f32.mrb[4].mxu1 }
 0x186   : > { %v3697_v7 = vpop.f32.mrb[5].mxu1 }
 0x189   : > { %v878_v8 = vpop.f32.mrb[6].mxu1 }
 0x18a   : > { %v695_v9 = vpop.f32.mrb[6].mxu0  ;;  %v879_v10 = vadd.f32 %v878_v8, %v700_v2  ;;  %v3700_v13 = vpop.f32.mrb[7].mxu1 }
 0x18b   : > { %v874_v11 = vadd.f32 %v873_v6, %v695_v9  ;;  %v3680_v12 = vpop.f32.mrb[7].mxu0 }
 0x18d   : > { %v883_v14 = vpop.f32.mrb[8].mxu1 }
 0x18e   : > { %v884_v15 = vadd.f32 %v883_v14, %v705_v4  ;;  %v3703_v16 = vpop.f32.mrb[9].mxu1 }
 0x191   : > { %v1072_v17 = vpop.f32.mrb[10].mxu1 }
 0x192   : > { %v1088_v18 = vadd.f32 %v1072_v17, %v874_v11  ;;  %v3714_v19 = vpop.f32.mrb[11].mxu1 }
 0x195   : > { %v1077_v20 = vpop.f32.mrb[12].mxu1 }
 0x196   : > { %v1091_v24 = vadd.f32 %v1077_v20, %v879_v10  ;;  %v3717_v25 = vpop.f32.mrb[13].mxu1 }
 0x199   : > { %v1082_v26 = vpop.f32.mrb[14].mxu1 }
 0x19a   : > { %v1094_v27 = vadd.f32 %v1082_v26, %v884_v15  ;;  %v3720_v28 = vpop.f32.mrb[15].mxu1 }
 0x19d   : > { %v1280_v31 = vpop.f32.mrb[16].mxu1 }
 0x19e   : > { %v1296_v32 = vadd.f32 %v1280_v31, %v1088_v18  ;;  %v3731_v33 = vpop.f32.mrb[17].mxu1 }
 0x1a1   : > { %v1285_v35 = vpop.f32.mrb[18].mxu1 }
 0x1a2   : > { %v1299_v36 = vadd.f32 %v1285_v35, %v1091_v24  ;;  %v3734_v37 = vpop.f32.mrb[19].mxu1 }
 0x1a5   : > { %v1290_v39 = vpop.f32.mrb[20].mxu1 }
 0x1a6   : > { %v1302_v41 = vadd.f32 %v1290_v39, %v1094_v27  ;;  %v3737_v42 = vpop.f32.mrb[21].mxu1 }
 0x1a9   : > { %v1487_v44 = vpop.f32.mrb[22].mxu1 }
 0x1aa   : > { %v1503_v45 = vadd.f32 %v1487_v44, %v1296_v32  ;;  %v3748_v46 = vpop.f32.mrb[23].mxu1 }
 0x1ac   : > { %v1529_v47 = vadd.f32 %v1523_v43, %v1503_v45 }
 0x1ad   : > { %v1492_v48 = vpop.f32.mrb[24].mxu1 }
 0x1ae   : > { %v1538_v49 = vmax.f32 %v1529_v47, 0.0  ;;  %v1506_v50 = vadd.f32 %v1492_v48, %v1299_v36  ;;  %v3751_v51 = vpop.f32.mrb[25].mxu1 }
 0x1b0   : > { %v1550_v54 = vrot.slane %v1538_v49, 1  ;;  %v1532_v55 = vadd.f32 %v1523_v43, %v1506_v50 }
 0x1b1   : > { %v1497_v23 = vpop.f32.mrb[26].mxu1 }
 0x1b2   : > { %v1556_v21 = vmax.f32 %v1538_v49, %v1550_v54  ;;  %v1541_v56 = vmax.f32 %v1532_v55, 0.0  ;;  %v1509_v57 = vadd.f32 %v1497_v23, %v1302_v41  ;;  %v3754_v59 = vpop.f32.mrb[27].mxu1 }
 0x1b4   : > { %v1586_v61 = vrot.slane %v1556_v21, 1  ;;  %v1592_v62 = vrot.slane %v1556_v21, 2  ;;  %v1562_v63 = vrot.slane %v1541_v56, 1  ;;  %v1535_v22 = vadd.f32 %v1523_v43, %v1509_v57 }
 0x1b5   : > { %v1598_v6 = vrot.slane %v1556_v21, 3 }
 0x1b6   : > { %v1404_v3 = vpop.f32.mrb[0].mxu0  ;;  %v1653_v2 = vsel %vm1650_vm8, %v1556_v21, %v1586_v61  ;;  %v1568_v29 = vmax.f32 %v1541_v56, %v1562_v63  ;;  %v1544_v7 = vmax.f32 %v1535_v22, 0.0 }
 0x1b7   : > { %v1527_v4 = vadd.f32 %v1515_v58, %v1404_v3  ;;  %v1406_v5 = vpop.f32.mrb[1].mxu0  ;;  %v1657_v9 = vsel %vm1654_vm9, %v1653_v2, %v1592_v62 }
 0x1b8   : > { %v1528_v8 = vadd.f32 %v1519_v60, %v1406_v5  ;;  %v1607_v11 = vrot.slane %v1568_v29, 4  ;;  %v1613_v12 = vrot.slane %v1568_v29, 5  ;;  %v1574_v13 = vrot.slane %v1544_v7, 1 }
 0x1b9   : > { %v1536_v10 = vmax.f32 %v1527_v4, 0.0  ;;  %v1619_v16 = vrot.slane %v1568_v29, 6  ;;  %v1661_v17 = vsel %vm1658_vm10, %v1657_v9, %v1598_v6  ;;  %v1625_v24 = vrot.slane %v1568_v29, 7 }
 0x1ba   : > { %v1537_v14 = vmax.f32 %v1528_v8, 0.0  ;;  %v1410_v15 = vpop.f32.mrb[2].mxu0  ;;  %v1664_v25 = vsel %vm536_vm1, %v1661_v17, %v1607_v11  ;;  %v1580_v26 = vmax.f32 %v1544_v7, %v1574_v13 }
 0x1bb   : > { %v1548_v18 = vrot.slane %v1536_v10, 1  ;;  %v1530_v19 = vadd.f32 %v1515_v58, %v1410_v15  ;;  %v1412_v20 = vpop.f32.mrb[3].mxu0  ;;  %v1667_v30 = vsel %vm1108_vm7, %v1664_v25, %v1613_v12 }
 0x1bc   : > { %v1549_v27 = vrot.slane %v1537_v14, 1  ;;  %v1531_v28 = vadd.f32 %v1519_v60, %v1412_v20  ;;  %v1670_v33 = vsel %vm900_vm6, %v1667_v30, %v1619_v16  ;;  %v1634_v47 = vrot.slane %v1580_v26, 1 }
 0x1bd   : > { %v1554_v31 = vmax.f32 %v1536_v10, %v1548_v18  ;;  %v1539_v32 = vmax.f32 %v1530_v19, 0.0  ;;  %v5423_v39 = vsel %vm521_vm4, %v1670_v33, %v1625_v24  ;;  %v1640_v23 = vrot.slane %v1580_v26, 2 }
 0x1be   : > { %v1555_v35 = vmax.f32 %v1537_v14, %v1549_v27  ;;  %v1540_v36 = vmax.f32 %v1531_v28, 0.0  ;;  %v1416_v37 = vpop.f32.mrb[4].mxu0  ;;  %1705 = vrot.lane.b32.xlu1 %v5423_v39, %s4793_s27  ;;  %v1646_v29 = vrot.slane %v1580_v26, 3 }
 0x1bf   : > { %v1584_v40 = vrot.slane %v1554_v31, 1  ;;  %v1590_v41 = vrot.slane %v1554_v31, 2  ;;  %v1560_v42 = vrot.slane %v1539_v32, 1  ;;  %v1418_v43 = vpop.f32.mrb[5].mxu0  ;;  %v1533_v50 = vadd.f32 %v1515_v58, %v1416_v37 }
 0x1c0   : > { %v1585_v44 = vrot.slane %v1555_v35, 1  ;;  %v1591_v45 = vrot.slane %v1555_v35, 2  ;;  %v1561_v46 = vrot.slane %v1540_v36, 1  ;;  %v1534_v51 = vadd.f32 %v1519_v60, %v1418_v43 }
 0x1c1   : > { %v1651_v48 = vsel %vm1650_vm8, %v1554_v31, %v1584_v40  ;;  %v1566_v49 = vmax.f32 %v1539_v32, %v1560_v42  ;;  %v1596_v21 = vrot.slane %v1554_v31, 3  ;;  %v1542_v59 = vmax.f32 %v1533_v50, 0.0  ;;  %v1884_v50 = vld [vmem:[#allocation5 + $0x268] sm:$0xff] }
 0x1c2   : > { %v1652_v54 = vsel %vm1650_vm8, %v1555_v35, %v1585_v44  ;;  %v1567_v55 = vmax.f32 %v1540_v36, %v1561_v46  ;;  %v1655_v56 = vsel %vm1654_vm9, %v1651_v48, %v1590_v41  ;;  %v1597_v61 = vrot.slane %v1555_v35, 3  ;;  %v1880_v44 = vld [vmem:[#allocation5 + $0x248] sm:$0xff]  ;;  %v1879_v46 = vld [vmem:[#allocation5 + $0x240] sm:$0xff]  ;;  %v1882_v48 = vld [vmem:[#allocation5 + $0x258] sm:$0xff] }
 0x1c3   : > { %v1605_v57 = vrot.slane %v1566_v49, 4  ;;  %v1656_v62 = vsel %vm1654_vm9, %v1652_v54, %v1591_v45  ;;  %v1611_v63 = vrot.slane %v1566_v49, 5  ;;  %v1543_v22 = vmax.f32 %v1534_v51, 0.0  ;;  %v1883_v45 = vld [vmem:[#allocation5 + $0x260] sm:$0xff] }
 0x1c4   : > { %v1606_v3 = vrot.slane %v1567_v55, 4  ;;  %v1572_v2 = vrot.slane %v1542_v59, 1  ;;  %v1676_v58 = vsel %vm1650_vm8, %v1580_v26, %v1634_v47  ;;  %v1612_v60 = vrot.slane %v1567_v55, 5 }
 0x1c5   : > { %v1573_v4 = vrot.slane %v1543_v22, 1  ;;  %v1679_v5 = vsel %vm1654_vm9, %v1676_v58, %v1640_v23  ;;  %v1659_v6 = vsel %vm1658_vm10, %v1655_v56, %v1596_v21  ;;  %v1617_v9 = vrot.slane %v1566_v49, 6  ;;  %v1889_v23 = vld [vmem:[#allocation5 + $0x290] sm:$0xff]  ;;  %v1894_v58 = vld [vmem:[#allocation5 + $0x2b8] sm:$0xff] }
 0x1c6   : > { %v1578_v7 = vmax.f32 %v1542_v59, %v1572_v2  ;;  %v5435_v8 = vsel %vm1658_vm10, %v1679_v5, %v1646_v29  ;;  %v1662_v10 = vsel %vm536_vm1, %v1659_v6, %v1605_v57  ;;  %v1623_v12 = vrot.slane %v1566_v49, 7  ;;  %v1881_v49 = vld [vmem:[#allocation5 + $0x250] sm:$0xff]  ;;  %v1888_v57 = vld [vmem:[#allocation5 + $0x288] sm:$0xff]  ;;  %v1887_v59 = vld [vmem:[#allocation5 + $0x280] sm:$0xff] }
 0x1c7   : > { %v1579_v11 = vmax.f32 %v1543_v22, %v1573_v4  ;;  %1707 = vrot.lane.b32.xlu1 %v5435_v8, %s4793_s27  ;;  %v1665_v13 = vsel %vm1108_vm7, %v1662_v10, %v1611_v63  ;;  %v1660_v14 = vsel %vm1658_vm10, %v1656_v62, %v1597_v61  ;;  %v1618_v24 = vrot.slane %v1567_v55, 6  ;;  %v1885_v21 = vld [vmem:[#allocation5 + $0x270] sm:$0xff]  ;;  %v1890_v61 = vld [vmem:[#allocation5 + $0x298] sm:$0xff]  ;;  %v1892_v22 = vld [vmem:[#allocation5 + $0x2a8] sm:$0xff] }
 0x1c8   : > { %v1632_v15 = vrot.slane %v1578_v7, 1  ;;  %v1638_v16 = vrot.slane %v1578_v7, 2  ;;  %v1668_v17 = vsel %vm900_vm6, %v1665_v13, %v1617_v9  ;;  %v1644_v25 = vrot.slane %v1578_v7, 3  ;;  %v1891_v2 = vld [vmem:[#allocation5 + $0x2a0] sm:$0xff]  ;;  %v1896_v4 = vld [vmem:[#allocation5 + $0x2c8] sm:$0xff]  ;;  %v1901_v9 = vld [vmem:[#allocation5 + $0x2f0] sm:$0xff] }
 0x1c9   : > { %v1633_v18 = vrot.slane %v1579_v11, 1  ;;  %v1639_v19 = vrot.slane %v1579_v11, 2  ;;  %v5444_v20 = vsel %vm521_vm4, %v1668_v17, %v1623_v12  ;;  %v1663_v27 = vsel %vm536_vm1, %v1660_v14, %v1606_v3  ;;  %v1895_v3 = vld [vmem:[#allocation5 + $0x2c0] sm:$0xff]  ;;  %v1897_v10 = vld [vmem:[#allocation5 + $0x2d0] sm:$0xff]  ;;  %v1900_v12 = vld [vmem:[#allocation5 + $0x2e8] sm:$0xff] }
 0x1ca   : > { %v1674_v26 = vsel %vm1650_vm8, %v1578_v7, %v1632_v15  ;;  %v1624_v30 = vrot.slane %v1567_v55, 7  ;;  %v1666_v31 = vsel %vm1108_vm7, %v1663_v27, %v1612_v60  ;;  %v1645_v35 = vrot.slane %v1579_v11, 3  ;;  %v1886_v55 = vld [vmem:[#allocation5 + $0x278] sm:$0xff]  ;;  %v1893_v60 = vld [vmem:[#allocation5 + $0x2b0] sm:$0xff]  ;;  %v1899_v13 = vld [vmem:[#allocation5 + $0x2e0] sm:$0xff] }
 0x1cb   : > { %v1677_v28 = vsel %vm1654_vm9, %v1674_v26, %v1638_v16  ;;  %v1675_v32 = vsel %vm1650_vm8, %v1579_v11, %v1633_v18  ;;  %v1669_v36 = vsel %vm900_vm6, %v1666_v31, %v1618_v24  ;;  %v3898_v47 = vpack.c.bf16 %v1883_v45, %v1880_v44  ;;  %v1898_v7 = vld [vmem:[#allocation5 + $0x2d8] sm:$0xff]  ;;  %v1904_v17 = vld [vmem:[#allocation5 + $0x308] sm:$0xff]  ;;  %v1907_v18 = vld [vmem:[#allocation5 + $0x320] sm:$0xff] }
 0x1cc   : > { %v5452_v33 = vsel %vm1658_vm10, %v1677_v28, %v1644_v25  ;;  %v1678_v37 = vsel %vm1654_vm9, %v1675_v32, %v1639_v19  ;;  %v5459_v41 = vsel %vm521_vm4, %v1669_v36, %v1624_v30  ;;  %v3900_v51 = vpack.c.bf16 %v1882_v48, %v1879_v46  ;;  %v1902_v14 = vld [vmem:[#allocation5 + $0x2f8] sm:$0xff]  ;;  %v1903_v19 = vld [vmem:[#allocation5 + $0x300] sm:$0xff]  ;;  %v1905_v27 = vld [vmem:[#allocation5 + $0x310] sm:$0xff] }
 0x1cd   : > { %v4482_v40 = vpack.i.bf16 %v5452_v33, %v5444_v20  ;;  %v5462_v42 = vsel %vm1658_vm10, %v1678_v37, %v1645_v35  ;;  %v3947_v54 = vpack.c.bf16 %v1884_v50, %v1881_v49  ;;  %3899 = vmatprep.subr.bf16.mxu0 %v3898_v47  ;;  %v3902_v56 = vpack.c.bf16 %v1889_v23, %v1886_v55  ;;  %v1906_v26 = vld [vmem:[#allocation5 + $0x318] sm:$0xff]  ;;  %v1908_v28 = vld [vmem:[#allocation5 + $0x328] sm:$0xff]  ;;  %v1913_v36 = vld [vmem:[#allocation5 + $0x350] sm:$0xff] }
 0x1ce   : > { %v4487_v43 = vpack.i.bf16 %v5462_v42, %v5459_v41  ;;  %3901 = vmatpush1.bf16.msra.mxu0 %v3900_v51  ;;  %v3904_v62 = vpack.c.bf16 %v1888_v57, %v1885_v21  ;;  %v3950_v63 = vpack.c.bf16 %v1890_v61, %v1887_v59  ;;  %v3906_v29 = vpack.c.bf16 %v1895_v3, %v1892_v22  ;;  %v1910_v35 = vld [vmem:[#allocation5 + $0x338] sm:$0xff]  ;;  %v1909_v37 = vld [vmem:[#allocation5 + $0x330] sm:$0xff]  ;;  %v1911_v44 = vld [vmem:[#allocation5 + $0x340] sm:$0xff] }
 0x1cf   : > { %4483 = vrot.lane.b32.xlu0 %v4482_v40, %s4793_s27  ;;  %3948 = vmatpush1.bf16.msra.mxu1 %v3947_v54  ;;  %v3908_v5 = vpack.c.bf16 %v1894_v58, %v1891_v2  ;;  %v3953_v6 = vpack.c.bf16 %v1896_v4, %v1893_v60  ;;  %v3910_v11 = vpack.c.bf16 %v1901_v9, %v1898_v7  ;;  %v1914_v45 = vld [vmem:[#allocation5 + $0x358] sm:$0xff]  ;;  %v1916_v46 = vld [vmem:[#allocation5 + $0x368] sm:$0xff]  ;;  %v1915_v50 = vld [vmem:[#allocation5 + $0x360] sm:$0xff] }
 0x1d0   : > { %3903 = vmatprep.subr.bf16.mxu0 %v3902_v56  ;;  %3949 = vmatprep.subr.bf16.mxu1 %v4789_v0  ;;  %v3912_v15 = vpack.c.bf16 %v1900_v12, %v1897_v10  ;;  %v3956_v16 = vpack.c.bf16 %v1902_v14, %v1899_v13  ;;  %v3914_v25 = vpack.c.bf16 %v1907_v18, %v1904_v17  ;;  %v1918_v51 = vld [vmem:[#allocation5 + $0x378] sm:$0xff]  ;;  %v1917_v54 = vld [vmem:[#allocation5 + $0x370] sm:$0xff]  ;;  %v1920_v55 = vld [vmem:[#allocation5 + $0x388] sm:$0xff] }
 0x1d1   : > { %v3916_v31 = vpack.c.bf16 %v1906_v26, %v1903_v19  ;;  %v3959_v32 = vpack.c.bf16 %v1908_v28, %v1905_v27  ;;  %v3918_v40 = vpack.c.bf16 %v1913_v36, %v1910_v35  ;;  %v3962_v48 = vpack.c.bf16 %v1914_v45, %v1911_v44  ;;  %v1922_v23 = vld [vmem:[#allocation5 + $0x398] sm:$0xff]  ;;  %v1925_v21 = vld [vmem:[#allocation5 + $0x3b0] sm:$0xff]  ;;  %v1924_v22 = vld [vmem:[#allocation5 + $0x3a8] sm:$0xff] }
 0x1d2   : > { %3905 = vmatpush1.bf16.msra.mxu0 %v3904_v62  ;;  %v3924_v57 = vpack.c.bf16 %v1918_v51, %v1915_v50  ;;  %v3965_v59 = vpack.c.bf16 %v1920_v55, %v1917_v54  ;;  %v1921_v61 = vld [vmem:[#allocation5 + $0x390] sm:$0xff]  ;;  %v1923_v3 = vld [vmem:[#allocation5 + $0x3a0] sm:$0xff]  ;;  %v1926_v2 = vld [vmem:[#allocation5 + $0x3b8] sm:$0xff] }
 0x1d3   : > { %4488 = vrot.lane.b32.xlu0 %v4487_v43, %s4793_s27  ;;  %3951 = vmatpush1.bf16.msra.mxu1 %v3950_v63  ;;  %v1912_v43 = vld [vmem:[#allocation5 + $0x348] sm:$0xff]  ;;  %v3926_v63 = vpack.c.bf16 %v1925_v21, %v1922_v23  ;;  %v3968_v58 = vpack.c.bf16 %v1926_v2, %v1923_v3  ;;  %v1931_v4 = vld [vmem:[#allocation5 + $0x3e0] sm:$0xff]  ;;  %v1929_v7 = vld [vmem:[#allocation5 + $0x3d0] sm:$0xff] }
 0x1d4   : > { %3907 = vmatprep.subr.bf16.mxu0 %v3906_v29  ;;  %3952 = vmatprep.subr.bf16.mxu1 %v4789_v0  ;;  %v3920_v47 = vpack.c.bf16 %v1912_v43, %v1909_v37  ;;  %v3928_v29 = vpack.c.bf16 %v1924_v22, %v1921_v61  ;;  %v1928_v60 = vld [vmem:[#allocation5 + $0x3c8] sm:$0xff]  ;;  %v1933_v17 = vld [vmem:[#allocation5 + $0x3f0] sm:$0xff]  ;;  %v1943_v43 = vld [vmem:[#allocation5 + $0x440] sm:$0xff] }
 0x1d5   : > { %v1932_v9 = vld [vmem:[#allocation5 + $0x3e8] sm:$0xff]  ;;  %v1942_v45 = vld [vmem:[#allocation5 + $0x438] sm:$0xff]  ;;  %v1949_v51 = vld [vmem:[#allocation5 + $0x470] sm:$0xff] }
 0x1d6   : > { %3909 = vmatpush1.bf16.msra.mxu0 %v3908_v5  ;;  %v1927_v5 = vld [vmem:[#allocation5 + $0x3c0] sm:$0xff]  ;;  %v3971_v12 = vpack.c.bf16 %v1932_v9, %v1929_v7  ;;  %v1936_v19 = vld [vmem:[#allocation5 + $0x408] sm:$0xff]  ;;  %v1946_v50 = vld [vmem:[#allocation5 + $0x458] sm:$0xff] }
 0x1d7   : > { %3954 = vmatpush1.bf16.msra.mxu1 %v3953_v6  ;;  %3911 = vmatprep.subr.bf16.mxu0 %v3910_v11  ;;  %v1930_v6 = vld [vmem:[#allocation5 + $0x3d8] sm:$0xff]  ;;  %v1945_v54 = vld [vmem:[#allocation5 + $0x450] sm:$0xff]  ;;  %v1948_v23 = vld [vmem:[#allocation5 + $0x468] sm:$0xff] }
 0x1d8   : > { %3955 = vmatprep.subr.bf16.mxu1 %v4789_v0  ;;  %v3932_v11 = vpack.c.bf16 %v1930_v6, %v1927_v5  ;;  %v1947_v21 = vld [vmem:[#allocation5 + $0x460] sm:$0xff] }
 0x1da   : > { %3913 = vmatpush1.bf16.msra.mxu0 %v3912_v15  ;;  %v1934_v15 = vld [vmem:[#allocation5 + $0x3f8] sm:$0xff] }
 0x1db   : > { %3957 = vmatpush1.bf16.msra.mxu1 %v3956_v16  ;;  %3915 = vmatprep.subr.bf16.mxu0 %v3914_v25  ;;  %v1937_v16 = vld [vmem:[#allocation5 + $0x410] sm:$0xff]  ;;  %v1938_v25 = vld [vmem:[#allocation5 + $0x418] sm:$0xff] }
 0x1dc   : > { %3958 = vmatprep.subr.bf16.mxu1 %v4789_v0  ;;  %v3934_v18 = vpack.c.bf16 %v1937_v16, %v1934_v15 }
 0x1de   : > { %3917 = vmatpush1.bf16.msra.mxu0 %v3916_v31  ;;  %v3936_v31 = vpack.c.bf16 %v1936_v19, %v1933_v17 }
 0x1df   : > { %3960 = vmatpush1.bf16.msra.mxu1 %v3959_v32  ;;  %3919 = vmatprep.subr.bf16.mxu0 %v3918_v40  ;;  %v1940_v40 = vld [vmem:[#allocation5 + $0x428] sm:$0xff] }
 0x1e0   : > { %3961 = vmatprep.subr.bf16.mxu1 %v4789_v0  ;;  %v3938_v44 = vpack.c.bf16 %v1943_v43, %v1940_v40 }
 0x1e2   : > { %3921 = vmatpush1.bf16.msra.mxu0 %v3920_v47 }
 0x1e3   : > { %3963 = vmatpush1.bf16.msra.mxu1 %v3962_v48 }
 0x1e4   : > { %3964 = vmatprep.subr.bf16.mxu1 %v4789_v0 }
 0x1e7   : > { %3966 = vmatpush1.bf16.msra.mxu1 %v3965_v59  ;;  %v3944_v59 = vpack.c.bf16 %v1948_v23, %v1945_v54  ;;  %v1811_v54 = vld [vmem:[#allocation5 + $0x28] sm:$0xff] }
 0x1e8   : > { %3967 = vmatprep.subr.bf16.mxu1 %v4789_v0 }
 0x1eb   : > { %3969 = vmatpush1.bf16.msra.mxu1 %v3968_v58 }
 0x1ec   : > { %3970 = vmatprep.subr.bf16.mxu1 %v4789_v0 }
 0x1ef   : > { %3972 = vmatpush1.bf16.msra.mxu1 %v3971_v12 }
 0x1f0   : > { %3973 = vmatprep.subr.bf16.mxu1 %v4789_v0 }
 0x230   : > { %v1706_v24 = vpop.permute.xlu1 %1705 }
 0x231   : > { %v5473_v30 = vmax.f32 %v5423_v39, %v1706_v24  ;;  %v1919_v39 = vld [vmem:[#allocation5 + $0x380] sm:$0xff] }
 0x232   : > { %v3922_v49 = vpack.c.bf16 %v1919_v39, %v1916_v46  ;;  %v1935_v24 = vld [vmem:[#allocation5 + $0x400] sm:$0xff]  ;;  %v1944_v46 = vld [vmem:[#allocation5 + $0x448] sm:$0xff] }
 0x233   : > { %1767 = vrot.lane.b32.xlu1 %v5473_v30, %s4794_s29  ;;  %1761 = vrot.lane.b32.xlu0 %v5473_v30, %s4793_s27  ;;  %v3974_v32 = vpack.c.bf16 %v1938_v25, %v1935_v24 }
 0x234   : > { %3923 = vmatprep.subr.bf16.mxu0 %v3922_v49 }
 0x235   : > { %3925 = vmatpush1.bf16.msra.mxu0 %v3924_v57  ;;  %3975 = vmatpush1.bf16.msra.mxu1 %v3974_v32  ;;  %v1810_v57 = vld [vmem:[#allocation5 + $0x20] sm:$0xff] }
 0x236   : > { %3927 = vmatprep.subr.bf16.mxu0 %v3926_v63  ;;  %3976 = vmatprep.subr.bf16.mxu1 %v4789_v0 }
 0x237   : > { %1773 = vrot.lane.b32.xlu0 %v5473_v30, %s4795_s18 }
 0x239   : > { %v1708_v56 = vpop.permute.xlu1 %1707  ;;  %3929 = vmatpush1.bf16.msra.mxu0 %v3928_v29 }
 0x23a   : > { %v5484_v62 = vmax.f32 %v5435_v8, %v1708_v56  ;;  %v3930_v8 = vpack.c.bf16 %v1931_v4, %v1928_v60  ;;  %v1950_v56 = vld [vmem:[#allocation5 + $0x478] sm:$0xff] }
 0x23b   : > { %v3980_v61 = vpack.c.bf16 %v1950_v56, %v1947_v21 }
 0x23c   : > { %1763 = vrot.lane.b32.xlu1 %v5484_v62, %s4793_s27  ;;  %1769 = vrot.lane.b32.xlu0 %v5484_v62, %s4794_s29 }
 0x23d   : > { %3931 = vmatprep.subr.bf16.mxu0 %v3930_v8 }
 0x23e   : > { %3933 = vmatpush1.bf16.msra.mxu0 %v3932_v11 }
 0x23f   : > { %3935 = vmatprep.subr.bf16.mxu0 %v3934_v18 }
 0x241   : > { %v4484_v10 = vpop.permute.xlu0 %4483 }
 0x242   : > { %v4486_v13 = vunpack.i.h.bf16 %v4484_v10  ;;  %v4485_v14 = vunpack.i.l.bf16 %v4484_v10  ;;  %3937 = vmatpush1.bf16.msra.mxu0 %v3936_v31 }
 0x243   : > { %3939 = vmatprep.subr.bf16.mxu0 %v3938_v44 }
 0x244   : > { %v5493_v26 = vmax.f32 %v5452_v33, %v4486_v13  ;;  %v5496_v27 = vmax.f32 %v5444_v20, %v4485_v14  ;;  %v1939_v33 = vld [vmem:[#allocation5 + $0x420] sm:$0xff]  ;;  %v1941_v20 = vld [vmem:[#allocation5 + $0x430] sm:$0xff] }
 0x245   : > { %v4489_v28 = vpop.permute.xlu0 %4488  ;;  %v3940_v48 = vpack.c.bf16 %v1942_v45, %v1939_v33  ;;  %v3977_v49 = vpack.c.bf16 %v1944_v46, %v1941_v20 }
 0x246   : > { %v4491_v35 = vunpack.i.h.bf16 %v4489_v28  ;;  %v4490_v36 = vunpack.i.l.bf16 %v4489_v28  ;;  %v4497_v37 = vpack.i.bf16 %v5493_v26, %v5496_v27 }
 0x247   : > { %3941 = vmatpush1.bf16.msra.mxu0 %v3940_v48  ;;  %3978 = vmatpush1.bf16.msra.mxu1 %v3977_v49 }
 0x248   : > { %v1702_v39 = vmax.f32 %v5462_v42, %v4491_v35  ;;  %v1701_v47 = vmax.f32 %v5459_v41, %v4490_v36  ;;  %4498 = vrot.lane.b32.xlu1 %v4497_v37, %s4794_s29  ;;  %4493 = vrot.lane.b32.xlu0 %v4497_v37, %s4793_s27  ;;  %v3942_v42 = vpack.c.bf16 %v1949_v51, %v1946_v50  ;;  %v1807_v41 = vld [vmem:[#allocation5 + $0x8] sm:$0xff]  ;;  %v1808_v51 = vld [vmem:[#allocation5 + $0x10] sm:$0xff]  ;;  %s5830_s27 = scalar_lea.hbm %s5911_s12, %s3602_s3 }
 0x249   : > { %3979 = vmatprep.subr.bf16.mxu1 %v4789_v0  ;;  %v3982_v63 = vpack.c.bf16 %v1810_v57, %v1807_v41  ;;  %v1813_v57 = vld [vmem:[#allocation5 + $0x38] sm:$0xff] }
 0x24a   : > { %v4507_v55 = vpack.i.bf16 %v1702_v39, %v1701_v47  ;;  %3943 = vmatprep.subr.bf16.mxu0 %v3942_v42  ;;  %v1806_v39 = vld [vmem:[#allocation5] sm:$0xff]  ;;  %v1809_v47 = vld [vmem:[#allocation5 + $0x18] sm:$0xff] }
 0x24b   : > { %3945 = vmatpush1.bf16.msra.mxu0 %v3944_v59  ;;  %3981 = vmatpush1.bf16.msra.mxu1 %v3980_v61  ;;  %v3984_v41 = vpack.c.bf16 %v1809_v47, %v1806_v39  ;;  %v1816_v59 = vld [vmem:[#allocation5 + $0x50] sm:$0xff] }
 0x24c   : > { %4503 = vrot.lane.b32.xlu0 %v4497_v37, %s4795_s18  ;;  %4508 = vrot.lane.b32.xlu1 %v4507_v55, %s4796_s19  ;;  %v1840_v39 = vld [vmem:[#allocation5 + $0x110] sm:$0xff] }
 0x24d   : > { %3983 = vmatprep.subr.bf16.mxu0 %v3982_v63  ;;  %4030 = vmatprep.subr.bf16.mxu1 %v4789_v0 }
 0x250   : > { %4513 = vrot.lane.b32.xlu0 %v4507_v55, %s4797_s26  ;;  %4518 = vrot.lane.b32.xlu1 %v4507_v55, %s4798_s17  ;;  %s4800_s26 = smov [#allocation12]  }
 0x254   : > { %4523 = vrot.lane.b32.xlu0 %v4507_v55, %s4799_s24  ;;  %1775 = vrot.lane.b32.xlu1 %v5484_v62, %s4795_s18  ;;  %s3315_s18 = scalar_lea.sflag [#allocation13], %s5821_s16 }
 0x2a5   : > { %v1762_v22 = vpop.permute.xlu0 %1761  ;;  %v1768_v3 = vpop.permute.xlu1 %1767 }
 0x2a6   : > { %v1800_v13 = vsel %vm1779_vm11, %v5473_v30, %v1762_v22 }
 0x2a7   : > { %v1802_v28 = vsel %vm1782_vm12, %v1800_v13, %v1768_v3  ;;  %v4031_v3 = vpack.c.bf16 %v1811_v54, %v1808_v51  ;;  %v1818_v13 = vld [vmem:[#allocation5 + $0x60] sm:$0xff]  ;;  %v1839_v54 = vld [vmem:[#allocation5 + $0x108] sm:$0xff] }
 0x2a9   : > { %v1774_v2 = vpop.permute.xlu0 %1773 }
 0x2aa   : > { %v5529_v43 = vsel %vm1785_vm13, %v1802_v28, %v1774_v2  ;;  %v1812_v2 = vld [vmem:[#allocation5 + $0x30] sm:$0xff]  ;;  %v1827_v28 = vld [vmem:[#allocation5 + $0xa8] sm:$0xff] }
 0x2ae   : > { %v1764_v29 = vpop.permute.xlu1 %1763  ;;  %v1770_v58 = vpop.permute.xlu0 %1769 }
 0x2af   : > { %v1801_v40 = vsel %vm1779_vm11, %v5484_v62, %v1764_v29  ;;  %v1958_v62 = vrot.slane %v5529_v43, 1  ;;  %v1815_v29 = vld [vmem:[#allocation5 + $0x48] sm:$0xff] }
 0x2b0   : > { %v1803_v45 = vsel %vm1782_vm12, %v1801_v40, %v1770_v58  ;;  %v1814_v58 = vld [vmem:[#allocation5 + $0x40] sm:$0xff] }
 0x2b1   : > { %v1830_v40 = vld [vmem:[#allocation5 + $0xc0] sm:$0xff] }
 0x2ba   : > { %v4499_v60 = vpop.permute.xlu1 %4498  ;;  %v4494_v4 = vpop.permute.xlu0 %4493 }
 0x2bb   : > { %v4496_v5 = vunpack.i.h.bf16 %v4494_v4  ;;  %v4495_v8 = vunpack.i.l.bf16 %v4494_v4  ;;  %v4501_v6 = vunpack.i.h.bf16 %v4499_v60  ;;  %v4500_v7 = vunpack.i.l.bf16 %v4499_v60  ;;  %v1817_v60 = vld [vmem:[#allocation5 + $0x58] sm:$0xff] }
 0x2bd   : > { %v1781_v9 = vsel %vm1779_vm11, %v5493_v26, %v4496_v5  ;;  %v1780_v10 = vsel %vm1779_vm11, %v5496_v27, %v4495_v8 }
 0x2be   : > { %v4504_v11 = vpop.permute.xlu0 %4503  ;;  %v4509_v12 = vpop.permute.xlu1 %4508  ;;  %v1783_v16 = vsel %vm1782_vm12, %v1780_v10, %v4500_v7  ;;  %v1784_v17 = vsel %vm1782_vm12, %v1781_v9, %v4501_v6  ;;  %v3986_v6 = vpack.c.bf16 %v1816_v59, %v1813_v57  ;;  %v1819_v7 = vld [vmem:[#allocation5 + $0x68] sm:$0xff]  ;;  %v1822_v9 = vld [vmem:[#allocation5 + $0x80] sm:$0xff] }
 0x2bf   : > { %v4506_v14 = vunpack.i.h.bf16 %v4504_v11  ;;  %v4505_v15 = vunpack.i.l.bf16 %v4504_v11  ;;  %v4511_v18 = vunpack.i.h.bf16 %v4509_v12  ;;  %v4510_v19 = vunpack.i.l.bf16 %v4509_v12  ;;  %v1842_v59 = vld [vmem:[#allocation5 + $0x120] sm:$0xff] }
 0x2c0   : > { %v3988_v11 = vpack.c.bf16 %v1815_v29, %v1812_v2  ;;  %v4034_v12 = vpack.c.bf16 %v1817_v60, %v1814_v58  ;;  %v1849_v2 = vld [vmem:[#allocation5 + $0x158] sm:$0xff]  ;;  %v1852_v29 = vld [vmem:[#allocation5 + $0x170] sm:$0xff] }
 0x2c1   : > { %v1786_v24 = vsel %vm1785_vm13, %v1783_v16, %v4505_v15  ;;  %v1787_v25 = vsel %vm1785_vm13, %v1784_v17, %v4506_v14  ;;  %v1821_v14 = vld [vmem:[#allocation5 + $0x78] sm:$0xff]  ;;  %v1820_v15 = vld [vmem:[#allocation5 + $0x70] sm:$0xff]  ;;  %v1823_v16 = vld [vmem:[#allocation5 + $0x88] sm:$0xff]  ;;  %v3990_v17 = vpack.c.bf16 %v1822_v9, %v1819_v7 }
 0x2c2   : > { %v4514_v26 = vpop.permute.xlu0 %4513  ;;  %v4519_v27 = vpop.permute.xlu1 %4518  ;;  %v1790_v32 = vsel %vm1788_vm14, %v1787_v25, %v4511_v18  ;;  %v1789_v35 = vsel %vm1788_vm14, %v1786_v24, %v4510_v19  ;;  %v1825_v18 = vld [vmem:[#allocation5 + $0x98] sm:$0xff]  ;;  %v1828_v19 = vld [vmem:[#allocation5 + $0xb0] sm:$0xff]  ;;  %v3992_v24 = vpack.c.bf16 %v1821_v14, %v1818_v13  ;;  %v4037_v25 = vpack.c.bf16 %v1823_v16, %v1820_v15  ;;  %v1850_v7 = vld [vmem:[#allocation5 + $0x160] sm:$0xff] }
 0x2c3   : > { %v4516_v30 = vunpack.i.h.bf16 %v4514_v26  ;;  %v4515_v31 = vunpack.i.l.bf16 %v4514_v26  ;;  %v4521_v36 = vunpack.i.h.bf16 %v4519_v27  ;;  %v4520_v37 = vunpack.i.l.bf16 %v4519_v27  ;;  %v1824_v26 = vld [vmem:[#allocation5 + $0x90] sm:$0xff]  ;;  %v1853_v9 = vld [vmem:[#allocation5 + $0x178] sm:$0xff]  ;;  %v1854_v15 = vld [vmem:[#allocation5 + $0x180] sm:$0xff] }
 0x2c4   : > { %v3994_v27 = vpack.c.bf16 %v1828_v19, %v1825_v18  ;;  %v4052_v14 = vpack.c.bf16 %v1853_v9, %v1850_v7  ;;  %v1856_v18 = vld [vmem:[#allocation5 + $0x190] sm:$0xff]  ;;  %v1859_v19 = vld [vmem:[#allocation5 + $0x1a8] sm:$0xff] }
 0x2c5   : > { %v1792_v33 = vsel %vm1791_vm15, %v1789_v35, %v4515_v31  ;;  %v1793_v44 = vsel %vm1791_vm15, %v1790_v32, %v4516_v30  ;;  %v1826_v30 = vld [vmem:[#allocation5 + $0xa0] sm:$0xff]  ;;  %v1829_v31 = vld [vmem:[#allocation5 + $0xb8] sm:$0xff]  ;;  %v1831_v32 = vld [vmem:[#allocation5 + $0xc8] sm:$0xff] }
 0x2c6   : > { %v4524_v20 = vpop.permute.xlu0 %4523  ;;  %v1776_v46 = vpop.permute.xlu1 %1775  ;;  %v1795_v55 = vsel %vm1794_vm2, %v1792_v33, %v4520_v37  ;;  %v1796_v23 = vsel %vm1794_vm2, %v1793_v44, %v4521_v36  ;;  %v1834_v35 = vld [vmem:[#allocation5 + $0xe0] sm:$0xff]  ;;  %v3996_v36 = vpack.c.bf16 %v1827_v28, %v1824_v26  ;;  %v4040_v37 = vpack.c.bf16 %v1829_v31, %v1826_v30  ;;  %v1833_v44 = vld [vmem:[#allocation5 + $0xd8] sm:$0xff]  ;;  %v1860_v28 = vld [vmem:[#allocation5 + $0x1b0] sm:$0xff] }
 0x2c7   : > { %v4526_v48 = vunpack.i.h.bf16 %v4524_v20  ;;  %v4525_v49 = vunpack.i.l.bf16 %v4524_v20  ;;  %v5533_v50 = vsel %vm1785_vm13, %v1803_v45, %v1776_v46  ;;  %v3998_v33 = vpack.c.bf16 %v1834_v35, %v1831_v32  ;;  %v1832_v45 = vld [vmem:[#allocation5 + $0xd0] sm:$0xff]  ;;  %v1835_v20 = vld [vmem:[#allocation5 + $0xe8] sm:$0xff]  ;;  %v1837_v46 = vld [vmem:[#allocation5 + $0xf8] sm:$0xff] }
 0x2c8   : > { %v1959_v21 = vrot.slane %v5533_v50, 1  ;;  %v4000_v47 = vpack.c.bf16 %v1833_v44, %v1830_v40  ;;  %v4002_v51 = vpack.c.bf16 %v1840_v39, %v1837_v46  ;;  %v1863_v31 = vld [vmem:[#allocation5 + $0x1c8] sm:$0xff]  ;;  %v1862_v32 = vld [vmem:[#allocation5 + $0x1c0] sm:$0xff]  ;;  %v1865_v35 = vld [vmem:[#allocation5 + $0x1d8] sm:$0xff] }
 0x2c9   : > { %v5539_v56 = vsel %vm1797_vm3, %v1795_v55, %v4525_v49  ;;  %v5541_v42 = vsel %vm1797_vm3, %v1796_v23, %v4526_v48  ;;  %v4043_v48 = vpack.c.bf16 %v1835_v20, %v1832_v45  ;;  %v1836_v49 = vld [vmem:[#allocation5 + $0xf0] sm:$0xff]  ;;  %v1841_v55 = vld [vmem:[#allocation5 + $0x118] sm:$0xff]  ;;  %v1843_v23 = vld [vmem:[#allocation5 + $0x128] sm:$0xff]  ;;  %v4020_v40 = vpack.c.bf16 %v1863_v31, %v1860_v28 }
 0x2ca   : > { %v1960_v61 = vsel %vm521_vm4, %v1958_v62, %v1959_v21  ;;  %v1955_v63 = vrot.slane %v5539_v56, 1  ;;  %v1956_v22 = vrot.slane %v5541_v42, 1  ;;  %v2348_v4 = vrot.slane %v5539_v56, 2  ;;  %v1838_v62 = vld [vmem:[#allocation5 + $0x100] sm:$0xff]  ;;  %v1869_v20 = vld [vmem:[#allocation5 + $0x1f8] sm:$0xff]  ;;  %v1868_v46 = vld [vmem:[#allocation5 + $0x1f0] sm:$0xff] }
 0x2cb   : > { %3582 = vmatprep.mubr.msk.f32.mxu0 %vm1788_vm14, %v1960_v61  ;;  %3584 = vmatprep.mubr.msk.f32.mxu1 %vm1788_vm14, %v1960_v61  ;;  %v5550_v5 = vrot.slane %v5541_v42, 2  ;;  %v4046_v57 = vpack.c.bf16 %v1841_v55, %v1838_v62  ;;  %v1866_v44 = vld [vmem:[#allocation5 + $0x1e0] sm:$0xff]  ;;  %v1871_v39 = vld [vmem:[#allocation5 + $0x208] sm:$0xff]  ;;  %v2294_v31 = vld [vmem:[#allocation5 + $0x510] sm:$0xff] }
 0x2cc   : > { %v1957_v8 = vsel %vm521_vm4, %v1955_v63, %v1956_v22  ;;  %v1845_v63 = vld [vmem:[#allocation5 + $0x138] sm:$0xff]  ;;  %v1875_v55 = vld [vmem:[#allocation5 + $0x228] sm:$0xff]  ;;  %vm3142_vm4 = vcmask 982016  }
 0x2cd   : > { %2032 = vmatmul.mubr.f32.vlgmr.msra.gmra.mrb[8].mxu0 %v1957_v8  ;;  %2109 = vmatmul.mubr.f32.vlgmr.msra.gmra.mrb[28].mxu1 %v1957_v8  ;;  %v5555_v10 = vsel %vm900_vm6, %v2348_v4, %v5550_v5  ;;  %v4008_v58 = vpack.c.bf16 %v1845_v63, %v1842_v59  ;;  %v1848_v4 = vld [vmem:[#allocation5 + $0x150] sm:$0xff]  ;;  %v4010_v8 = vpack.c.bf16 %v1852_v29, %v1849_v2  ;;  %v2281_v29 = vld [vmem:[#allocation5 + $0x4a8] sm:$0xff] }
 0x2ce   : > { %3985 = vmatpush1.bf16.msra.mxu0 %v3984_v41  ;;  %4032 = vmatpush1.bf16.msra.mxu1 %v4031_v3  ;;  %v4004_v41 = vpack.c.bf16 %v1839_v54, %v1836_v49  ;;  %v1847_v3 = vld [vmem:[#allocation5 + $0x148] sm:$0xff]  ;;  %v4024_v49 = vpack.c.bf16 %v1869_v20, %v1866_v44  ;;  %v1872_v54 = vld [vmem:[#allocation5 + $0x210] sm:$0xff] }
 0x2cf   : > { %3583 = vmatprep.mubr.msk.f32.mxu0 %vm1788_vm14, %v1959_v21  ;;  %3585 = vmatprep.mubr.msk.f32.mxu1 %vm1788_vm14, %v1959_v21  ;;  %v1846_v21 = vld [vmem:[#allocation5 + $0x140] sm:$0xff]  ;;  %v4028_v59 = vpack.c.bf16 %v1875_v55, %v1872_v54  ;;  %v2278_v2 = vld [vmem:[#allocation5 + $0x490] sm:$0xff]  ;;  %v2285_v9 = vld [vmem:[#allocation5 + $0x4c8] sm:$0xff] }
 0x2d0   : > { %3987 = vmatprep.subr.bf16.mxu0 %v3986_v6  ;;  %4033 = vmatprep.subr.bf16.mxu1 %v4789_v0  ;;  %v4006_v61 = vpack.c.bf16 %v1846_v21, %v1843_v23  ;;  %v1851_v6 = vld [vmem:[#allocation5 + $0x168] sm:$0xff]  ;;  %v1874_v23 = vld [vmem:[#allocation5 + $0x220] sm:$0xff]  ;;  %v1877_v21 = vld [vmem:[#allocation5 + $0x238] sm:$0xff] }
 0x2d1   : > { %2038 = vmatmul.mubr.f32.gmra.mrb[10].mxu0 %v1956_v22  ;;  %2114 = vmatmul.mubr.f32.gmra.mrb[30].mxu1 %v1956_v22  ;;  %v1844_v22 = vld [vmem:[#allocation5 + $0x130] sm:$0xff]  ;;  %v4012_v13 = vpack.c.bf16 %v1851_v6, %v1848_v4 }
 0x2d2   : > { %3989 = vmatpush1.bf16.msra.mxu0 %v3988_v11  ;;  %4035 = vmatpush1.bf16.msra.mxu1 %v4034_v12  ;;  %v4049_v60 = vpack.c.bf16 %v1847_v3, %v1844_v22  ;;  %v1855_v11 = vld [vmem:[#allocation5 + $0x188] sm:$0xff]  ;;  %v1858_v12 = vld [vmem:[#allocation5 + $0x1a0] sm:$0xff]  ;;  %v2279_v3 = vld [vmem:[#allocation5 + $0x498] sm:$0xff] }
 0x2d3   : > { %3586 = vmatprep.mubr.msk.f32.mxu0 %vm1788_vm14, %v5529_v43  ;;  %3588 = vmatprep.mubr.msk.f32.mxu1 %vm1788_vm14, %v5529_v43  ;;  %v4014_v16 = vpack.c.bf16 %v1858_v12, %v1855_v11  ;;  %v2276_v22 = vld [vmem:[#allocation5 + $0x480] sm:$0xff]  ;;  %v2282_v6 = vld [vmem:[#allocation5 + $0x4b0] sm:$0xff]  ;;  %v2287_v12 = vld [vmem:[#allocation5 + $0x4d8] sm:$0xff] }
 0x2d4   : > { %3991 = vmatprep.subr.bf16.mxu0 %v3990_v17  ;;  %4036 = vmatprep.subr.bf16.mxu1 %v4789_v0  ;;  %v1857_v17 = vld [vmem:[#allocation5 + $0x198] sm:$0xff]  ;;  %v4068_v4 = vpack.c.bf16 %v2279_v3, %v2276_v22  ;;  %v2284_v11 = vld [vmem:[#allocation5 + $0x4c0] sm:$0xff] }
 0x2d5   : > { %v4016_v26 = vpack.c.bf16 %v1857_v17, %v1854_v15  ;;  %v2292_v15 = vld [vmem:[#allocation5 + $0x500] sm:$0xff]  ;;  %v4072_v17 = vpack.c.bf16 %v2285_v9, %v2282_v6 }
 0x2d6   : > { %3993 = vmatpush1.bf16.msra.mxu0 %v3992_v24  ;;  %4038 = vmatpush1.bf16.msra.mxu1 %v4037_v25  ;;  %v1861_v24 = vld [vmem:[#allocation5 + $0x1b8] sm:$0xff]  ;;  %v1864_v25 = vld [vmem:[#allocation5 + $0x1d0] sm:$0xff]  ;;  %v2312_v22 = vld [vmem:[#allocation5 + $0x5a0] sm:$0xff] }
 0x2d7   : > { %3995 = vmatprep.subr.bf16.mxu0 %v3994_v27  ;;  %4039 = vmatprep.subr.bf16.mxu1 %v4789_v0  ;;  %v4055_v27 = vpack.c.bf16 %v1859_v19, %v1856_v18  ;;  %v4018_v30 = vpack.c.bf16 %v1864_v25, %v1861_v24  ;;  %v4118_v18 = vpack.c.bf16 %v2287_v12, %v2284_v11  ;;  %v2288_v19 = vld [vmem:[#allocation5 + $0x4e0] sm:$0xff]  ;;  %v2290_v25 = vld [vmem:[#allocation5 + $0x4f0] sm:$0xff]  ;;  %v2321_v11 = vld [vmem:[#allocation5 + $0x5e8] sm:$0xff] }
 0x2d8   : > { %v2320_v12 = vld [vmem:[#allocation5 + $0x5e0] sm:$0xff] }
 0x2da   : > { %3997 = vmatpush1.bf16.msra.mxu0 %v3996_v36  ;;  %4041 = vmatpush1.bf16.msra.mxu1 %v4040_v37  ;;  %v1867_v36 = vld [vmem:[#allocation5 + $0x1e8] sm:$0xff]  ;;  %v1870_v37 = vld [vmem:[#allocation5 + $0x200] sm:$0xff] }
 0x2db   : > { %3999 = vmatprep.subr.bf16.mxu0 %v3998_v33  ;;  %4042 = vmatprep.subr.bf16.mxu1 %v4789_v0  ;;  %v4058_v33 = vpack.c.bf16 %v1865_v35, %v1862_v32  ;;  %v4022_v45 = vpack.c.bf16 %v1870_v37, %v1867_v36  ;;  %v2297_v35 = vld [vmem:[#allocation5 + $0x528] sm:$0xff]  ;;  %v2299_v36 = vld [vmem:[#allocation5 + $0x538] sm:$0xff] }
 0x2dc   : > { %v2301_v37 = vld [vmem:[#allocation5 + $0x548] sm:$0xff] }
 0x2de   : > { %4001 = vmatpush1.bf16.msra.mxu0 %v4000_v47  ;;  %4044 = vmatpush1.bf16.msra.mxu1 %v4043_v48  ;;  %v1873_v47 = vld [vmem:[#allocation5 + $0x218] sm:$0xff]  ;;  %v1876_v48 = vld [vmem:[#allocation5 + $0x230] sm:$0xff] }
 0x2df   : > { %4003 = vmatprep.subr.bf16.mxu0 %v4002_v51  ;;  %4045 = vmatprep.subr.bf16.mxu1 %v4789_v0  ;;  %v4061_v51 = vpack.c.bf16 %v1871_v39, %v1868_v46  ;;  %v4026_v62 = vpack.c.bf16 %v1876_v48, %v1873_v47  ;;  %v2303_v46 = vld [vmem:[#allocation5 + $0x558] sm:$0xff]  ;;  %v2302_v39 = vld [vmem:[#allocation5 + $0x550] sm:$0xff]  ;;  %v2305_v47 = vld [vmem:[#allocation5 + $0x568] sm:$0xff] }
 0x2e0   : > { %v2307_v48 = vld [vmem:[#allocation5 + $0x578] sm:$0xff]  ;;  %v4127_v54 = vpack.c.bf16 %v2305_v47, %v2302_v39  ;;  %v2341_v39 = vld [vmem:[#allocation5 + $0x688] sm:$0xff] }
 0x2e1   : > { %v2343_v47 = vld [vmem:[#allocation5 + $0x698] sm:$0xff] }
 0x2e2   : > { %4005 = vmatpush1.bf16.msra.mxu0 %v4004_v41  ;;  %4047 = vmatpush1.bf16.msra.mxu1 %v4046_v57  ;;  %v2277_v41 = vld [vmem:[#allocation5 + $0x488] sm:$0xff]  ;;  %v2280_v57 = vld [vmem:[#allocation5 + $0x4a0] sm:$0xff] }
 0x2e3   : > { %4007 = vmatprep.subr.bf16.mxu0 %v4006_v61  ;;  %4048 = vmatprep.subr.bf16.mxu1 %v4789_v0  ;;  %v4064_v61 = vpack.c.bf16 %v1877_v21, %v1874_v23  ;;  %v4066_v63 = vpack.c.bf16 %v2280_v57, %v2277_v41  ;;  %v2309_v23 = vld [vmem:[#allocation5 + $0x588] sm:$0xff]  ;;  %v2308_v21 = vld [vmem:[#allocation5 + $0x580] sm:$0xff]  ;;  %v2311_v41 = vld [vmem:[#allocation5 + $0x598] sm:$0xff] }
 0x2e4   : > { %v2313_v57 = vld [vmem:[#allocation5 + $0x5a8] sm:$0xff] }
 0x2e6   : > { %4009 = vmatpush1.bf16.msra.mxu0 %v4008_v58  ;;  %4050 = vmatpush1.bf16.msra.mxu1 %v4049_v60  ;;  %v2283_v58 = vld [vmem:[#allocation5 + $0x4b8] sm:$0xff]  ;;  %v2286_v60 = vld [vmem:[#allocation5 + $0x4d0] sm:$0xff] }
 0x2e7   : > { %4011 = vmatprep.subr.bf16.mxu0 %v4010_v8  ;;  %4051 = vmatprep.subr.bf16.mxu1 %v4789_v0  ;;  %v4115_v8 = vpack.c.bf16 %v2281_v29, %v2278_v2  ;;  %v4070_v7 = vpack.c.bf16 %v2286_v60, %v2283_v58  ;;  %v2315_v2 = vld [vmem:[#allocation5 + $0x5b8] sm:$0xff]  ;;  %v2314_v29 = vld [vmem:[#allocation5 + $0x5b0] sm:$0xff]  ;;  %v2317_v58 = vld [vmem:[#allocation5 + $0x5c8] sm:$0xff] }
 0x2e8   : > { %v2319_v60 = vld [vmem:[#allocation5 + $0x5d8] sm:$0xff]  ;;  %v4133_v6 = vpack.c.bf16 %v2317_v58, %v2314_v29 }
 0x2ea   : > { %4013 = vmatpush1.bf16.msra.mxu0 %v4012_v13  ;;  %4053 = vmatpush1.bf16.msra.mxu1 %v4052_v14  ;;  %v5576_v13 = vrot.slane %v5533_v50, 2  ;;  %v2289_v14 = vld [vmem:[#allocation5 + $0x4e8] sm:$0xff] }
 0x2eb   : > { %4015 = vmatprep.subr.bf16.mxu0 %v4014_v16  ;;  %4054 = vmatprep.subr.bf16.mxu1 %v4789_v0  ;;  %v2351_v16 = vrot.slane %v5529_v43, 2  ;;  %v4074_v24 = vpack.c.bf16 %v2292_v15, %v2289_v14  ;;  %v2295_v43 = vld [vmem:[#allocation5 + $0x518] sm:$0xff]  ;;  %v2325_v15 = vld [vmem:[#allocation5 + $0x608] sm:$0xff] }
 0x2ec   : > { %v2323_v14 = vld [vmem:[#allocation5 + $0x5f8] sm:$0xff] }
 0x2ee   : > { %4017 = vmatpush1.bf16.msra.mxu0 %v4016_v26  ;;  %4056 = vmatpush1.bf16.msra.mxu1 %v4055_v27  ;;  %v2293_v26 = vld [vmem:[#allocation5 + $0x508] sm:$0xff]  ;;  %v2298_v27 = vld [vmem:[#allocation5 + $0x530] sm:$0xff] }
 0x2ef   : > { %4019 = vmatprep.subr.bf16.mxu0 %v4018_v30  ;;  %4057 = vmatprep.subr.bf16.mxu1 %v4789_v0  ;;  %v4121_v30 = vpack.c.bf16 %v2293_v26, %v2290_v25  ;;  %v4078_v32 = vpack.c.bf16 %v2298_v27, %v2295_v43  ;;  %v2326_v25 = vld [vmem:[#allocation5 + $0x610] sm:$0xff]  ;;  %v2329_v26 = vld [vmem:[#allocation5 + $0x628] sm:$0xff] }
 0x2f0   : > { %v2334_v43 = vld [vmem:[#allocation5 + $0x650] sm:$0xff] }
 0x2f2   : > { %4021 = vmatpush1.bf16.msra.mxu0 %v4020_v40  ;;  %4059 = vmatpush1.bf16.msra.mxu1 %v4058_v33  ;;  %v2304_v40 = vld [vmem:[#allocation5 + $0x560] sm:$0xff]  ;;  %v4080_v33 = vpack.c.bf16 %v2297_v35, %v2294_v31 }
 0x2f3   : > { %4023 = vmatprep.subr.bf16.mxu0 %v4022_v45  ;;  %4060 = vmatprep.subr.bf16.mxu1 %v4789_v0  ;;  %v2300_v45 = vld [vmem:[#allocation5 + $0x540] sm:$0xff]  ;;  %v4082_v20 = vpack.c.bf16 %v2304_v40, %v2301_v37 }
 0x2f4   : > { %v2332_v35 = vld [vmem:[#allocation5 + $0x640] sm:$0xff] }
 0x2f5   : > { %v2340_v37 = vld [vmem:[#allocation5 + $0x680] sm:$0xff] }
 0x2f6   : > { %4025 = vmatpush1.bf16.msra.mxu0 %v4024_v49  ;;  %4062 = vmatpush1.bf16.msra.mxu1 %v4061_v51  ;;  %v2310_v49 = vld [vmem:[#allocation5 + $0x590] sm:$0xff]  ;;  %v4084_v51 = vpack.c.bf16 %v2303_v46, %v2300_v45 }
 0x2f7   : > { %4027 = vmatprep.subr.bf16.mxu0 %v4026_v62  ;;  %4063 = vmatprep.subr.bf16.mxu1 %v4789_v0  ;;  %v2306_v62 = vld [vmem:[#allocation5 + $0x570] sm:$0xff]  ;;  %v4086_v55 = vpack.c.bf16 %v2310_v49, %v2307_v48 }
 0x2f8   : > { %v2338_v46 = vld [vmem:[#allocation5 + $0x670] sm:$0xff] }
 0x2f9   : > { %v2346_v48 = vld [vmem:[#allocation5 + $0x6b0] sm:$0xff] }
 0x2fa   : > { %4029 = vmatpush1.bf16.msra.mxu0 %v4028_v59  ;;  %4065 = vmatpush1.bf16.msra.mxu1 %v4064_v61  ;;  %v2316_v59 = vld [vmem:[#allocation5 + $0x5c0] sm:$0xff]  ;;  %v4088_v61 = vpack.c.bf16 %v2309_v23, %v2306_v62  ;;  %v4110_v62 = vpack.c.bf16 %v2346_v48, %v2343_v47 }
 0x2fb   : > { %4067 = vmatprep.subr.bf16.mxu0 %v4066_v63  ;;  %4114 = vmatprep.subr.bf16.mxu1 %v4789_v0  ;;  %v4130_v63 = vpack.c.bf16 %v2311_v41, %v2308_v21  ;;  %v4090_v3 = vpack.c.bf16 %v2316_v59, %v2313_v57  ;;  %v2344_v23 = vld [vmem:[#allocation5 + $0x6a0] sm:$0xff]  ;;  %v2347_v21 = vld [vmem:[#allocation5 + $0x6b8] sm:$0xff] }
 0x2fc   : > { %v4148_v57 = vpack.c.bf16 %v2347_v21, %v2344_v23 }
 0x2fd   : > { %2188 = vmatmul.mubr.f32.vlgmr.msra.gmra.mrb[8].mxu0 %v5539_v56  ;;  %2265 = vmatmul.mubr.f32.vlgmr.msra.gmra.mrb[32].mxu1 %v5539_v56  ;;  %v2291_v56 = vld [vmem:[#allocation5 + $0x4f8] sm:$0xff] }
 0x2fe   : > { %3587 = vmatprep.mubr.msk.f32.mxu0 %vm1788_vm14, %v5533_v50  ;;  %3589 = vmatprep.mubr.msk.f32.mxu1 %vm1788_vm14, %v5533_v50  ;;  %v2353_v50 = vsel %vm900_vm6, %v2351_v16, %v5576_v13  ;;  %v4076_v28 = vpack.c.bf16 %v2291_v56, %v2288_v19  ;;  %v2328_v16 = vld [vmem:[#allocation5 + $0x620] sm:$0xff]  ;;  %v2327_v56 = vld [vmem:[#allocation5 + $0x618] sm:$0xff] }
 0x2ff   : > { %4069 = vmatpush1.bf16.msra.mxu0 %v4068_v4  ;;  %4116 = vmatpush1.bf16.msra.mxu1 %v4115_v8  ;;  %v2322_v4 = vld [vmem:[#allocation5 + $0x5f0] sm:$0xff]  ;;  %v4092_v8 = vpack.c.bf16 %v2315_v2, %v2312_v22  ;;  %v2324_v19 = vld [vmem:[#allocation5 + $0x600] sm:$0xff] }
 0x300   : > { %4071 = vmatprep.subr.bf16.mxu0 %v4070_v7  ;;  %4117 = vmatprep.subr.bf16.mxu1 %v4789_v0  ;;  %v2318_v7 = vld [vmem:[#allocation5 + $0x5d0] sm:$0xff]  ;;  %v4094_v9 = vpack.c.bf16 %v2322_v4, %v2319_v60  ;;  %v4100_v27 = vpack.c.bf16 %v2327_v56, %v2324_v19  ;;  %v2518_v4 = vld [vmem:[#allocation7] sm:$0x7] }
 0x301   : > { %2194 = vmatmul.mubr.f32.gmra.mrb[10].mxu0 %v5541_v42  ;;  %2270 = vmatmul.mubr.f32.gmra.mrb[34].mxu1 %v5541_v42  ;;  %v2296_v42 = vld [vmem:[#allocation5 + $0x520] sm:$0xff] }
 0x302   : > { %3590 = vmatprep.mubr.msk.f32.mxu0 %vm1788_vm14, %v2353_v50  ;;  %3592 = vmatprep.mubr.msk.f32.mxu1 %vm1788_vm14, %v2353_v50  ;;  %v4124_v44 = vpack.c.bf16 %v2299_v36, %v2296_v42  ;;  %v2331_v50 = vld [vmem:[#allocation5 + $0x638] sm:$0xff]  ;;  %v2337_v36 = vld [vmem:[#allocation5 + $0x668] sm:$0xff] }
 0x303   : > { %4073 = vmatpush1.bf16.msra.mxu0 %v4072_v17  ;;  %4119 = vmatpush1.bf16.msra.mxu1 %v4118_v18  ;;  %v4096_v17 = vpack.c.bf16 %v2321_v11, %v2318_v7  ;;  %v4136_v18 = vpack.c.bf16 %v2323_v14, %v2320_v12  ;;  %v4102_v31 = vpack.c.bf16 %v2334_v43, %v2331_v50  ;;  %v2335_v42 = vld [vmem:[#allocation5 + $0x658] sm:$0xff] }
 0x304   : > { %4075 = vmatprep.subr.bf16.mxu0 %v4074_v24  ;;  %4120 = vmatprep.subr.bf16.mxu1 %v4789_v0  ;;  %v4098_v24 = vpack.c.bf16 %v2328_v16, %v2325_v15  ;;  %v4106_v45 = vpack.c.bf16 %v2340_v37, %v2337_v36 }
 0x307   : > { %4077 = vmatpush1.bf16.msra.mxu0 %v4076_v28  ;;  %4122 = vmatpush1.bf16.msra.mxu1 %v4121_v30  ;;  %v4139_v28 = vpack.c.bf16 %v2329_v26, %v2326_v25  ;;  %v2330_v30 = vld [vmem:[#allocation5 + $0x630] sm:$0xff] }
 0x308   : > { %4079 = vmatprep.subr.bf16.mxu0 %v4078_v32  ;;  %4123 = vmatprep.subr.bf16.mxu1 %v4789_v0  ;;  %v2333_v32 = vld [vmem:[#allocation5 + $0x648] sm:$0xff] }
 0x309   : > { %v4104_v40 = vpack.c.bf16 %v2333_v32, %v2330_v30 }
 0x30b   : > { %4081 = vmatpush1.bf16.msra.mxu0 %v4080_v33  ;;  %4125 = vmatpush1.bf16.msra.mxu1 %v4124_v44  ;;  %v4142_v33 = vpack.c.bf16 %v2335_v42, %v2332_v35  ;;  %v2336_v44 = vld [vmem:[#allocation5 + $0x660] sm:$0xff] }
 0x30c   : > { %4083 = vmatprep.subr.bf16.mxu0 %v4082_v20  ;;  %4126 = vmatprep.subr.bf16.mxu1 %v4789_v0  ;;  %v2339_v20 = vld [vmem:[#allocation5 + $0x678] sm:$0xff] }
 0x30d   : > { %v4108_v49 = vpack.c.bf16 %v2339_v20, %v2336_v44 }
 0x30f   : > { %4085 = vmatpush1.bf16.msra.mxu0 %v4084_v51  ;;  %4128 = vmatpush1.bf16.msra.mxu1 %v4127_v54  ;;  %v4145_v51 = vpack.c.bf16 %v2341_v39, %v2338_v46  ;;  %v2342_v54 = vld [vmem:[#allocation5 + $0x690] sm:$0xff] }
 0x310   : > { %4087 = vmatprep.subr.bf16.mxu0 %v4086_v55  ;;  %4129 = vmatprep.subr.bf16.mxu1 %v4789_v0  ;;  %v2345_v55 = vld [vmem:[#allocation5 + $0x6a8] sm:$0xff] }
 0x311   : > { %v4112_v41 = vpack.c.bf16 %v2345_v55, %v2342_v54 }
 0x313   : > { %4089 = vmatpush1.bf16.msra.mxu0 %v4088_v61  ;;  %4131 = vmatpush1.bf16.msra.mxu1 %v4130_v63 }
 0x314   : > { %4091 = vmatprep.subr.bf16.mxu0 %v4090_v3  ;;  %4132 = vmatprep.subr.bf16.mxu1 %v4789_v0 }
 0x317   : > { %4093 = vmatpush1.bf16.msra.mxu0 %v4092_v8  ;;  %4134 = vmatpush1.bf16.msra.mxu1 %v4133_v6  ;;  %v2523_v8 = vrot.slane %v2518_v4, %v1514_v52 }
 0x318   : > { %4095 = vmatprep.subr.bf16.mxu0 %v4094_v9  ;;  %4135 = vmatprep.subr.bf16.mxu1 %v4789_v0 }
 0x31b   : > { %4097 = vmatpush1.bf16.msra.mxu0 %v4096_v17  ;;  %4137 = vmatpush1.bf16.msra.mxu1 %v4136_v18 }
 0x31c   : > { %4099 = vmatprep.subr.bf16.mxu0 %v4098_v24  ;;  %4138 = vmatprep.subr.bf16.mxu1 %v4789_v0 }
 0x31f   : > { %4101 = vmatpush1.bf16.msra.mxu0 %v4100_v27  ;;  %4140 = vmatpush1.bf16.msra.mxu1 %v4139_v28 }
 0x320   : > { %4103 = vmatprep.subr.bf16.mxu0 %v4102_v31  ;;  %4141 = vmatprep.subr.bf16.mxu1 %v4789_v0 }
 0x323   : > { %4105 = vmatpush1.bf16.msra.mxu0 %v4104_v40  ;;  %4143 = vmatpush1.bf16.msra.mxu1 %v4142_v33 }
 0x324   : > { %4107 = vmatprep.subr.bf16.mxu0 %v4106_v45  ;;  %4144 = vmatprep.subr.bf16.mxu1 %v4789_v0 }
 0x327   : > { %4109 = vmatpush1.bf16.msra.mxu0 %v4108_v49  ;;  %4146 = vmatpush1.bf16.msra.mxu1 %v4145_v51 }
 0x328   : > { %4111 = vmatprep.subr.bf16.mxu0 %v4110_v62  ;;  %4147 = vmatprep.subr.bf16.mxu1 %v4789_v0 }
 0x32b   : > { %4113 = vmatpush1.bf16.msra.mxu0 %v4112_v41  ;;  %4149 = vmatpush1.bf16.msra.mxu1 %v4148_v57 }
 0x32c   : > { %4180 = vmatprep.subr.bf16.mxu1 %v4789_v0  ;;  %4150 = vmatprep.subr.bf16.mxu0 %v4789_v0 }
 0x32e   : > { %2425 = vmatmul.mubr.f32.vlgmr.msra.gmra.mrb[8].mxu0 %v5555_v10  ;;  %2502 = vmatmul.mubr.f32.vlgmr.msra.gmra.mrb[36].mxu1 %v5555_v10 }
 0x32f   : > { %3591 = vmatprep.mubr.msk.f32.mxu0 %vm1788_vm14, %v5576_v13  ;;  %3593 = vmatprep.mubr.msk.f32.mxu1 %vm1788_vm14, %v5576_v13  ;;  %v2527_v13 = vrot.slane %v2518_v4, %v1518_v53 }
 0x332   : > { %2431 = vmatmul.mubr.f32.gmra.mrb[10].mxu0 %v5550_v5  ;;  %2507 = vmatmul.mubr.f32.gmra.mrb[38].mxu1 %v5550_v5  ;;  %v2531_v5 = vrot.slane %v2518_v4, %v1522_v38 }
 0x3a0   : > { %v2110_v59 = vpop.f32.mrb[28].mxu1 }
 0x3a1   : > { %v2112_v61 = vpop.f32.mrb[29].mxu1 }
 0x3a4   : > { %v2115_v63 = vpop.f32.mrb[30].mxu1 }
 0x3a5   : > { %v2117_v22 = vpop.f32.mrb[31].mxu1 }
 0x3d0   : > { %v2266_v3 = vpop.f32.mrb[32].mxu1 }
 0x3d1   : > { %v2267_v2 = vadd.f32 %v2266_v3, %v2110_v59  ;;  %v2268_v29 = vpop.f32.mrb[33].mxu1 }
 0x3d4   : > { %v2271_v58 = vpop.f32.mrb[34].mxu1 }
 0x3d5   : > { %v2272_v60 = vadd.f32 %v2271_v58, %v2115_v63  ;;  %v2273_v10 = vpop.f32.mrb[35].mxu1  ;;  %v2642_v58 = vld [vmem:[#allocation8] sm:$0xff] }
 0x3d6   : > { %v2663_v10 = vld [vmem:[#allocation8 + $0xa0] sm:$0xff] }
 0x401   : > { %v2426_v6 = vpop.f32.mrb[8].mxu0  ;;  %v2503_v7 = vpop.f32.mrb[36].mxu1 }
 0x402   : > { %v2535_v9 = vadd.f32 %v2523_v8, %v2426_v6  ;;  %v2514_v11 = vadd.f32 %v2503_v7, %v2267_v2  ;;  %v2428_v12 = vpop.f32.mrb[9].mxu0  ;;  %v2505_v14 = vpop.f32.mrb[37].mxu1  ;;  %v2644_v6 = vld [vmem:[#allocation8 + $0x10] sm:$0xff]  ;;  %v2645_v7 = vld [vmem:[#allocation8 + $0x18] sm:$0xff] }
 0x403   : > { %v2536_v15 = vadd.f32 %v2527_v13, %v2428_v12  ;;  %v2665_v12 = vld [vmem:[#allocation8 + $0xb0] sm:$0xff]  ;;  %v2666_v14 = vld [vmem:[#allocation8 + $0xb8] sm:$0xff] }
 0x404   : > { %v2541_v16 = vmax.f32 %v2535_v9, 0.0  ;;  %v2537_v17 = vadd.f32 %v2531_v5, %v2514_v11 }
 0x405   : > { %v2542_v18 = vmax.f32 %v2536_v15, 0.0  ;;  %v2432_v19 = vpop.f32.mrb[10].mxu0  ;;  %v2508_v24 = vpop.f32.mrb[38].mxu1 }
 0x406   : > { %v2550_v56 = vrot.slane %v2541_v16, 1  ;;  %v2543_v52 = vmax.f32 %v2537_v17, 0.0  ;;  %v2538_v25 = vadd.f32 %v2523_v8, %v2432_v19  ;;  %v2517_v26 = vadd.f32 %v2508_v24, %v2272_v60  ;;  %v2434_v53 = vpop.f32.mrb[11].mxu0  ;;  %v2510_v50 = vpop.f32.mrb[39].mxu1  ;;  %v2643_v60 = vld [vmem:[#allocation8 + $0x8] sm:$0xff]  ;;  %v2646_v17 = vld [vmem:[#allocation8 + $0x20] sm:$0xff] }
 0x407   : > { %v2551_v34 = vrot.slane %v2542_v18, 1  ;;  %v2539_v38 = vadd.f32 %v2527_v13, %v2434_v53  ;;  %v4181_v13 = vpack.c.bf16 %v2643_v60, %v2642_v58  ;;  %v4154_v19 = vpack.c.bf16 %v2666_v14, %v2665_v12  ;;  %v2667_v24 = vld [vmem:[#allocation8 + $0xc0] sm:$0xff]  ;;  %v2669_v50 = vld [vmem:[#allocation8 + $0xd0] sm:$0xff]  ;;  %v2682_v60 = vld [vmem:[#allocation8 + $0x138] sm:$0xff] }
 0x408   : > { %v2556_v43 = vmax.f32 %v2541_v16, %v2550_v56  ;;  %v2552_v27 = vrot.slane %v2543_v52, 1  ;;  %v2544_v28 = vmax.f32 %v2538_v25, 0.0  ;;  %v2540_v30 = vadd.f32 %v2531_v5, %v2517_v26  ;;  %v2664_v5 = vld [vmem:[#allocation8 + $0xa8] sm:$0xff]  ;;  %v2648_v25 = vld [vmem:[#allocation8 + $0x30] sm:$0xff]  ;;  %v2649_v26 = vld [vmem:[#allocation8 + $0x38] sm:$0xff] }
 0x409   : > { %v2557_v31 = vmax.f32 %v2542_v18, %v2551_v34  ;;  %v2545_v32 = vmax.f32 %v2539_v38, 0.0  ;;  %v4151_v11 = vpack.c.bf16 %v2664_v5, %v2663_v10  ;;  %4182 = vmatpush1.bf16.msra.mxu1 %v4181_v13  ;;  %v4184_v16 = vpack.c.bf16 %v2645_v7, %v2644_v6  ;;  %v2647_v18 = vld [vmem:[#allocation8 + $0x28] sm:$0xff]  ;;  %v2670_v34 = vld [vmem:[#allocation8 + $0xd8] sm:$0xff] }
 0x40a   : > { %v2574_v35 = vrot.slane %v2556_v43, 1  ;;  %v2580_v42 = vrot.slane %v2556_v43, 2  ;;  %v2586_v36 = vrot.slane %v2556_v43, 3  ;;  %v2558_v37 = vmax.f32 %v2543_v52, %v2552_v27  ;;  %4183 = vmatprep.subr.bf16.mxu1 %v4789_v0  ;;  %v2668_v56 = vld [vmem:[#allocation8 + $0xc8] sm:$0xff] }
 0x40b   : > { %v2575_v40 = vrot.slane %v2557_v31, 1  ;;  %v2581_v33 = vrot.slane %v2557_v31, 2  ;;  %v2587_v44 = vrot.slane %v2557_v31, 3  ;;  %v2562_v45 = vrot.slane %v2544_v28, 1  ;;  %4152 = vmatpush1.bf16.msra.mxu0 %v4151_v11  ;;  %v2651_v27 = vld [vmem:[#allocation8 + $0x48] sm:$0xff] }
 0x40c   : > { %v2601_v20 = vsel %vm1650_vm8, %v2556_v43, %v2574_v35  ;;  %v2546_v46 = vmax.f32 %v2540_v30, 0.0  ;;  %v2563_v39 = vrot.slane %v2545_v32, 1  ;;  %v2576_v47 = vrot.slane %v2558_v37, 1  ;;  %4153 = vmatprep.subr.bf16.mxu0 %v4789_v0  ;;  %v2650_v43 = vld [vmem:[#allocation8 + $0x40] sm:$0xff]  ;;  %v2652_v35 = vld [vmem:[#allocation8 + $0x50] sm:$0xff] }
 0x40d   : > { %v2602_v48 = vsel %vm1650_vm8, %v2557_v31, %v2575_v40  ;;  %v2568_v49 = vmax.f32 %v2544_v28, %v2562_v45  ;;  %v2582_v51 = vrot.slane %v2558_v37, 2  ;;  %v2588_v54 = vrot.slane %v2558_v37, 3  ;;  %4185 = vmatpush1.bf16.msra.mxu1 %v4184_v16  ;;  %v2671_v30 = vld [vmem:[#allocation8 + $0xe0] sm:$0xff]  ;;  %v2672_v31 = vld [vmem:[#allocation8 + $0xe8] sm:$0xff]  ;;  %v2674_v40 = vld [vmem:[#allocation8 + $0xf8] sm:$0xff] }
 0x40e   : > { %v2564_v62 = vrot.slane %v2546_v46, 1  ;;  %v2569_v55 = vmax.f32 %v2545_v32, %v2563_v39  ;;  %v2603_v23 = vsel %vm1650_vm8, %v2558_v37, %v2576_v47  ;;  %v2604_v21 = vsel %vm1654_vm9, %v2601_v20, %v2580_v42  ;;  %4186 = vmatprep.subr.bf16.mxu1 %v4789_v0  ;;  %v2653_v42 = vld [vmem:[#allocation8 + $0x58] sm:$0xff]  ;;  %v2673_v37 = vld [vmem:[#allocation8 + $0xf0] sm:$0xff]  ;;  %v2655_v45 = vld [vmem:[#allocation8 + $0x68] sm:$0xff] }
 0x40f   : > { %v2595_v41 = vrot.slane %v2568_v49, 4  ;;  %v2606_v57 = vsel %vm1654_vm9, %v2603_v23, %v2582_v51  ;;  %v2605_v59 = vsel %vm1654_vm9, %v2602_v48, %v2581_v33  ;;  %v2607_v61 = vsel %vm1658_vm10, %v2604_v21, %v2586_v36  ;;  %4155 = vmatpush1.bf16.msra.mxu0 %v4154_v19  ;;  %v2676_v39 = vld [vmem:[#allocation8 + $0x108] sm:$0xff]  ;;  %v2656_v48 = vld [vmem:[#allocation8 + $0x70] sm:$0xff]  ;;  %v2657_v49 = vld [vmem:[#allocation8 + $0x78] sm:$0xff] }
 0x410   : > { %v2570_v63 = vmax.f32 %v2546_v46, %v2564_v62  ;;  %v2596_v22 = vrot.slane %v2569_v55, 4  ;;  %v2608_v3 = vsel %vm1658_vm10, %v2605_v59, %v2587_v44  ;;  %v2609_v2 = vsel %vm1658_vm10, %v2606_v57, %v2588_v54  ;;  %4156 = vmatprep.subr.bf16.mxu0 %v4789_v0  ;;  %v2654_v44 = vld [vmem:[#allocation8 + $0x60] sm:$0xff]  ;;  %v2677_v54 = vld [vmem:[#allocation8 + $0x110] sm:$0xff]  ;;  %v2678_v62 = vld [vmem:[#allocation8 + $0x118] sm:$0xff] }
 0x411   : > { %v5628_v29 = vsel %vm536_vm1, %v2607_v61, %v2595_v41  ;;  %v4187_v52 = vpack.c.bf16 %v2647_v18, %v2646_v17  ;;  %v4157_v53 = vpack.c.bf16 %v2668_v56, %v2667_v24  ;;  %v4190_v38 = vpack.c.bf16 %v2649_v26, %v2648_v25  ;;  %v2675_v46 = vld [vmem:[#allocation8 + $0x100] sm:$0xff]  ;;  %v2659_v21 = vld [vmem:[#allocation8 + $0x88] sm:$0xff]  ;;  %v2933_v25 = vld [vmem:[#allocation8 + $0x1f8] sm:$0xff] }
 0x412   : > { %v2597_v4 = vrot.slane %v2570_v63, 4  ;;  %v5631_v8 = vsel %vm536_vm1, %v2608_v3, %v2596_v22  ;;  %v4160_v28 = vpack.c.bf16 %v2670_v34, %v2669_v50  ;;  %v4193_v32 = vpack.c.bf16 %v2651_v27, %v2650_v43  ;;  %v2658_v23 = vld [vmem:[#allocation8 + $0x80] sm:$0xff]  ;;  %v2680_v59 = vld [vmem:[#allocation8 + $0x128] sm:$0xff]  ;;  %v2660_v22 = vld [vmem:[#allocation8 + $0x90] sm:$0xff] }
 0x413   : > { %v4527_v9 = vpack.i.bf16 %v5631_v8, %v5628_v29  ;;  %4188 = vmatpush1.bf16.msra.mxu1 %v4187_v52  ;;  %4158 = vmatpush1.bf16.msra.mxu0 %v4157_v53  ;;  %v4163_v36 = vpack.c.bf16 %v2672_v31, %v2671_v30  ;;  %v4196_v33 = vpack.c.bf16 %v2653_v42, %v2652_v35  ;;  %v2679_v57 = vld [vmem:[#allocation8 + $0x120] sm:$0xff]  ;;  %v2661_v3 = vld [vmem:[#allocation8 + $0x98] sm:$0xff]  ;;  %v2931_v16 = vld [vmem:[#allocation8 + $0x1e8] sm:$0xff] }
 0x414   : > { %v5636_v15 = vsel %vm536_vm1, %v2609_v2, %v2597_v4  ;;  %4189 = vmatprep.subr.bf16.mxu1 %v4789_v0  ;;  %4159 = vmatprep.subr.bf16.mxu0 %v4789_v0  ;;  %v4166_v20 = vpack.c.bf16 %v2674_v40, %v2673_v37  ;;  %v4199_v47 = vpack.c.bf16 %v2655_v45, %v2654_v44  ;;  %v2681_v2 = vld [vmem:[#allocation8 + $0x130] sm:$0xff]  ;;  %v2834_v18 = vld [vmem:[#allocation8 + $0x148] sm:$0xff]  ;;  %v2836_v43 = vld [vmem:[#allocation8 + $0x158] sm:$0xff] }
 0x415   : > { %2624 = vrot.lane.b32.xlu0 %v5636_v15, %s4794_s29  ;;  %4528 = vrot.lane.b32.xlu1 %v4527_v9, %s4794_s29  ;;  %v4169_v51 = vpack.c.bf16 %v2676_v39, %v2675_v46  ;;  %v4202_v55 = vpack.c.bf16 %v2657_v49, %v2656_v48  ;;  %v4172_v41 = vpack.c.bf16 %v2678_v62, %v2677_v54  ;;  %v2932_v52 = vld [vmem:[#allocation8 + $0x1f0] sm:$0xff]  ;;  %v2934_v30 = vld [vmem:[#allocation8 + $0x200] sm:$0xff]  ;;  %v2935_v31 = vld [vmem:[#allocation8 + $0x208] sm:$0xff] }
 0x416   : > { %v4205_v61 = vpack.c.bf16 %v2659_v21, %v2658_v23  ;;  %v4175_v63 = vpack.c.bf16 %v2680_v59, %v2679_v57  ;;  %v4208_v58 = vpack.c.bf16 %v2661_v3, %v2660_v22  ;;  %v4178_v10 = vpack.c.bf16 %v2682_v60, %v2681_v2  ;;  %v2837_v35 = vld [vmem:[#allocation8 + $0x160] sm:$0xff]  ;;  %v2838_v42 = vld [vmem:[#allocation8 + $0x168] sm:$0xff]  ;;  %v2936_v37 = vld [vmem:[#allocation8 + $0x210] sm:$0xff] }
 0x417   : > { %4191 = vmatpush1.bf16.msra.mxu1 %v4190_v38  ;;  %4161 = vmatpush1.bf16.msra.mxu0 %v4160_v28  ;;  %v2835_v38 = vld [vmem:[#allocation8 + $0x150] sm:$0xff]  ;;  %v4244_v28 = vpack.c.bf16 %v2933_v25, %v2932_v52  ;;  %v2937_v40 = vld [vmem:[#allocation8 + $0x218] sm:$0xff]  ;;  %v2938_v46 = vld [vmem:[#allocation8 + $0x220] sm:$0xff] }
 0x418   : > { %4192 = vmatprep.subr.bf16.mxu1 %v4789_v0  ;;  %4162 = vmatprep.subr.bf16.mxu0 %v4789_v0  ;;  %v2839_v44 = vld [vmem:[#allocation8 + $0x170] sm:$0xff]  ;;  %v2840_v45 = vld [vmem:[#allocation8 + $0x178] sm:$0xff]  ;;  %v2939_v39 = vld [vmem:[#allocation8 + $0x228] sm:$0xff] }
 0x419   : > { %v2841_v48 = vld [vmem:[#allocation8 + $0x180] sm:$0xff]  ;;  %v2842_v49 = vld [vmem:[#allocation8 + $0x188] sm:$0xff]  ;;  %v2940_v54 = vld [vmem:[#allocation8 + $0x230] sm:$0xff] }
 0x41a   : > { %v2941_v62 = vld [vmem:[#allocation8 + $0x238] sm:$0xff]  ;;  %v2843_v23 = vld [vmem:[#allocation8 + $0x190] sm:$0xff]  ;;  %v2942_v57 = vld [vmem:[#allocation8 + $0x240] sm:$0xff] }
 0x41b   : > { %4194 = vmatpush1.bf16.msra.mxu1 %v4193_v32  ;;  %4164 = vmatpush1.bf16.msra.mxu0 %v4163_v36  ;;  %v4214_v32 = vpack.c.bf16 %v2836_v43, %v2835_v38  ;;  %v4247_v36 = vpack.c.bf16 %v2935_v31, %v2934_v30  ;;  %v2844_v21 = vld [vmem:[#allocation8 + $0x198] sm:$0xff]  ;;  %v2943_v59 = vld [vmem:[#allocation8 + $0x248] sm:$0xff]  ;;  %v2944_v2 = vld [vmem:[#allocation8 + $0x250] sm:$0xff] }
 0x41c   : > { %4195 = vmatprep.subr.bf16.mxu1 %v4789_v0  ;;  %4165 = vmatprep.subr.bf16.mxu0 %v4789_v0  ;;  %v2846_v22 = vld [vmem:[#allocation8 + $0x1a8] sm:$0xff]  ;;  %v4259_v3 = vpack.c.bf16 %v2943_v59, %v2942_v57  ;;  %v3033_v31 = vld [vmem:[#allocation8 + $0x2b0] sm:$0xff] }
 0x41d   : > { %v3128_v57 = vld [vmem:[%s5906_s7 + $0x10] sm:$0xff] }
 0x41f   : > { %4197 = vmatpush1.bf16.msra.mxu1 %v4196_v33  ;;  %4167 = vmatpush1.bf16.msra.mxu0 %v4166_v20  ;;  %v4217_v33 = vpack.c.bf16 %v2838_v42, %v2837_v35  ;;  %v4250_v20 = vpack.c.bf16 %v2937_v40, %v2936_v37  ;;  %v3035_v35 = vld [vmem:[#allocation8 + $0x2c0] sm:$0xff]  ;;  %v3036_v42 = vld [vmem:[#allocation8 + $0x2c8] sm:$0xff]  ;;  %v3037_v37 = vld [vmem:[#allocation8 + $0x2d0] sm:$0xff] }
 0x420   : > { %4198 = vmatprep.subr.bf16.mxu1 %v4789_v0  ;;  %4168 = vmatprep.subr.bf16.mxu0 %v4789_v0  ;;  %v3038_v40 = vld [vmem:[#allocation8 + $0x2d8] sm:$0xff] }
 0x423   : > { %4200 = vmatpush1.bf16.msra.mxu1 %v4199_v47  ;;  %4170 = vmatpush1.bf16.msra.mxu0 %v4169_v51  ;;  %v4220_v47 = vpack.c.bf16 %v2840_v45, %v2839_v44  ;;  %v4253_v51 = vpack.c.bf16 %v2939_v39, %v2938_v46  ;;  %v3039_v44 = vld [vmem:[#allocation8 + $0x2e0] sm:$0xff]  ;;  %v3040_v45 = vld [vmem:[#allocation8 + $0x2e8] sm:$0xff]  ;;  %v3041_v46 = vld [vmem:[#allocation8 + $0x2f0] sm:$0xff] }
 0x424   : > { %4201 = vmatprep.subr.bf16.mxu1 %v4789_v0  ;;  %4171 = vmatprep.subr.bf16.mxu0 %v4789_v0  ;;  %v3042_v39 = vld [vmem:[#allocation8 + $0x2f8] sm:$0xff] }
 0x427   : > { %4203 = vmatpush1.bf16.msra.mxu1 %v4202_v55  ;;  %4173 = vmatpush1.bf16.msra.mxu0 %v4172_v41  ;;  %v4223_v55 = vpack.c.bf16 %v2842_v49, %v2841_v48  ;;  %v4256_v41 = vpack.c.bf16 %v2941_v62, %v2940_v54  ;;  %v3043_v48 = vld [vmem:[#allocation8 + $0x300] sm:$0xff]  ;;  %v3044_v49 = vld [vmem:[#allocation8 + $0x308] sm:$0xff]  ;;  %v3045_v54 = vld [vmem:[#allocation8 + $0x310] sm:$0xff] }
 0x428   : > { %4204 = vmatprep.subr.bf16.mxu1 %v4789_v0  ;;  %4174 = vmatprep.subr.bf16.mxu0 %v4789_v0  ;;  %v3046_v62 = vld [vmem:[#allocation8 + $0x318] sm:$0xff] }
 0x42b   : > { %4206 = vmatpush1.bf16.msra.mxu1 %v4205_v61  ;;  %4176 = vmatpush1.bf16.msra.mxu0 %v4175_v63  ;;  %v4226_v61 = vpack.c.bf16 %v2844_v21, %v2843_v23  ;;  %v2845_v63 = vld [vmem:[#allocation8 + $0x1a0] sm:$0xff]  ;;  %v3126_v21 = vld [vmem:[%s5906_s7] sm:$0xff] }
 0x42c   : > { %4207 = vmatprep.subr.bf16.mxu1 %v4789_v0  ;;  %4177 = vmatprep.subr.bf16.mxu0 %v4789_v0  ;;  %v4229_v60 = vpack.c.bf16 %v2846_v22, %v2845_v63  ;;  %v3130_v63 = vld [vmem:[%s5906_s7 + $0x20] sm:$0xff]  ;;  %v3131_v22 = vld [vmem:[%s5906_s7 + $0x28] sm:$0xff] }
 0x42f   : > { %4209 = vmatpush1.bf16.msra.mxu1 %v4208_v58  ;;  %4179 = vmatpush1.bf16.msra.mxu0 %v4178_v10  ;;  %v2945_v58 = vld [vmem:[#allocation8 + $0x258] sm:$0xff]  ;;  %v2847_v10 = vld [vmem:[#allocation8 + $0x1b0] sm:$0xff] }
 0x430   : > { %4240 = vmatprep.subr.bf16.mxu1 %v4789_v0  ;;  %4210 = vmatprep.subr.bf16.mxu0 %v4789_v0 }
 0x487   : > { %v2625_v4 = vpop.permute.xlu0 %2624  ;;  %v4529_v13 = vpop.permute.xlu1 %4528 }
 0x488   : > { %v5662_v5 = vmax.f32 %v5636_v15, %v2625_v4  ;;  %v4531_v6 = vunpack.i.h.bf16 %v4529_v13  ;;  %v4530_v7 = vunpack.i.l.bf16 %v4529_v13  ;;  %v2930_v15 = vld [vmem:[#allocation8 + $0x1e0] sm:$0xff]  ;;  %v2848_v4 = vld [vmem:[#allocation8 + $0x1b8] sm:$0xff]  ;;  %v4262_v13 = vpack.c.bf16 %v2945_v58, %v2944_v2  ;;  %v3132_v2 = vld [vmem:[%s5906_s7 + $0x30] sm:$0xff] }
 0x489   : > { %v4241_v19 = vpack.c.bf16 %v2931_v16, %v2930_v15  ;;  %v2948_v15 = vld [vmem:[#allocation8 + $0x270] sm:$0xff]  ;;  %v2949_v16 = vld [vmem:[#allocation8 + $0x278] sm:$0xff] }
 0x48a   : > { %v2622_v9 = vmax.f32 %v5631_v8, %v4531_v6  ;;  %v2617_v11 = vmax.f32 %v5628_v29, %v4530_v7  ;;  %3595 = vmatprep.mubr.msk.f32.mxu1 %vm1782_vm12, %v5662_v5  ;;  %v2686_v12 = vrot.slane %v5662_v5, 1  ;;  %v2833_v29 = vld [vmem:[#allocation8 + $0x140] sm:$0xff]  ;;  %v2951_v53 = vrot.slane %v5662_v5, 3  ;;  %v2947_v7 = vld [vmem:[#allocation8 + $0x268] sm:$0xff]  ;;  %v3133_v58 = vld [vmem:[%s5906_s7 + $0x38] sm:$0xff] }
 0x48b   : > { %v4211_v50 = vpack.c.bf16 %v2834_v18, %v2833_v29  ;;  %v2854_v27 = vrot.slane %v5662_v5, 2  ;;  %v2946_v6 = vld [vmem:[#allocation8 + $0x260] sm:$0xff]  ;;  %v2852_v29 = vld [vmem:[#allocation8 + $0x1d8] sm:$0xff]  ;;  %v4268_v18 = vpack.c.bf16 %v2949_v16, %v2948_v15  ;;  %v3048_v38 = vrot.slane %v5662_v5, 4  ;;  %v3140_v15 = vld [vmem:[%s5906_s7 + $0x70] sm:$0xff] }
 0x48c   : > { %3594 = vmatprep.mubr.msk.f32.mxu0 %vm1782_vm12, %v2686_v12  ;;  %2633 = vrot.lane.b32.xlu0 %v2622_v9, %s4796_s19  ;;  %v2850_v12 = vld [vmem:[#allocation8 + $0x1c8] sm:$0xff] }
 0x48d   : > { %2629 = vrot.lane.b32.xlu1 %v2617_v11, %s4794_s29  ;;  %s3340_s29 = sshll.u32 %s482_s11, 4  ;;  %s3341_s29 = int_to_ptr.vmem [resolvable:$true] %s3340_s29 }
 0x48e   : > { %s4672_s19 = scalar_lea.vmem %s3341_s29, 16 }
 0x48f   : > { %p4673_p2 = scmp.ne.s32.totalorder %s3341_s29, %s4672_s19 }
 0x491   : > { %2636 = vrot.lane.b32.xlu1 %v2622_v9, %s4798_s17  ;;  %v4232_v9 = vpack.c.bf16 %v2848_v4, %v2847_v10  ;;  %v3134_v10 = vld [vmem:[%s5906_s7 + $0x40] sm:$0xff]  ;;  %v3135_v4 = vld [vmem:[%s5906_s7 + $0x48] sm:$0xff]  ;;  %p4674_p4 = pnand %p4673_p2, %p5945_p3  ;;  %s4676_s17 = sshll.u32 %s4800_s26, 4  ;;  %s4677_s17 = int_to_ptr.vmem [resolvable:$false] %s4676_s17 }
 0x492   : > { %s4678_s24 = scalar_lea.vmem %s4677_s17, 32  ;;  %p4679_p8 = scmp.lt.s32.totalorder %s3341_s29, %s4677_s17 }
 0x493   : > { %p4675_p7 = pneg %p4674_p4  ;;  %p4680_p11 = scmp.lt.s32.totalorder %s4678_s24, %s4672_s19 }
 0x495   : > { %p4681_p13 = por %p4680_p11, %p4679_p8 }
 0x497   : > { %p4682_p5 = pnand %p4681_p13, %p4675_p7 }
 0x4fe   : > { %v2634_v17 = vpop.permute.xlu0 %2633 }
 0x4ff   : > { %v2630_v14 = vpop.permute.xlu1 %2629 }
 0x500   : > { %v2639_v8 = vsel %vm1782_vm12, %v2617_v11, %v2630_v14  ;;  %v2849_v11 = vld [vmem:[#allocation8 + $0x1c0] sm:$0xff]  ;;  %v4265_v14 = vpack.c.bf16 %v2947_v7, %v2946_v6  ;;  %v3136_v6 = vld [vmem:[%s5906_s7 + $0x50] sm:$0xff]  ;;  %v3137_v7 = vld [vmem:[%s5906_s7 + $0x58] sm:$0xff] }
 0x501   : > { %v2640_v24 = vsel %vm1788_vm14, %v2639_v8, %v2634_v17  ;;  %v4235_v17 = vpack.c.bf16 %v2850_v12, %v2849_v11  ;;  %v2851_v8 = vld [vmem:[#allocation8 + $0x1d0] sm:$0xff]  ;;  %v3138_v11 = vld [vmem:[%s5906_s7 + $0x60] sm:$0xff]  ;;  %v3139_v12 = vld [vmem:[%s5906_s7 + $0x68] sm:$0xff] }
 0x503   : > { %v2637_v56 = vpop.permute.xlu1 %2636 }
 0x504   : > { %v5676_v26 = vsel %vm1794_vm2, %v2640_v24, %v2637_v56  ;;  %v3027_v24 = vld [vmem:[#allocation8 + $0x280] sm:$0xff]  ;;  %v3028_v56 = vld [vmem:[#allocation8 + $0x288] sm:$0xff] }
 0x505   : > { %v2685_v34 = vrot.slane %v5676_v26, 1  ;;  %2827 = vmatmul.mubr.f32.vlgmr.msra.gmra.mrb[40].mxu1 %v5676_v26  ;;  %v2950_v52 = vrot.slane %v5676_v26, 3  ;;  %v4271_v25 = vpack.c.bf16 %v3028_v56, %v3027_v24  ;;  %v3047_v23 = vrot.slane %v5676_v26, 4 }
 0x506   : > { %4242 = vmatpush1.bf16.msra.mxu1 %v4241_v19  ;;  %3597 = vmatprep.mubr.msk.f32.mxu1 %vm1782_vm12, %v2951_v53  ;;  %v4238_v19 = vpack.c.bf16 %v2852_v29, %v2851_v8  ;;  %v2853_v53 = vrot.slane %v5676_v26, 2 }
 0x507   : > { %2755 = vmatmul.mubr.f32.vlgmr.msra.gmra.mrb[12].mxu0 %v2685_v34  ;;  %4243 = vmatprep.subr.bf16.mxu1 %v4789_v0  ;;  %v3030_v34 = vld [vmem:[#allocation8 + $0x298] sm:$0xff] }
 0x508   : > { %4212 = vmatpush1.bf16.msra.mxu0 %v4211_v50  ;;  %3596 = vmatprep.mubr.msk.f32.mxu0 %vm1782_vm12, %v2854_v27  ;;  %v3029_v50 = vld [vmem:[#allocation8 + $0x290] sm:$0xff]  ;;  %v3031_v27 = vld [vmem:[#allocation8 + $0x2a0] sm:$0xff] }
 0x509   : > { %4213 = vmatprep.subr.bf16.mxu0 %v4789_v0  ;;  %v4274_v43 = vpack.c.bf16 %v3030_v34, %v3029_v50  ;;  %v3123_v34 = vld [vmem:[%s5905_s6] sm:$0x1] }
 0x50a   : > { %4245 = vmatpush1.bf16.msra.mxu1 %v4244_v28  ;;  %v3032_v28 = vld [vmem:[#allocation8 + $0x2a8] sm:$0xff] }
 0x50b   : > { %4246 = vmatprep.subr.bf16.mxu1 %v4789_v0  ;;  %v4277_v30 = vpack.c.bf16 %v3032_v28, %v3031_v27  ;;  %v3217_v27 = vld [vmem:[%s5908_s9] sm:$0xff]  ;;  %v3218_v28 = vld [vmem:[%s5908_s9 + $0x8] sm:$0xff] }
 0x50c   : > { %4215 = vmatpush1.bf16.msra.mxu0 %v4214_v32  ;;  %v3034_v32 = vld [vmem:[#allocation8 + $0x2b8] sm:$0xff] }
 0x50d   : > { %4216 = vmatprep.subr.bf16.mxu0 %v4789_v0  ;;  %v4280_v5 = vpack.c.bf16 %v3034_v32, %v3033_v31  ;;  %v4322_v31 = vpack.c.bf16 %v3218_v28, %v3217_v27 }
 0x50e   : > { %4248 = vmatpush1.bf16.msra.mxu1 %v4247_v36  ;;  %v4283_v36 = vpack.c.bf16 %v3036_v42, %v3035_v35  ;;  %v3220_v35 = vld [vmem:[%s5908_s9 + $0x18] sm:$0xff] }
 0x50f   : > { %4249 = vmatprep.subr.bf16.mxu1 %v4789_v0 }
 0x510   : > { %4218 = vmatpush1.bf16.msra.mxu0 %v4217_v33  ;;  %v4286_v33 = vpack.c.bf16 %v3038_v40, %v3037_v37  ;;  %v3222_v37 = vld [vmem:[%s5908_s9 + $0x28] sm:$0xff] }
 0x511   : > { %4219 = vmatprep.subr.bf16.mxu0 %v4789_v0 }
 0x512   : > { %4251 = vmatpush1.bf16.msra.mxu1 %v4250_v20  ;;  %v4289_v20 = vpack.c.bf16 %v3040_v45, %v3039_v44  ;;  %v3224_v44 = vld [vmem:[%s5908_s9 + $0x38] sm:$0xff] }
 0x513   : > { %4252 = vmatprep.subr.bf16.mxu1 %v4789_v0 }
 0x514   : > { %4221 = vmatpush1.bf16.msra.mxu0 %v4220_v47  ;;  %v4292_v47 = vpack.c.bf16 %v3042_v39, %v3041_v46  ;;  %v3226_v46 = vld [vmem:[%s5908_s9 + $0x48] sm:$0xff] }
 0x515   : > { %4222 = vmatprep.subr.bf16.mxu0 %v4789_v0 }
 0x516   : > { %4254 = vmatpush1.bf16.msra.mxu1 %v4253_v51  ;;  %v4295_v51 = vpack.c.bf16 %v3044_v49, %v3043_v48 }
 0x517   : > { %4255 = vmatprep.subr.bf16.mxu1 %v4789_v0 }
 0x518   : > { %4224 = vmatpush1.bf16.msra.mxu0 %v4223_v55  ;;  %v4298_v55 = vpack.c.bf16 %v3046_v62, %v3045_v54 }
 0x519   : > { %4225 = vmatprep.subr.bf16.mxu0 %v4789_v0 }
 0x51a   : > { %4257 = vmatpush1.bf16.msra.mxu1 %v4256_v41  ;;  %v3127_v41 = vld [vmem:[%s5906_s7 + $0x8] sm:$0xff] }
 0x51b   : > { %4258 = vmatprep.subr.bf16.mxu1 %v4789_v0  ;;  %v4301_v59 = vpack.c.bf16 %v3127_v41, %v3126_v21 }
 0x51c   : > { %4227 = vmatpush1.bf16.msra.mxu0 %v4226_v61  ;;  %v3129_v61 = vld [vmem:[%s5906_s7 + $0x18] sm:$0xff] }
 0x51d   : > { %4228 = vmatprep.subr.bf16.mxu0 %v4789_v0  ;;  %v4304_v26 = vpack.c.bf16 %v3129_v61, %v3128_v57 }
 0x51e   : > { %4260 = vmatpush1.bf16.msra.mxu1 %v4259_v3  ;;  %v4307_v3 = vpack.c.bf16 %v3131_v22, %v3130_v63 }
 0x51f   : > { %4261 = vmatprep.subr.bf16.mxu1 %v4789_v0 }
 0x520   : > { %4230 = vmatpush1.bf16.msra.mxu0 %v4229_v60  ;;  %v4310_v60 = vpack.c.bf16 %v3133_v58, %v3132_v2 }
 0x521   : > { %4231 = vmatprep.subr.bf16.mxu0 %v4789_v0 }
 0x522   : > { %4263 = vmatpush1.bf16.msra.mxu1 %v4262_v13  ;;  %v4313_v13 = vpack.c.bf16 %v3135_v4, %v3134_v10 }
 0x523   : > { %4264 = vmatprep.subr.bf16.mxu1 %v4789_v0 }
 0x524   : > { %4233 = vmatpush1.bf16.msra.mxu0 %v4232_v9  ;;  %v4316_v9 = vpack.c.bf16 %v3137_v7, %v3136_v6 }
 0x525   : > { %4234 = vmatprep.subr.bf16.mxu0 %v4789_v0 }
 0x526   : > { %4266 = vmatpush1.bf16.msra.mxu1 %v4265_v14  ;;  %v4319_v14 = vpack.c.bf16 %v3139_v12, %v3138_v11 }
 0x527   : > { %4267 = vmatprep.subr.bf16.mxu1 %v4789_v0 }
 0x528   : > { %4236 = vmatpush1.bf16.msra.mxu0 %v4235_v17 }
 0x529   : > { %4237 = vmatprep.subr.bf16.mxu0 %v4789_v0 }
 0x52a   : > { %4269 = vmatpush1.bf16.msra.mxu1 %v4268_v18 }
 0x52b   : > { %4300 = vmatprep.subr.bf16.mxu1 %v4789_v0 }
 0x52c   : > { %4239 = vmatpush1.bf16.msra.mxu0 %v4238_v19 }
 0x52d   : > { %3020 = vmatmul.mubr.f32.vlgmr.msra.gmra.mrb[42].mxu1 %v2950_v52  ;;  %4270 = vmatprep.subr.bf16.mxu0 %v4789_v0 }
 0x52e   : > { %3785 = vmatprep.mubr.msk.f32.mxu1 %vm4791_vm0, %v4790_v1  ;;  %4302 = vmatpush3.bf16.msra.mxu1 %v4301_v59 }
 0x52f   : > { %2923 = vmatmul.mubr.f32.vlgmr.msra.gmra.mrb[14].mxu0 %v2853_v53  ;;  %4303 = vmatprep.subr.bf16.mxu1 %v4789_v0 }
 0x530   : > { %4272 = vmatpush1.bf16.msra.mxu0 %v4271_v25  ;;  %3598 = vmatprep.mubr.msk.f32.mxu0 %vm1782_vm12, %v3048_v38 }
 0x531   : > { %4273 = vmatprep.subr.bf16.mxu0 %v4789_v0 }
 0x532   : > { %4305 = vmatpush3.bf16.msra.mxu1 %v4304_v26 }
 0x533   : > { %4306 = vmatprep.subr.bf16.mxu1 %v4789_v0 }
 0x534   : > { %4275 = vmatpush1.bf16.msra.mxu0 %v4274_v43 }
 0x535   : > { %4276 = vmatprep.subr.bf16.mxu0 %v4789_v0 }
 0x536   : > { %4308 = vmatpush3.bf16.msra.mxu1 %v4307_v3 }
 0x537   : > { %4309 = vmatprep.subr.bf16.mxu1 %v4789_v0 }
 0x538   : > { %4278 = vmatpush1.bf16.msra.mxu0 %v4277_v30 }
 0x539   : > { %4279 = vmatprep.subr.bf16.mxu0 %v4789_v0 }
 0x53a   : > { %4311 = vmatpush3.bf16.msra.mxu1 %v4310_v60 }
 0x53b   : > { %4312 = vmatprep.subr.bf16.mxu1 %v4789_v0 }
 0x53c   : > { %4281 = vmatpush1.bf16.msra.mxu0 %v4280_v5  ;;  %v3219_v5 = vld [vmem:[%s5908_s9 + $0x10] sm:$0xff] }
 0x53d   : > { %4282 = vmatprep.subr.bf16.mxu0 %v4789_v0  ;;  %v4325_v42 = vpack.c.bf16 %v3220_v35, %v3219_v5 }
 0x53e   : > { %4314 = vmatpush3.bf16.msra.mxu1 %v4313_v13 }
 0x53f   : > { %4315 = vmatprep.subr.bf16.mxu1 %v4789_v0 }
 0x540   : > { %4284 = vmatpush1.bf16.msra.mxu0 %v4283_v36  ;;  %v3221_v36 = vld [vmem:[%s5908_s9 + $0x20] sm:$0xff] }
 0x541   : > { %4285 = vmatprep.subr.bf16.mxu0 %v4789_v0  ;;  %v4328_v40 = vpack.c.bf16 %v3222_v37, %v3221_v36 }
 0x542   : > { %4317 = vmatpush3.bf16.msra.mxu1 %v4316_v9 }
 0x543   : > { %4318 = vmatprep.subr.bf16.mxu1 %v4789_v0 }
 0x544   : > { %4287 = vmatpush1.bf16.msra.mxu0 %v4286_v33  ;;  %v3223_v33 = vld [vmem:[%s5908_s9 + $0x30] sm:$0xff] }
 0x545   : > { %4288 = vmatprep.subr.bf16.mxu0 %v4789_v0  ;;  %v4331_v45 = vpack.c.bf16 %v3224_v44, %v3223_v33 }
 0x546   : > { %4320 = vmatpush3.bf16.msra.mxu1 %v4319_v14 }
 0x547   : > { %3783 = vmatprep.subr.mxu1 %v4790_v1 }
 0x548   : > { %4290 = vmatpush1.bf16.msra.mxu0 %v4289_v20  ;;  %v3225_v20 = vld [vmem:[%s5908_s9 + $0x40] sm:$0xff] }
 0x549   : > { %4291 = vmatprep.subr.bf16.mxu0 %v4789_v0  ;;  %v4334_v39 = vpack.c.bf16 %v3226_v46, %v3225_v20 }
 0x54a   : > { %3784 = vmatpush3.msra.mxu1 %v3140_v15 }
 0x54b   : > { %4321 = vmatprep.subr.bf16.mxu1 %v4789_v0 }
 0x54c   : > { %4293 = vmatpush1.bf16.msra.mxu0 %v4292_v47  ;;  %v3227_v47 = vld [vmem:[%s5908_s9 + $0x50] sm:$0xf] }
 0x54d   : > { %4294 = vmatprep.subr.bf16.mxu0 %v4789_v0 }
 0x550   : > { %4296 = vmatpush1.bf16.msra.mxu0 %v4295_v51 }
 0x551   : > { %4297 = vmatprep.subr.bf16.mxu0 %v4789_v0 }
 0x554   : > { %4299 = vmatpush1.bf16.msra.mxu0 %v4298_v55 }
 0x557   : > { %3117 = vmatmul.mubr.f32.vlgmr.msra.gmra.mrb[16].mxu0 %v3047_v23 }
 0x5d8   : > { %v2828_v16 = vpop.f32.mrb[40].mxu1 }
 0x5d9   : > { %v2830_v17 = vpop.f32.mrb[41].mxu1 }
 0x5da   : > { %v2756_v8 = vpop.f32.mrb[12].mxu0 }
 0x5db   : > { %v2829_v29 = vadd.f32 %v2828_v16, %v2756_v8  ;;  %v2758_v18 = vpop.f32.mrb[13].mxu0 }
 0x600   : > { %v3021_v19 = vpop.f32.mrb[42].mxu1 }
 0x601   : > { %v3023_v24 = vpop.f32.mrb[43].mxu1 }
 0x602   : > { %v2924_v56 = vpop.f32.mrb[14].mxu0 }
 0x603   : > { %v2928_v52 = vadd.f32 %v2924_v56, %v2829_v29  ;;  %v2926_v25 = vpop.f32.mrb[15].mxu0 }
 0x605   : > { %v3025_v53 = vadd.f32 %v3021_v19, %v2928_v52 }
 0x62a   : > { %v3118_v50 = vpop.f32.mrb[16].mxu0 }
 0x62b   : > { %v3122_v38 = vadd.f32 %v3118_v50, %v3025_v53  ;;  %v3120_v43 = vpop.f32.mrb[17].mxu0 }
 0x62d   : > { %v3124_v30 = vadd.f32 %v3123_v34, %v3122_v38 }
 0x62f   : > { %v3125_v32 = vmax.f32 %v3124_v30, 0.0 }
 0x631   : > { %3786 = vmatmul.mubr.msk.f32.vlgmr.msra.gmra.mrb[44].mxu1 %vm3142_vm4, %v3125_v32 }
 0x632   : > { %4323 = vmatpush3.bf16.msra.mxu1 %v4322_v31  ;;  %3810 = vmatprep.mubr.msk.f32.mxu1 %vm4791_vm0, %v4790_v1  ;;  %vm3229_vm0 = vcmask 687104  }
 0x633   : > { %4324 = vmatprep.subr.bf16.mxu1 %v4789_v0 }
 0x636   : > { %4326 = vmatpush3.bf16.msra.mxu1 %v4325_v42 }
 0x637   : > { %4327 = vmatprep.subr.bf16.mxu1 %v4789_v0 }
 0x63a   : > { %4329 = vmatpush3.bf16.msra.mxu1 %v4328_v40 }
 0x63b   : > { %4330 = vmatprep.subr.bf16.mxu1 %v4789_v0 }
 0x63e   : > { %4332 = vmatpush3.bf16.msra.mxu1 %v4331_v45 }
 0x63f   : > { %4333 = vmatprep.subr.bf16.mxu1 %v4789_v0  ;;  %v3141_v0 = vld [vmem:[%s5907_s8] sm:$0x1] }
 0x642   : > { %4335 = vmatpush3.bf16.msra.mxu1 %v4334_v39 }
 0x643   : > { %3808 = vmatprep.subr.mxu1 %v4790_v1 }
 0x646   : > { %3809 = vmatpush3.msk.msra.mxu1 %vm536_vm1, %v3227_v47 }
 0x704   : > { %v3212_v48 = vpop.f32.mrb[44].mxu1 }
 0x705   : > { %v3213_v49 = vadd.f32 %v3212_v48, %v3141_v0  ;;  %v3787_v51 = vpop.f32.mrb[45].mxu1 }
 0x707   : > { %v3216_v1 = vmax.f32 %v3213_v49, 0.0 }
 0x709   : > { %3811 = vmatmul.mubr.msk.f32.vlgmr.msra.gmra.mrb[46].mxu1 %vm3229_vm0, %v3216_v1  ;;  %3307 = vst.msk [vmem:[%s482_s11] sm:$0x1] %vm3306_vm5, %v3216_v1 }
 0x70a   : > { %4685 = shalt.err (!%p4682_p5)
}
 0x70b   : > { %s4686_s28 = scalar_lea.hbm %s5830_s27, 16  ;;  %s4690_s21 = scalar_lea.hbm %s5911_s12, 32 }
 0x70c   : > { %p4687_p0 = scmp.ne.s32.totalorder %s5830_s27, %s4686_s28  ;;  %p4691_p10 = scmp.lt.u32.totalorder %s5830_s27, %s5911_s12 }
 0x70d   : > { %p4692_p12 = scmp.lt.u32.totalorder %s4690_s21, %s4686_s28  ;;  %p4694_p2 = scmp.lt.u32.totalorder %s4686_s28, %s5830_s27 }
 0x70e   : > { %p4688_p6 = pnand %p4687_p0, %p5945_p3 }
 0x70f   : > { %p4693_p1 = por %p4692_p12, %p4691_p10 }
 0x710   : > { %p4689_p9 = pneg %p4688_p6 }
 0x711   : > { %p4695_p4 = por %p4694_p2, %p4693_p1 }
 0x713   : > { %p4696_p7 = pnand %p4695_p4, %p4689_p9 }
 0x715   : > { %4699 = shalt.err (!%p4696_p7)
}
 0x716   : > { %4393 = dma.vmem_to_hbm [thread:$0]  (%p5945_p3), %s3341_s29, 16, %s5830_s27, %s3315_s18   ;;  %v3228_v54 = vld [vmem:[#allocation10] sm:$0x1]  ;;  %vm3308_vm1 = vcmask 73728  }
 0x717   : > { %s476_s14 = scalar_lea.vmem [#allocation11], %s5821_s16  ;;  %s5946_s17 = sld [smem:[#allocation26_spill]] }
 0x718   : > { %s3327_s23 = sshll.u32 %s476_s14, 4  ;;  %s3311_s27 = scalar_lea.sflag [#allocation4], %s5821_s16  ;;  %s5858_s23 = int_to_ptr.vmem [resolvable:$true] %s3327_s23 }
 0x719   : > { %s4700_s29 = scalar_lea.vmem %s5858_s23, 16  ;;  %s4801_s18 = smov [#allocation11]  }
 0x71a   : > { %p4701_p8 = scmp.ne.s32.totalorder %s5858_s23, %s4700_s29  ;;  %s4704_s28 = sshll.u32 %s4801_s18, 4  ;;  %s4705_s28 = int_to_ptr.vmem [resolvable:$false] %s4704_s28 }
 0x71b   : > { %s4706_s25 = scalar_lea.vmem %s4705_s28, 32  ;;  %p4707_p5 = scmp.lt.s32.totalorder %s5858_s23, %s4705_s28 }
 0x71c   : > { %p4702_p11 = pnand %p4701_p8, %p5945_p3  ;;  %p4708_p0 = scmp.lt.s32.totalorder %s4706_s25, %s4700_s29 }
 0x71d   : > { %s5856_s24 = scalar_lea.hbm %s5946_s17, %s3602_s3 }
 0x71e   : > { %p4703_p13 = pneg %p4702_p11  ;;  %p4709_p6 = por %p4708_p0, %p4707_p5 }
 0x720   : > { %p4710_p9 = pnand %p4709_p6, %p4703_p13 }
 0x7dc   : > { %v3302_v62 = vpop.f32.mrb[46].mxu1 }
 0x7dd   : > { %v3303_v55 = vadd.f32 %v3302_v62, %v3228_v54  ;;  %v3812_v23 = vpop.f32.mrb[47].mxu1 }
 0x7df   : > { %3309 = vst.msk [vmem:[%s476_s14] sm:$0x1] %vm3308_vm1, %v3303_v55 }
 0x7e0   : > { %4713 = shalt.err (!%p4710_p9)
}
 0x7e1   : > { %s4714_s16 = scalar_lea.hbm %s5856_s24, 16  ;;  %s4718_s20 = scalar_lea.hbm %s5946_s17, 32 }
 0x7e2   : > { %p4715_p10 = scmp.ne.s32.totalorder %s5856_s24, %s4714_s16  ;;  %p4719_p2 = scmp.lt.u32.totalorder %s5856_s24, %s5946_s17 }
 0x7e3   : > { %p4720_p4 = scmp.lt.u32.totalorder %s4718_s20, %s4714_s16  ;;  %p4722_p8 = scmp.lt.u32.totalorder %s4714_s16, %s5856_s24 }
 0x7e4   : > { %p4716_p12 = pnand %p4715_p10, %p5945_p3 }
 0x7e5   : > { %p4721_p7 = por %p4720_p4, %p4719_p2 }
 0x7e6   : > { %p4717_p1 = pneg %p4716_p12 }
 0x7e7   : > { %p4723_p11 = por %p4722_p8, %p4721_p7 }
 0x7e9   : > { %p4724_p13 = pnand %p4723_p11, %p4717_p1 }
 0x7eb   : > { %4727 = shalt.err (!%p4724_p13)
}
 0x7ec   : > { %4392 = dma.vmem_to_hbm [thread:$0]  (%p5945_p3), %s5858_s23, 16, %s5856_s24, %s3311_s27  }
 0x7ed PF: > { %s5947_s11 = sld [smem:[#allocation21_spill]]  ;;  %s5948_s14 = sld [smem:[#allocation19_spill]] }
 0x7ee   : > { %s5949_s19 = sld [smem:[#allocation24_spill]] }
 0x7f3   : > { %p4429_p5 = scmp.ge.s32.totalorder %s5947_s11, 2  ;;  %s3352_s26 = sand.u32 1, %s5948_s14  }
 0x7f4   : > { %p5950_p0 = scmp.ne.s32.totalorder %s5949_s19, 0  ;;  %s3353_s29 = scalar_lea.sflag [#allocation4], %s3352_s26 }
 0x7f6   : > { %p4413_p6 = pnand %p4429_p5, %p5950_p0 }
 0x7f8   : > { %4757 = dma.done.wait (!%p4413_p6), %s3353_s29, 16  }
 0x7f9   : > { %4759 = vsyncadd (!%p4413_p6), %s3353_s29, 4294967280  ;;  %s3361_s18 = scalar_lea.sflag [#allocation13], %s3352_s26 }
 0x7fa   : > { %4761 = dma.done.wait (!%p4413_p6), %s3361_s18, 16  }
 0x7fb   : > { %4763 = vsyncadd (!%p4413_p6), %s3361_s18, 4294967280  ;;  %s5951_s24 = sld [smem:[#allocation22_spill]]  ;;  %s5952_s13 = sld [smem:[#allocation20_spill]] }
 0x7fc   : > { %s5953_s23 = sld [smem:[#allocation23_spill]]  ;;  %s5954_s21 = smov %s4770_s22 }
 0x801   : > { %p29_p3 = scmp.ge.s32.totalorder %s5951_s24, 4   ;;  %s5955_s22 = smov %s5952_s13 }
 0x803   :  { %31 = sbr.rel (!%p29_p3) target bundleno = 11 (0xb), region = 147 }
 0x80a   :  { %3365 = vsyncpa [#allocation3], 1 }
 0x80b   :  { %3367 = vsyncpa [#allocation3 + $0x1], 1 }
 0x80c   :  { %3368 = vsyncpa [#allocation6], 1 }
 0x80d   :  { %3369 = vsyncpa [#allocation9], 1 }
 0x80e   :  { %3370 = vsyncpa [#allocation4], 1 }
 0x80f   :  { %3372 = vsyncpa [#allocation4 + $0x1], 1 }
 0x810   :  { %3373 = vsyncpa [#allocation13], 1 }
 0x811   :  { %3375 = vsyncpa [#allocation13 + $0x1], 1 }

</bundles_post_ra>
